<compile_context>
chip_gen: v5e
topology: v5e:2x2
jax: 0.10.0
libtpu: 0.0.40
codegen_flags: <defaults>
</compile_context>

<pallas_src>
import functools

import jax
import jax.numpy as jnp
from jax.experimental import pallas as pl
from jax.experimental.pallas import tpu as pltpu


# ----------------------------------------------------------------------------
# Fused PNet kernel (B images per grid step)
# ----------------------------------------------------------------------------
def _pnet_kernel(x_ref, w1_ref, b1_ref, w2_ref, b2_ref, w3h_ref, b3h_ref,
                 out_ref, a1_ref, m_ref, *, H, W, B):
    # Static geometry (Python ints).  Row f of a layer corresponds to spatial
    # (f // W, f % W) on a fixed width-W grid; rows whose column is out of
    # range carry finite garbage and are never used as valid outputs (they are
    # discarded by the wrapper-side gather).  NOTE: never reduce over all rows
    # of these slabs (a sum/max would be poisoned by the garbage rows).
    OH1, OW1 = H - 2, W - 2            # conv1 output
    PH, PW = OH1 // 2, OW1 // 2        # maxpool output (floor)
    OH2, OW2 = PH - 2, PW - 2          # conv2 output
    OH3, OW3 = OH2 - 2, OW2 - 2        # conv3 / head output
    R1 = (OH1 - 1) * W + OW1           # rows covering every valid conv1 output
    R2 = (PH - 1) * W + PW
    R3 = (OH2 - 1) * W + OW2
    R4 = (OH3 - 1) * W + OW3
    RM = 2 * R2 - 1                    # rows of pre-pool pairwise maxima

    def conv3x3(load_rows, w_ref, rows):
        """3x3 valid conv = sum of 9 row-shifted bf16 matmuls (f32 accum)."""
        acc = None
        for idx in range(9):
            kh, kw = divmod(idx, 3)
            lhs = load_rows(kh * W + kw, rows).astype(jnp.bfloat16)
            term = jnp.dot(lhs, w_ref[idx], preferred_element_type=jnp.float32)
            acc = term if acc is None else acc + term
        return acc

    for b in range(B):                 # static unroll over images in this step
        # conv1 (3->10) + folded BN + ReLU.  The 9 taps accumulate directly
        # into the VMEM scratch so the (R1,10) accumulator never needs to live
        # in vregs across matmuls (bounds register pressure -> no spills).
        for idx in range(9):
            kh, kw = divmod(idx, 3)
            off = kh * W + kw
            lhs = x_ref[b, off:off + R1, :].astype(jnp.bfloat16)
            term = jnp.dot(lhs, w1_ref[idx], preferred_element_type=jnp.float32)
            if idx == 0:
                a1_ref[...] = term
            else:
                a1_ref[...] += term
        a1_ref[...] = jnp.maximum(a1_ref[...] + b1_ref[...], 0.0)

        # MaxPool2d(2): contiguous pairwise maxima (cheap VALU, contiguous
        # loads) followed by ONE stride-2 compaction read of the scratch.
        m_ref[...] = jnp.maximum(
            jnp.maximum(a1_ref[0:RM, :], a1_ref[1:RM + 1, :]),
            jnp.maximum(a1_ref[W:W + RM, :], a1_ref[W + 1:W + 1 + RM, :]))
        p = m_ref[pl.ds(0, R2, stride=2), :]

        # conv2 (10->16) + folded BN + ReLU (pooled activation stays in vregs).
        acc2 = conv3x3(lambda off, r: p[off:off + r, :], w2_ref, R3)
        h2 = jnp.maximum(acc2 + b2_ref[...], 0.0)

        # conv3 with the 1x1 cls/box heads algebraically folded in: 16 -> 5.
        hh = conv3x3(lambda off, r: h2[off:off + r, :], w3h_ref, R4) + b3h_ref[...]

        # Sigmoid on the cls column only (column 0); box columns pass through.
        sig = pl.reciprocal(1.0 + jnp.exp(-hh), approx=True)
        col = jax.lax.broadcasted_iota(jnp.int32, hh.shape, 1)
        # Single full-slab store (no per-row masked sublane-sliced stores).
        out_ref[b, :, :] = jnp.where(col == 0, sig, hh)


# ----------------------------------------------------------------------------
# Host-side wrapper: weight/head folding + single pallas_call
# ----------------------------------------------------------------------------
def _fold_conv3x3(w, scale=None):
    """(OC, IC, 3, 3) torch-layout weight -> (9, IC, OC), BN scale folded."""
    OC, IC, K, _ = w.shape
    if scale is not None:
        w = w * scale[:, None, None, None]
    return jnp.transpose(w, (2, 3, 1, 0)).reshape(K * K, IC, OC)


def _pick_images_per_step(N, max_b=8):
    """Largest B (<= max_b) dividing N that still leaves >= 2 grid steps."""
    best = 1
    for b in range(1, min(N, max_b) + 1):
        if N % b == 0 and N // b >= 2:
            best = b
    return best


def pnet_forward(params, x):
    p = params
    N, C, H, W = x.shape
    assert C == 3, "PNet expects 3 input channels"
    OH1, OW1 = H - 2, W - 2
    PH, PW = OH1 // 2, OW1 // 2
    OH2, OW2 = PH - 2, PW - 2
    OH3, OW3 = OH2 - 2, OW2 - 2
    assert OH3 >= 1 and OW3 >= 1, "input spatially too small for PNet"
    R1 = (OH1 - 1) * W + OW1
    R2 = (PH - 1) * W + PW
    R3 = (OH2 - 1) * W + OW2
    R4 = (OH3 - 1) * W + OW3
    RM = 2 * R2 - 1

    B = _pick_images_per_step(N)
    G = N // B

    # VMEM-budget guard for the single-image-resident design (lane pad = 128).
    # TODO(synk): replace with a row-block grid axis (+halo) for big images.
    lane = 128
    vmem_est = 4 * lane * (2 * B * H * W        # input block (double-buffered)
                           + R1 + RM            # conv1 / pool scratches
                           + 2 * B * R4)        # output block (double-buffered)
    assert vmem_est < 40 * 1024 * 1024, (
        f"estimated VMEM footprint {vmem_est} B too large; row-tile the kernel")

    # One-time layout change: NCHW -> (N, H*W rows, C channels-on-lanes).
    x_rows = jnp.transpose(x, (0, 2, 3, 1)).reshape(N, H * W, C)

    # Fold eval-mode BN into conv weights/biases (trace-time, free).  Weights
    # are stored bf16 for single-pass MXU; biases / accumulation stay f32.
    w1 = _fold_conv3x3(p["conv1_w"], p["bn1_scale"]).astype(jnp.bfloat16)
    b1 = (p["conv1_b"] * p["bn1_scale"] + p["bn1_shift"]).reshape(1, 10)
    w2 = _fold_conv3x3(p["conv2_w"], p["bn2_scale"]).astype(jnp.bfloat16)
    b2 = (p["conv2_b"] * p["bn2_scale"] + p["bn2_shift"]).reshape(1, 16)

    # Fold the 1x1 cls/box heads into conv3 (no activation in between):
    #   w3h[k] = w3[k] @ wh  (9,16,5),   b3h = b3 @ wh + bh  (5,)
    w3 = _fold_conv3x3(p["conv3_w"])                               # (9, 16, 32)
    wh = jnp.concatenate([p["cls_w"].reshape(1, 32).T,
                          p["box_w"].reshape(4, 32).T], axis=1)    # (32, 5)
    bh = jnp.concatenate([p["cls_b"], p["box_b"]])                 # (5,)
    w3h = jnp.einsum("kio,oc->kic", w3, wh).astype(jnp.bfloat16)   # (9, 16, 5)
    b3h = (p["conv3_b"] @ wh + bh).reshape(1, 5)

    kernel = functools.partial(_pnet_kernel, H=H, W=W, B=B)
    flops = 2 * N * 9 * (R1 * 3 * 10 + R3 * 10 * 16 + R4 * 16 * 5)
    bytes_accessed = (4 * x_rows.size
                      + 2 * (w1.size + w2.size + w3h.size)
                      + 4 * (b1.size + b2.size + b3h.size)
                      + 4 * N * R4 * 5)

    out = pl.pallas_call(
        kernel,
        out_shape=jax.ShapeDtypeStruct((N, R4, 5), jnp.float32),
        grid=(G,),
        in_specs=[
            pl.BlockSpec((B, H * W, C), lambda n: (n, 0, 0)),
            pl.BlockSpec(w1.shape, lambda n: (0, 0, 0)),
            pl.BlockSpec(b1.shape, lambda n: (0, 0)),
            pl.BlockSpec(w2.shape, lambda n: (0, 0, 0)),
            pl.BlockSpec(b2.shape, lambda n: (0, 0)),
            pl.BlockSpec(w3h.shape, lambda n: (0, 0, 0)),
            pl.BlockSpec(b3h.shape, lambda n: (0, 0)),
        ],
        out_specs=pl.BlockSpec((B, R4, 5), lambda n: (n, 0, 0)),
        scratch_shapes=[pltpu.VMEM((R1, 10), jnp.float32),   # conv1 accumulator
                        pltpu.VMEM((RM, 10), jnp.float32)],  # pre-pool maxima
        compiler_params=pltpu.CompilerParams(
            dimension_semantics=("parallel",),
            vmem_limit_bytes=48 * 1024 * 1024),
        cost_estimate=pl.CostEstimate(
            flops=flops, transcendentals=2 * N * R4 * 5,
            bytes_accessed=bytes_accessed),
    )(x_rows, w1, b1, w2, b2, w3h, b3h)

    # Gather the OH3*OW3 valid rows off the width-W grid; split heads to NCHW.
    valid = (jnp.arange(OH3)[:, None] * W + jnp.arange(OW3)[None, :]).reshape(-1)
    dense = out[:, valid, :]                                    # (N, OH3*OW3, 5)
    cls = dense[:, :, 0].reshape(N, 1, OH3, OW3)                # (N, 1, OH3, OW3)
    box = dense[:, :, 1:5].reshape(N, OH3, OW3, 4).transpose(0, 3, 1, 2)
    return cls, box


# ----------------------------------------------------------------------------
# Deterministic synthetic parameters (matches PNet layer shapes)
# ----------------------------------------------------------------------------
def _init_conv(key, oc, ic, k):
    kw, kb = jax.random.split(key)
    w = jax.random.normal(kw, (oc, ic, k, k), jnp.float32) * 0.1
    b = jax.random.normal(kb, (oc,), jnp.float32) * 0.05
    return w, b


def _init_bn(key, c, eps=1e-5):
    k1, k2, k3, k4 = jax.random.split(key, 4)
    gamma = 1.0 + 0.1 * jax.random.normal(k1, (c,), jnp.float32)
    beta = 0.1 * jax.random.normal(k2, (c,), jnp.float32)
    mean = 0.1 * jax.random.normal(k3, (c,), jnp.float32)
    var = 1.0 + 0.1 * jax.random.uniform(k4, (c,), jnp.float32)
    scale = gamma / jnp.sqrt(var + eps)       # eval-mode BN: y = x*scale + shift
    shift = beta - mean * scale
    return scale, shift


def init_pnet_params(key):
    keys = jax.random.split(key, 8)
    p = {}
    p["conv1_w"], p["conv1_b"] = _init_conv(keys[0], 10, 3, 3)
    p["bn1_scale"], p["bn1_shift"] = _init_bn(keys[1], 10)
    p["conv2_w"], p["conv2_b"] = _init_conv(keys[2], 16, 10, 3)
    p["bn2_scale"], p["bn2_shift"] = _init_bn(keys[3], 16)
    p["conv3_w"], p["conv3_b"] = _init_conv(keys[4], 32, 16, 3)
    p["cls_w"], p["cls_b"] = _init_conv(keys[5], 1, 32, 1)
    p["box_w"], p["box_b"] = _init_conv(keys[6], 4, 32, 1)
    return p


# ----------------------------------------------------------------------------
# Pure-JAX reference (sanity check against the fused kernel)
# ----------------------------------------------------------------------------
def pnet_reference(params, x):
    p = params

    def conv(h, w, b):
        y = jax.lax.conv_general_dilated(
            h, w, (1, 1), "VALID",
            dimension_numbers=("NCHW", "OIHW", "NCHW"),
            precision=jax.lax.Precision.HIGHEST)
        return y + b[None, :, None, None]

    h = conv(x, p["conv1_w"], p["conv1_b"])
    h = h * p["bn1_scale"][None, :, None, None] + p["bn1_shift"][None, :, None, None]
    h = jnp.maximum(h, 0.0)
    h = jax.lax.reduce_window(h, -jnp.inf, jax.lax.max,
                              (1, 1, 2, 2), (1, 1, 2, 2), "VALID")
    h = conv(h, p["conv2_w"], p["conv2_b"])
    h = h * p["bn2_scale"][None, :, None, None] + p["bn2_shift"][None, :, None, None]
    h = jnp.maximum(h, 0.0)
    h = conv(h, p["conv3_w"], p["conv3_b"])
    cls = jax.nn.sigmoid(conv(h, p["cls_w"], p["cls_b"]))
    box = conv(h, p["box_w"], p["box_b"])
    return cls, box


if __name__ == "__main__":
    key = jax.random.PRNGKey(0)
    kx, kp = jax.random.split(key)
    # PNet requires 3 input channels; 16x16 spatial -> 3x3 output maps.
    x = jax.random.normal(kx, (2, 3, 16, 16), jnp.float32)
    params = init_pnet_params(kp)

    fwd = jax.jit(pnet_forward)
    cls, box = fwd(params, x)
    jax.block_until_ready((cls, box))

    assert cls.shape == (2, 1, 3, 3), cls.shape
    assert box.shape == (2, 4, 3, 3), box.shape

    cls_ref, box_ref = pnet_reference(params, x)
    cls_err = float(jnp.max(jnp.abs(cls - cls_ref)))
    box_err = float(jnp.max(jnp.abs(box - box_ref)))
    # Tolerance accounts for bf16-fed MXU matmuls vs the f32 HIGHEST reference.
    assert cls_err < 1.5e-2 and box_err < 1.5e-2, (cls_err, box_err)

    print("KERNEL_OK")
</pallas_src>

<mosaic_0001>
module attributes {stable_mosaic.version = 11 : i64} {
  func.func @_pnet_kernel(%arg0: i32, %arg1: memref<1x256x3xf32, #tpu.memory_space<vmem>>, %arg2: memref<9x3x10xbf16, #tpu.memory_space<vmem>>, %arg3: memref<1x10xf32, #tpu.memory_space<vmem>>, %arg4: memref<9x10x16xbf16, #tpu.memory_space<vmem>>, %arg5: memref<1x16xf32, #tpu.memory_space<vmem>>, %arg6: memref<9x16x5xbf16, #tpu.memory_space<vmem>>, %arg7: memref<1x5xf32, #tpu.memory_space<vmem>>, %arg8: memref<1x35x5xf32, #tpu.memory_space<vmem>>, %arg9: memref<222x10xf32, #tpu.memory_space<vmem>>, %arg10: memref<205x10xf32, #tpu.memory_space<vmem>>) attributes {dimension_semantics = [#tpu.dimension_semantics<parallel>], iteration_bounds = array<i64: 2>, scalar_prefetch = 0 : i64, scratch_operands = 2 : i64, tpu.core_type = #tpu.core_type<tc>, window_params = [{transform_indices = @transform_0, window_bounds = array<i64: 1, 256, 3>}, {pipeline_mode = #tpu.pipeline_mode<synchronous>, transform_indices = @transform_1, window_bounds = array<i64: 9, 3, 10>}, {pipeline_mode = #tpu.pipeline_mode<synchronous>, transform_indices = @transform_2, window_bounds = array<i64: 1, 10>}, {pipeline_mode = #tpu.pipeline_mode<synchronous>, transform_indices = @transform_3, window_bounds = array<i64: 9, 10, 16>}, {pipeline_mode = #tpu.pipeline_mode<synchronous>, transform_indices = @transform_4, window_bounds = array<i64: 1, 16>}, {pipeline_mode = #tpu.pipeline_mode<synchronous>, transform_indices = @transform_5, window_bounds = array<i64: 9, 16, 5>}, {pipeline_mode = #tpu.pipeline_mode<synchronous>, transform_indices = @transform_6, window_bounds = array<i64: 1, 5>}, {transform_indices = @transform_7, window_bounds = array<i64: 1, 35, 5>}]} {
    %c0 = arith.constant 0 : index
    %c0_0 = arith.constant 0 : index
    %c0_1 = arith.constant 0 : index
    %0 = vector.load %arg1[%c0, %c0_0, %c0_1] : memref<1x256x3xf32, #tpu.memory_space<vmem>>, vector<1x222x3xf32>
    %1 = vector.shape_cast %0 : vector<1x222x3xf32> to vector<222x3xf32>
    %2 = arith.truncf %1 : vector<222x3xf32> to vector<222x3xbf16>
    %c0_2 = arith.constant 0 : index
    %c0_3 = arith.constant 0 : index
    %c0_4 = arith.constant 0 : index
    %3 = vector.load %arg2[%c0_2, %c0_3, %c0_4] : memref<9x3x10xbf16, #tpu.memory_space<vmem>>, vector<1x3x10xbf16>
    %4 = vector.shape_cast %3 : vector<1x3x10xbf16> to vector<3x10xbf16>
    %cst = arith.constant dense<0.000000e+00> : vector<222x10xf32>
    %5 = tpu.matmul %2, %4, %cst {dimension_numbers = #tpu.dot_dimension_numbers<[1], [0], [0], [1], [0, 0, 1, 1], [], []>} : vector<222x3xbf16>, vector<3x10xbf16>, vector<222x10xf32> -> vector<222x10xf32>
    %c0_5 = arith.constant 0 : index
    %c0_6 = arith.constant 0 : index
    %6 = vector.load %arg9[%c0_5, %c0_6] : memref<222x10xf32, #tpu.memory_space<vmem>>, vector<222x10xf32>
    tpu.vector_store %arg9[%c0_5, %c0_6], %5 {strides = array<i32>} : memref<222x10xf32, #tpu.memory_space<vmem>>, vector<222x10xf32>,
    %c0_7 = arith.constant 0 : index
    %c1 = arith.constant 1 : index
    %c0_8 = arith.constant 0 : index
    %7 = vector.load %arg1[%c0_7, %c1, %c0_8] : memref<1x256x3xf32, #tpu.memory_space<vmem>>, vector<1x222x3xf32>
    %8 = vector.shape_cast %7 : vector<1x222x3xf32> to vector<222x3xf32>
    %9 = arith.truncf %8 : vector<222x3xf32> to vector<222x3xbf16>
    %c1_9 = arith.constant 1 : index
    %c0_10 = arith.constant 0 : index
    %c0_11 = arith.constant 0 : index
    %10 = vector.load %arg2[%c1_9, %c0_10, %c0_11] : memref<9x3x10xbf16, #tpu.memory_space<vmem>>, vector<1x3x10xbf16>
    %11 = vector.shape_cast %10 : vector<1x3x10xbf16> to vector<3x10xbf16>
    %cst_12 = arith.constant dense<0.000000e+00> : vector<222x10xf32>
    %12 = tpu.matmul %9, %11, %cst_12 {dimension_numbers = #tpu.dot_dimension_numbers<[1], [0], [0], [1], [0, 0, 1, 1], [], []>} : vector<222x3xbf16>, vector<3x10xbf16>, vector<222x10xf32> -> vector<222x10xf32>
    %c0_13 = arith.constant 0 : index
    %c0_14 = arith.constant 0 : index
    %13 = vector.load %arg9[%c0_13, %c0_14] : memref<222x10xf32, #tpu.memory_space<vmem>>, vector<222x10xf32>
    %14 = arith.addf %13, %12 : vector<222x10xf32>
    %c0_15 = arith.constant 0 : index
    %c0_16 = arith.constant 0 : index
    %15 = vector.load %arg9[%c0_15, %c0_16] : memref<222x10xf32, #tpu.memory_space<vmem>>, vector<222x10xf32>
    tpu.vector_store %arg9[%c0_15, %c0_16], %14 {strides = array<i32>} : memref<222x10xf32, #tpu.memory_space<vmem>>, vector<222x10xf32>,
    %c0_17 = arith.constant 0 : index
    %c2 = arith.constant 2 : index
    %c0_18 = arith.constant 0 : index
    %16 = vector.load %arg1[%c0_17, %c2, %c0_18] : memref<1x256x3xf32, #tpu.memory_space<vmem>>, vector<1x222x3xf32>
    %17 = vector.shape_cast %16 : vector<1x222x3xf32> to vector<222x3xf32>
    %18 = arith.truncf %17 : vector<222x3xf32> to vector<222x3xbf16>
    %c2_19 = arith.constant 2 : index
    %c0_20 = arith.constant 0 : index
    %c0_21 = arith.constant 0 : index
    %19 = vector.load %arg2[%c2_19, %c0_20, %c0_21] : memref<9x3x10xbf16, #tpu.memory_space<vmem>>, vector<1x3x10xbf16>
    %20 = vector.shape_cast %19 : vector<1x3x10xbf16> to vector<3x10xbf16>
    %cst_22 = arith.constant dense<0.000000e+00> : vector<222x10xf32>
    %21 = tpu.matmul %18, %20, %cst_22 {dimension_numbers = #tpu.dot_dimension_numbers<[1], [0], [0], [1], [0, 0, 1, 1], [], []>} : vector<222x3xbf16>, vector<3x10xbf16>, vector<222x10xf32> -> vector<222x10xf32>
    %c0_23 = arith.constant 0 : index
    %c0_24 = arith.constant 0 : index
    %22 = vector.load %arg9[%c0_23, %c0_24] : memref<222x10xf32, #tpu.memory_space<vmem>>, vector<222x10xf32>
    %23 = arith.addf %22, %21 : vector<222x10xf32>
    %c0_25 = arith.constant 0 : index
    %c0_26 = arith.constant 0 : index
    %24 = vector.load %arg9[%c0_25, %c0_26] : memref<222x10xf32, #tpu.memory_space<vmem>>, vector<222x10xf32>
    tpu.vector_store %arg9[%c0_25, %c0_26], %23 {strides = array<i32>} : memref<222x10xf32, #tpu.memory_space<vmem>>, vector<222x10xf32>,
    %c0_27 = arith.constant 0 : index
    %c16 = arith.constant 16 : index
    %c0_28 = arith.constant 0 : index
    %25 = vector.load %arg1[%c0_27, %c16, %c0_28] : memref<1x256x3xf32, #tpu.memory_space<vmem>>, vector<1x222x3xf32>
    %26 = vector.shape_cast %25 : vector<1x222x3xf32> to vector<222x3xf32>
    %27 = arith.truncf %26 : vector<222x3xf32> to vector<222x3xbf16>
    %c3 = arith.constant 3 : index
    %c0_29 = arith.constant 0 : index
    %c0_30 = arith.constant 0 : index
    %28 = vector.load %arg2[%c3, %c0_29, %c0_30] : memref<9x3x10xbf16, #tpu.memory_space<vmem>>, vector<1x3x10xbf16>
    %29 = vector.shape_cast %28 : vector<1x3x10xbf16> to vector<3x10xbf16>
    %cst_31 = arith.constant dense<0.000000e+00> : vector<222x10xf32>
    %30 = tpu.matmul %27, %29, %cst_31 {dimension_numbers = #tpu.dot_dimension_numbers<[1], [0], [0], [1], [0, 0, 1, 1], [], []>} : vector<222x3xbf16>, vector<3x10xbf16>, vector<222x10xf32> -> vector<222x10xf32>
    %c0_32 = arith.constant 0 : index
    %c0_33 = arith.constant 0 : index
    %31 = vector.load %arg9[%c0_32, %c0_33] : memref<222x10xf32, #tpu.memory_space<vmem>>, vector<222x10xf32>
    %32 = arith.addf %31, %30 : vector<222x10xf32>
    %c0_34 = arith.constant 0 : index
    %c0_35 = arith.constant 0 : index
    %33 = vector.load %arg9[%c0_34, %c0_35] : memref<222x10xf32, #tpu.memory_space<vmem>>, vector<222x10xf32>
    tpu.vector_store %arg9[%c0_34, %c0_35], %32 {strides = array<i32>} : memref<222x10xf32, #tpu.memory_space<vmem>>, vector<222x10xf32>,
    %c0_36 = arith.constant 0 : index
    %c17 = arith.constant 17 : index
    %c0_37 = arith.constant 0 : index
    %34 = vector.load %arg1[%c0_36, %c17, %c0_37] : memref<1x256x3xf32, #tpu.memory_space<vmem>>, vector<1x222x3xf32>
    %35 = vector.shape_cast %34 : vector<1x222x3xf32> to vector<222x3xf32>
    %36 = arith.truncf %35 : vector<222x3xf32> to vector<222x3xbf16>
    %c4 = arith.constant 4 : index
    %c0_38 = arith.constant 0 : index
    %c0_39 = arith.constant 0 : index
    %37 = vector.load %arg2[%c4, %c0_38, %c0_39] : memref<9x3x10xbf16, #tpu.memory_space<vmem>>, vector<1x3x10xbf16>
    %38 = vector.shape_cast %37 : vector<1x3x10xbf16> to vector<3x10xbf16>
    %cst_40 = arith.constant dense<0.000000e+00> : vector<222x10xf32>
    %39 = tpu.matmul %36, %38, %cst_40 {dimension_numbers = #tpu.dot_dimension_numbers<[1], [0], [0], [1], [0, 0, 1, 1], [], []>} : vector<222x3xbf16>, vector<3x10xbf16>, vector<222x10xf32> -> vector<222x10xf32>
    %c0_41 = arith.constant 0 : index
    %c0_42 = arith.constant 0 : index
    %40 = vector.load %arg9[%c0_41, %c0_42] : memref<222x10xf32, #tpu.memory_space<vmem>>, vector<222x10xf32>
    %41 = arith.addf %40, %39 : vector<222x10xf32>
    %c0_43 = arith.constant 0 : index
    %c0_44 = arith.constant 0 : index
    %42 = vector.load %arg9[%c0_43, %c0_44] : memref<222x10xf32, #tpu.memory_space<vmem>>, vector<222x10xf32>
    tpu.vector_store %arg9[%c0_43, %c0_44], %41 {strides = array<i32>} : memref<222x10xf32, #tpu.memory_space<vmem>>, vector<222x10xf32>,
    %c0_45 = arith.constant 0 : index
    %c18 = arith.constant 18 : index
    %c0_46 = arith.constant 0 : index
    %43 = vector.load %arg1[%c0_45, %c18, %c0_46] : memref<1x256x3xf32, #tpu.memory_space<vmem>>, vector<1x222x3xf32>
    %44 = vector.shape_cast %43 : vector<1x222x3xf32> to vector<222x3xf32>
    %45 = arith.truncf %44 : vector<222x3xf32> to vector<222x3xbf16>
    %c5 = arith.constant 5 : index
    %c0_47 = arith.constant 0 : index
    %c0_48 = arith.constant 0 : index
    %46 = vector.load %arg2[%c5, %c0_47, %c0_48] : memref<9x3x10xbf16, #tpu.memory_space<vmem>>, vector<1x3x10xbf16>
    %47 = vector.shape_cast %46 : vector<1x3x10xbf16> to vector<3x10xbf16>
    %cst_49 = arith.constant dense<0.000000e+00> : vector<222x10xf32>
    %48 = tpu.matmul %45, %47, %cst_49 {dimension_numbers = #tpu.dot_dimension_numbers<[1], [0], [0], [1], [0, 0, 1, 1], [], []>} : vector<222x3xbf16>, vector<3x10xbf16>, vector<222x10xf32> -> vector<222x10xf32>
    %c0_50 = arith.constant 0 : index
    %c0_51 = arith.constant 0 : index
    %49 = vector.load %arg9[%c0_50, %c0_51] : memref<222x10xf32, #tpu.memory_space<vmem>>, vector<222x10xf32>
    %50 = arith.addf %49, %48 : vector<222x10xf32>
    %c0_52 = arith.constant 0 : index
    %c0_53 = arith.constant 0 : index
    %51 = vector.load %arg9[%c0_52, %c0_53] : memref<222x10xf32, #tpu.memory_space<vmem>>, vector<222x10xf32>
    tpu.vector_store %arg9[%c0_52, %c0_53], %50 {strides = array<i32>} : memref<222x10xf32, #tpu.memory_space<vmem>>, vector<222x10xf32>,
    %c0_54 = arith.constant 0 : index
    %c32 = arith.constant 32 : index
    %c0_55 = arith.constant 0 : index
    %52 = vector.load %arg1[%c0_54, %c32, %c0_55] : memref<1x256x3xf32, #tpu.memory_space<vmem>>, vector<1x222x3xf32>
    %53 = vector.shape_cast %52 : vector<1x222x3xf32> to vector<222x3xf32>
    %54 = arith.truncf %53 : vector<222x3xf32> to vector<222x3xbf16>
    %c6 = arith.constant 6 : index
    %c0_56 = arith.constant 0 : index
    %c0_57 = arith.constant 0 : index
    %55 = vector.load %arg2[%c6, %c0_56, %c0_57] : memref<9x3x10xbf16, #tpu.memory_space<vmem>>, vector<1x3x10xbf16>
    %56 = vector.shape_cast %55 : vector<1x3x10xbf16> to vector<3x10xbf16>
    %cst_58 = arith.constant dense<0.000000e+00> : vector<222x10xf32>
    %57 = tpu.matmul %54, %56, %cst_58 {dimension_numbers = #tpu.dot_dimension_numbers<[1], [0], [0], [1], [0, 0, 1, 1], [], []>} : vector<222x3xbf16>, vector<3x10xbf16>, vector<222x10xf32> -> vector<222x10xf32>
    %c0_59 = arith.constant 0 : index
    %c0_60 = arith.constant 0 : index
    %58 = vector.load %arg9[%c0_59, %c0_60] : memref<222x10xf32, #tpu.memory_space<vmem>>, vector<222x10xf32>
    %59 = arith.addf %58, %57 : vector<222x10xf32>
    %c0_61 = arith.constant 0 : index
    %c0_62 = arith.constant 0 : index
    %60 = vector.load %arg9[%c0_61, %c0_62] : memref<222x10xf32, #tpu.memory_space<vmem>>, vector<222x10xf32>
    tpu.vector_store %arg9[%c0_61, %c0_62], %59 {strides = array<i32>} : memref<222x10xf32, #tpu.memory_space<vmem>>, vector<222x10xf32>,
    %c0_63 = arith.constant 0 : index
    %c33 = arith.constant 33 : index
    %c0_64 = arith.constant 0 : index
    %61 = vector.load %arg1[%c0_63, %c33, %c0_64] : memref<1x256x3xf32, #tpu.memory_space<vmem>>, vector<1x222x3xf32>
    %62 = vector.shape_cast %61 : vector<1x222x3xf32> to vector<222x3xf32>
    %63 = arith.truncf %62 : vector<222x3xf32> to vector<222x3xbf16>
    %c7 = arith.constant 7 : index
    %c0_65 = arith.constant 0 : index
    %c0_66 = arith.constant 0 : index
    %64 = vector.load %arg2[%c7, %c0_65, %c0_66] : memref<9x3x10xbf16, #tpu.memory_space<vmem>>, vector<1x3x10xbf16>
    %65 = vector.shape_cast %64 : vector<1x3x10xbf16> to vector<3x10xbf16>
    %cst_67 = arith.constant dense<0.000000e+00> : vector<222x10xf32>
    %66 = tpu.matmul %63, %65, %cst_67 {dimension_numbers = #tpu.dot_dimension_numbers<[1], [0], [0], [1], [0, 0, 1, 1], [], []>} : vector<222x3xbf16>, vector<3x10xbf16>, vector<222x10xf32> -> vector<222x10xf32>
    %c0_68 = arith.constant 0 : index
    %c0_69 = arith.constant 0 : index
    %67 = vector.load %arg9[%c0_68, %c0_69] : memref<222x10xf32, #tpu.memory_space<vmem>>, vector<222x10xf32>
    %68 = arith.addf %67, %66 : vector<222x10xf32>
    %c0_70 = arith.constant 0 : index
    %c0_71 = arith.constant 0 : index
    %69 = vector.load %arg9[%c0_70, %c0_71] : memref<222x10xf32, #tpu.memory_space<vmem>>, vector<222x10xf32>
    tpu.vector_store %arg9[%c0_70, %c0_71], %68 {strides = array<i32>} : memref<222x10xf32, #tpu.memory_space<vmem>>, vector<222x10xf32>,
    %c0_72 = arith.constant 0 : index
    %c34 = arith.constant 34 : index
    %c0_73 = arith.constant 0 : index
    %70 = vector.load %arg1[%c0_72, %c34, %c0_73] : memref<1x256x3xf32, #tpu.memory_space<vmem>>, vector<1x222x3xf32>
    %71 = vector.shape_cast %70 : vector<1x222x3xf32> to vector<222x3xf32>
    %72 = arith.truncf %71 : vector<222x3xf32> to vector<222x3xbf16>
    %c8 = arith.constant 8 : index
    %c0_74 = arith.constant 0 : index
    %c0_75 = arith.constant 0 : index
    %73 = vector.load %arg2[%c8, %c0_74, %c0_75] : memref<9x3x10xbf16, #tpu.memory_space<vmem>>, vector<1x3x10xbf16>
    %74 = vector.shape_cast %73 : vector<1x3x10xbf16> to vector<3x10xbf16>
    %cst_76 = arith.constant dense<0.000000e+00> : vector<222x10xf32>
    %75 = tpu.matmul %72, %74, %cst_76 {dimension_numbers = #tpu.dot_dimension_numbers<[1], [0], [0], [1], [0, 0, 1, 1], [], []>} : vector<222x3xbf16>, vector<3x10xbf16>, vector<222x10xf32> -> vector<222x10xf32>
    %c0_77 = arith.constant 0 : index
    %c0_78 = arith.constant 0 : index
    %76 = vector.load %arg9[%c0_77, %c0_78] : memref<222x10xf32, #tpu.memory_space<vmem>>, vector<222x10xf32>
    %77 = arith.addf %76, %75 : vector<222x10xf32>
    %c0_79 = arith.constant 0 : index
    %c0_80 = arith.constant 0 : index
    %78 = vector.load %arg9[%c0_79, %c0_80] : memref<222x10xf32, #tpu.memory_space<vmem>>, vector<222x10xf32>
    tpu.vector_store %arg9[%c0_79, %c0_80], %77 {strides = array<i32>} : memref<222x10xf32, #tpu.memory_space<vmem>>, vector<222x10xf32>,
    %c0_81 = arith.constant 0 : index
    %c0_82 = arith.constant 0 : index
    %79 = vector.load %arg9[%c0_81, %c0_82] : memref<222x10xf32, #tpu.memory_space<vmem>>, vector<222x10xf32>
    %c0_83 = arith.constant 0 : index
    %c0_84 = arith.constant 0 : index
    %80 = vector.load %arg3[%c0_83, %c0_84] : memref<1x10xf32, #tpu.memory_space<vmem>>, vector<1x10xf32>
    %81 = vector.broadcast %80 : vector<1x10xf32> to vector<222x10xf32>
    %82 = arith.addf %79, %81 : vector<222x10xf32>
    %cst_85 = arith.constant 0.000000e+00 : f32
    %83 = vector.broadcast %cst_85 : f32 to vector<222x10xf32>
    %84 = arith.maximumf %82, %83 : vector<222x10xf32>
    %c0_86 = arith.constant 0 : index
    %c0_87 = arith.constant 0 : index
    %85 = vector.load %arg9[%c0_86, %c0_87] : memref<222x10xf32, #tpu.memory_space<vmem>>, vector<222x10xf32>
    tpu.vector_store %arg9[%c0_86, %c0_87], %84 {strides = array<i32>} : memref<222x10xf32, #tpu.memory_space<vmem>>, vector<222x10xf32>,
    %c0_88 = arith.constant 0 : index
    %c0_89 = arith.constant 0 : index
    %86 = vector.load %arg9[%c0_88, %c0_89] : memref<222x10xf32, #tpu.memory_space<vmem>>, vector<205x10xf32>
    %c1_90 = arith.constant 1 : index
    %c0_91 = arith.constant 0 : index
    %87 = vector.load %arg9[%c1_90, %c0_91] : memref<222x10xf32, #tpu.memory_space<vmem>>, vector<205x10xf32>
    %88 = arith.maximumf %86, %87 : vector<205x10xf32>
    %c16_92 = arith.constant 16 : index
    %c0_93 = arith.constant 0 : index
    %89 = vector.load %arg9[%c16_92, %c0_93] : memref<222x10xf32, #tpu.memory_space<vmem>>, vector<205x10xf32>
    %c17_94 = arith.constant 17 : index
    %c0_95 = arith.constant 0 : index
    %90 = vector.load %arg9[%c17_94, %c0_95] : memref<222x10xf32, #tpu.memory_space<vmem>>, vector<205x10xf32>
    %91 = arith.maximumf %89, %90 : vector<205x10xf32>
    %92 = arith.maximumf %88, %91 : vector<205x10xf32>
    %c0_96 = arith.constant 0 : index
    %c0_97 = arith.constant 0 : index
    %93 = vector.load %arg10[%c0_96, %c0_97] : memref<205x10xf32, #tpu.memory_space<vmem>>, vector<205x10xf32>
    tpu.vector_store %arg10[%c0_96, %c0_97], %92 {strides = array<i32>} : memref<205x10xf32, #tpu.memory_space<vmem>>, vector<205x10xf32>,
    %c0_98 = arith.constant 0 : index
    %c0_99 = arith.constant 0 : index
    %94 = tpu.strided_load %arg10[%c0_98, %c0_99] {strides = array<i32: 2, 1>} : memref<205x10xf32, #tpu.memory_space<vmem>>, vector<103x10xf32>
    %95 = vector.extract_strided_slice %94 {offsets = [0, 0], sizes = [69, 10], strides = [1, 1]} : vector<103x10xf32> to vector<69x10xf32>
    %96 = arith.truncf %95 : vector<69x10xf32> to vector<69x10xbf16>
    %c0_100 = arith.constant 0 : index
    %c0_101 = arith.constant 0 : index
    %c0_102 = arith.constant 0 : index
    %97 = vector.load %arg4[%c0_100, %c0_101, %c0_102] : memref<9x10x16xbf16, #tpu.memory_space<vmem>>, vector<1x10x16xbf16>
    %98 = vector.shape_cast %97 : vector<1x10x16xbf16> to vector<10x16xbf16>
    %cst_103 = arith.constant dense<0.000000e+00> : vector<69x16xf32>
    %99 = tpu.matmul %96, %98, %cst_103 {dimension_numbers = #tpu.dot_dimension_numbers<[1], [0], [0], [1], [0, 0, 1, 1], [], []>} : vector<69x10xbf16>, vector<10x16xbf16>, vector<69x16xf32> -> vector<69x16xf32>
    %100 = vector.extract_strided_slice %94 {offsets = [1, 0], sizes = [69, 10], strides = [1, 1]} : vector<103x10xf32> to vector<69x10xf32>
    %101 = arith.truncf %100 : vector<69x10xf32> to vector<69x10xbf16>
    %c1_104 = arith.constant 1 : index
    %c0_105 = arith.constant 0 : index
    %c0_106 = arith.constant 0 : index
    %102 = vector.load %arg4[%c1_104, %c0_105, %c0_106] : memref<9x10x16xbf16, #tpu.memory_space<vmem>>, vector<1x10x16xbf16>
    %103 = vector.shape_cast %102 : vector<1x10x16xbf16> to vector<10x16xbf16>
    %cst_107 = arith.constant dense<0.000000e+00> : vector<69x16xf32>
    %104 = tpu.matmul %101, %103, %cst_107 {dimension_numbers = #tpu.dot_dimension_numbers<[1], [0], [0], [1], [0, 0, 1, 1], [], []>} : vector<69x10xbf16>, vector<10x16xbf16>, vector<69x16xf32> -> vector<69x16xf32>
    %105 = arith.addf %99, %104 : vector<69x16xf32>
    %106 = vector.extract_strided_slice %94 {offsets = [2, 0], sizes = [69, 10], strides = [1, 1]} : vector<103x10xf32> to vector<69x10xf32>
    %107 = arith.truncf %106 : vector<69x10xf32> to vector<69x10xbf16>
    %c2_108 = arith.constant 2 : index
    %c0_109 = arith.constant 0 : index
    %c0_110 = arith.constant 0 : index
    %108 = vector.load %arg4[%c2_108, %c0_109, %c0_110] : memref<9x10x16xbf16, #tpu.memory_space<vmem>>, vector<1x10x16xbf16>
    %109 = vector.shape_cast %108 : vector<1x10x16xbf16> to vector<10x16xbf16>
    %cst_111 = arith.constant dense<0.000000e+00> : vector<69x16xf32>
    %110 = tpu.matmul %107, %109, %cst_111 {dimension_numbers = #tpu.dot_dimension_numbers<[1], [0], [0], [1], [0, 0, 1, 1], [], []>} : vector<69x10xbf16>, vector<10x16xbf16>, vector<69x16xf32> -> vector<69x16xf32>
    %111 = arith.addf %105, %110 : vector<69x16xf32>
    %112 = vector.extract_strided_slice %94 {offsets = [16, 0], sizes = [69, 10], strides = [1, 1]} : vector<103x10xf32> to vector<69x10xf32>
    %113 = arith.truncf %112 : vector<69x10xf32> to vector<69x10xbf16>
    %c3_112 = arith.constant 3 : index
    %c0_113 = arith.constant 0 : index
    %c0_114 = arith.constant 0 : index
    %114 = vector.load %arg4[%c3_112, %c0_113, %c0_114] : memref<9x10x16xbf16, #tpu.memory_space<vmem>>, vector<1x10x16xbf16>
    %115 = vector.shape_cast %114 : vector<1x10x16xbf16> to vector<10x16xbf16>
    %cst_115 = arith.constant dense<0.000000e+00> : vector<69x16xf32>
    %116 = tpu.matmul %113, %115, %cst_115 {dimension_numbers = #tpu.dot_dimension_numbers<[1], [0], [0], [1], [0, 0, 1, 1], [], []>} : vector<69x10xbf16>, vector<10x16xbf16>, vector<69x16xf32> -> vector<69x16xf32>
    %117 = arith.addf %111, %116 : vector<69x16xf32>
    %118 = vector.extract_strided_slice %94 {offsets = [17, 0], sizes = [69, 10], strides = [1, 1]} : vector<103x10xf32> to vector<69x10xf32>
    %119 = arith.truncf %118 : vector<69x10xf32> to vector<69x10xbf16>
    %c4_116 = arith.constant 4 : index
    %c0_117 = arith.constant 0 : index
    %c0_118 = arith.constant 0 : index
    %120 = vector.load %arg4[%c4_116, %c0_117, %c0_118] : memref<9x10x16xbf16, #tpu.memory_space<vmem>>, vector<1x10x16xbf16>
    %121 = vector.shape_cast %120 : vector<1x10x16xbf16> to vector<10x16xbf16>
    %cst_119 = arith.constant dense<0.000000e+00> : vector<69x16xf32>
    %122 = tpu.matmul %119, %121, %cst_119 {dimension_numbers = #tpu.dot_dimension_numbers<[1], [0], [0], [1], [0, 0, 1, 1], [], []>} : vector<69x10xbf16>, vector<10x16xbf16>, vector<69x16xf32> -> vector<69x16xf32>
    %123 = arith.addf %117, %122 : vector<69x16xf32>
    %124 = vector.extract_strided_slice %94 {offsets = [18, 0], sizes = [69, 10], strides = [1, 1]} : vector<103x10xf32> to vector<69x10xf32>
    %125 = arith.truncf %124 : vector<69x10xf32> to vector<69x10xbf16>
    %c5_120 = arith.constant 5 : index
    %c0_121 = arith.constant 0 : index
    %c0_122 = arith.constant 0 : index
    %126 = vector.load %arg4[%c5_120, %c0_121, %c0_122] : memref<9x10x16xbf16, #tpu.memory_space<vmem>>, vector<1x10x16xbf16>
    %127 = vector.shape_cast %126 : vector<1x10x16xbf16> to vector<10x16xbf16>
    %cst_123 = arith.constant dense<0.000000e+00> : vector<69x16xf32>
    %128 = tpu.matmul %125, %127, %cst_123 {dimension_numbers = #tpu.dot_dimension_numbers<[1], [0], [0], [1], [0, 0, 1, 1], [], []>} : vector<69x10xbf16>, vector<10x16xbf16>, vector<69x16xf32> -> vector<69x16xf32>
    %129 = arith.addf %123, %128 : vector<69x16xf32>
    %130 = vector.extract_strided_slice %94 {offsets = [32, 0], sizes = [69, 10], strides = [1, 1]} : vector<103x10xf32> to vector<69x10xf32>
    %131 = arith.truncf %130 : vector<69x10xf32> to vector<69x10xbf16>
    %c6_124 = arith.constant 6 : index
    %c0_125 = arith.constant 0 : index
    %c0_126 = arith.constant 0 : index
    %132 = vector.load %arg4[%c6_124, %c0_125, %c0_126] : memref<9x10x16xbf16, #tpu.memory_space<vmem>>, vector<1x10x16xbf16>
    %133 = vector.shape_cast %132 : vector<1x10x16xbf16> to vector<10x16xbf16>
    %cst_127 = arith.constant dense<0.000000e+00> : vector<69x16xf32>
    %134 = tpu.matmul %131, %133, %cst_127 {dimension_numbers = #tpu.dot_dimension_numbers<[1], [0], [0], [1], [0, 0, 1, 1], [], []>} : vector<69x10xbf16>, vector<10x16xbf16>, vector<69x16xf32> -> vector<69x16xf32>
    %135 = arith.addf %129, %134 : vector<69x16xf32>
    %136 = vector.extract_strided_slice %94 {offsets = [33, 0], sizes = [69, 10], strides = [1, 1]} : vector<103x10xf32> to vector<69x10xf32>
    %137 = arith.truncf %136 : vector<69x10xf32> to vector<69x10xbf16>
    %c7_128 = arith.constant 7 : index
    %c0_129 = arith.constant 0 : index
    %c0_130 = arith.constant 0 : index
    %138 = vector.load %arg4[%c7_128, %c0_129, %c0_130] : memref<9x10x16xbf16, #tpu.memory_space<vmem>>, vector<1x10x16xbf16>
    %139 = vector.shape_cast %138 : vector<1x10x16xbf16> to vector<10x16xbf16>
    %cst_131 = arith.constant dense<0.000000e+00> : vector<69x16xf32>
    %140 = tpu.matmul %137, %139, %cst_131 {dimension_numbers = #tpu.dot_dimension_numbers<[1], [0], [0], [1], [0, 0, 1, 1], [], []>} : vector<69x10xbf16>, vector<10x16xbf16>, vector<69x16xf32> -> vector<69x16xf32>
    %141 = arith.addf %135, %140 : vector<69x16xf32>
    %142 = vector.extract_strided_slice %94 {offsets = [34, 0], sizes = [69, 10], strides = [1, 1]} : vector<103x10xf32> to vector<69x10xf32>
    %143 = arith.truncf %142 : vector<69x10xf32> to vector<69x10xbf16>
    %c8_132 = arith.constant 8 : index
    %c0_133 = arith.constant 0 : index
    %c0_134 = arith.constant 0 : index
    %144 = vector.load %arg4[%c8_132, %c0_133, %c0_134] : memref<9x10x16xbf16, #tpu.memory_space<vmem>>, vector<1x10x16xbf16>
    %145 = vector.shape_cast %144 : vector<1x10x16xbf16> to vector<10x16xbf16>
    %cst_135 = arith.constant dense<0.000000e+00> : vector<69x16xf32>
    %146 = tpu.matmul %143, %145, %cst_135 {dimension_numbers = #tpu.dot_dimension_numbers<[1], [0], [0], [1], [0, 0, 1, 1], [], []>} : vector<69x10xbf16>, vector<10x16xbf16>, vector<69x16xf32> -> vector<69x16xf32>
    %147 = arith.addf %141, %146 : vector<69x16xf32>
    %c0_136 = arith.constant 0 : index
    %c0_137 = arith.constant 0 : index
    %148 = vector.load %arg5[%c0_136, %c0_137] : memref<1x16xf32, #tpu.memory_space<vmem>>, vector<1x16xf32>
    %149 = vector.broadcast %148 : vector<1x16xf32> to vector<69x16xf32>
    %150 = arith.addf %147, %149 : vector<69x16xf32>
    %cst_138 = arith.constant 0.000000e+00 : f32
    %151 = vector.broadcast %cst_138 : f32 to vector<69x16xf32>
    %152 = arith.maximumf %150, %151 : vector<69x16xf32>
    %153 = vector.extract_strided_slice %152 {offsets = [0, 0], sizes = [35, 16], strides = [1, 1]} : vector<69x16xf32> to vector<35x16xf32>
    %154 = arith.truncf %153 : vector<35x16xf32> to vector<35x16xbf16>
    %c0_139 = arith.constant 0 : index
    %c0_140 = arith.constant 0 : index
    %c0_141 = arith.constant 0 : index
    %155 = vector.load %arg6[%c0_139, %c0_140, %c0_141] : memref<9x16x5xbf16, #tpu.memory_space<vmem>>, vector<1x16x5xbf16>
    %156 = vector.shape_cast %155 : vector<1x16x5xbf16> to vector<16x5xbf16>
    %cst_142 = arith.constant dense<0.000000e+00> : vector<35x5xf32>
    %157 = tpu.matmul %154, %156, %cst_142 {dimension_numbers = #tpu.dot_dimension_numbers<[1], [0], [0], [1], [0, 0, 1, 1], [], []>} : vector<35x16xbf16>, vector<16x5xbf16>, vector<35x5xf32> -> vector<35x5xf32>
    %158 = vector.extract_strided_slice %152 {offsets = [1, 0], sizes = [35, 16], strides = [1, 1]} : vector<69x16xf32> to vector<35x16xf32>
    %159 = arith.truncf %158 : vector<35x16xf32> to vector<35x16xbf16>
    %c1_143 = arith.constant 1 : index
    %c0_144 = arith.constant 0 : index
    %c0_145 = arith.constant 0 : index
    %160 = vector.load %arg6[%c1_143, %c0_144, %c0_145] : memref<9x16x5xbf16, #tpu.memory_space<vmem>>, vector<1x16x5xbf16>
    %161 = vector.shape_cast %160 : vector<1x16x5xbf16> to vector<16x5xbf16>
    %cst_146 = arith.constant dense<0.000000e+00> : vector<35x5xf32>
    %162 = tpu.matmul %159, %161, %cst_146 {dimension_numbers = #tpu.dot_dimension_numbers<[1], [0], [0], [1], [0, 0, 1, 1], [], []>} : vector<35x16xbf16>, vector<16x5xbf16>, vector<35x5xf32> -> vector<35x5xf32>
    %163 = arith.addf %157, %162 : vector<35x5xf32>
    %164 = vector.extract_strided_slice %152 {offsets = [2, 0], sizes = [35, 16], strides = [1, 1]} : vector<69x16xf32> to vector<35x16xf32>
    %165 = arith.truncf %164 : vector<35x16xf32> to vector<35x16xbf16>
    %c2_147 = arith.constant 2 : index
    %c0_148 = arith.constant 0 : index
    %c0_149 = arith.constant 0 : index
    %166 = vector.load %arg6[%c2_147, %c0_148, %c0_149] : memref<9x16x5xbf16, #tpu.memory_space<vmem>>, vector<1x16x5xbf16>
    %167 = vector.shape_cast %166 : vector<1x16x5xbf16> to vector<16x5xbf16>
    %cst_150 = arith.constant dense<0.000000e+00> : vector<35x5xf32>
    %168 = tpu.matmul %165, %167, %cst_150 {dimension_numbers = #tpu.dot_dimension_numbers<[1], [0], [0], [1], [0, 0, 1, 1], [], []>} : vector<35x16xbf16>, vector<16x5xbf16>, vector<35x5xf32> -> vector<35x5xf32>
    %169 = arith.addf %163, %168 : vector<35x5xf32>
    %170 = vector.extract_strided_slice %152 {offsets = [16, 0], sizes = [35, 16], strides = [1, 1]} : vector<69x16xf32> to vector<35x16xf32>
    %171 = arith.truncf %170 : vector<35x16xf32> to vector<35x16xbf16>
    %c3_151 = arith.constant 3 : index
    %c0_152 = arith.constant 0 : index
    %c0_153 = arith.constant 0 : index
    %172 = vector.load %arg6[%c3_151, %c0_152, %c0_153] : memref<9x16x5xbf16, #tpu.memory_space<vmem>>, vector<1x16x5xbf16>
    %173 = vector.shape_cast %172 : vector<1x16x5xbf16> to vector<16x5xbf16>
    %cst_154 = arith.constant dense<0.000000e+00> : vector<35x5xf32>
    %174 = tpu.matmul %171, %173, %cst_154 {dimension_numbers = #tpu.dot_dimension_numbers<[1], [0], [0], [1], [0, 0, 1, 1], [], []>} : vector<35x16xbf16>, vector<16x5xbf16>, vector<35x5xf32> -> vector<35x5xf32>
    %175 = arith.addf %169, %174 : vector<35x5xf32>
    %176 = vector.extract_strided_slice %152 {offsets = [17, 0], sizes = [35, 16], strides = [1, 1]} : vector<69x16xf32> to vector<35x16xf32>
    %177 = arith.truncf %176 : vector<35x16xf32> to vector<35x16xbf16>
    %c4_155 = arith.constant 4 : index
    %c0_156 = arith.constant 0 : index
    %c0_157 = arith.constant 0 : index
    %178 = vector.load %arg6[%c4_155, %c0_156, %c0_157] : memref<9x16x5xbf16, #tpu.memory_space<vmem>>, vector<1x16x5xbf16>
    %179 = vector.shape_cast %178 : vector<1x16x5xbf16> to vector<16x5xbf16>
    %cst_158 = arith.constant dense<0.000000e+00> : vector<35x5xf32>
    %180 = tpu.matmul %177, %179, %cst_158 {dimension_numbers = #tpu.dot_dimension_numbers<[1], [0], [0], [1], [0, 0, 1, 1], [], []>} : vector<35x16xbf16>, vector<16x5xbf16>, vector<35x5xf32> -> vector<35x5xf32>
    %181 = arith.addf %175, %180 : vector<35x5xf32>
    %182 = vector.extract_strided_slice %152 {offsets = [18, 0], sizes = [35, 16], strides = [1, 1]} : vector<69x16xf32> to vector<35x16xf32>
    %183 = arith.truncf %182 : vector<35x16xf32> to vector<35x16xbf16>
    %c5_159 = arith.constant 5 : index
    %c0_160 = arith.constant 0 : index
    %c0_161 = arith.constant 0 : index
    %184 = vector.load %arg6[%c5_159, %c0_160, %c0_161] : memref<9x16x5xbf16, #tpu.memory_space<vmem>>, vector<1x16x5xbf16>
    %185 = vector.shape_cast %184 : vector<1x16x5xbf16> to vector<16x5xbf16>
    %cst_162 = arith.constant dense<0.000000e+00> : vector<35x5xf32>
    %186 = tpu.matmul %183, %185, %cst_162 {dimension_numbers = #tpu.dot_dimension_numbers<[1], [0], [0], [1], [0, 0, 1, 1], [], []>} : vector<35x16xbf16>, vector<16x5xbf16>, vector<35x5xf32> -> vector<35x5xf32>
    %187 = arith.addf %181, %186 : vector<35x5xf32>
    %188 = vector.extract_strided_slice %152 {offsets = [32, 0], sizes = [35, 16], strides = [1, 1]} : vector<69x16xf32> to vector<35x16xf32>
    %189 = arith.truncf %188 : vector<35x16xf32> to vector<35x16xbf16>
    %c6_163 = arith.constant 6 : index
    %c0_164 = arith.constant 0 : index
    %c0_165 = arith.constant 0 : index
    %190 = vector.load %arg6[%c6_163, %c0_164, %c0_165] : memref<9x16x5xbf16, #tpu.memory_space<vmem>>, vector<1x16x5xbf16>
    %191 = vector.shape_cast %190 : vector<1x16x5xbf16> to vector<16x5xbf16>
    %cst_166 = arith.constant dense<0.000000e+00> : vector<35x5xf32>
    %192 = tpu.matmul %189, %191, %cst_166 {dimension_numbers = #tpu.dot_dimension_numbers<[1], [0], [0], [1], [0, 0, 1, 1], [], []>} : vector<35x16xbf16>, vector<16x5xbf16>, vector<35x5xf32> -> vector<35x5xf32>
    %193 = arith.addf %187, %192 : vector<35x5xf32>
    %194 = vector.extract_strided_slice %152 {offsets = [33, 0], sizes = [35, 16], strides = [1, 1]} : vector<69x16xf32> to vector<35x16xf32>
    %195 = arith.truncf %194 : vector<35x16xf32> to vector<35x16xbf16>
    %c7_167 = arith.constant 7 : index
    %c0_168 = arith.constant 0 : index
    %c0_169 = arith.constant 0 : index
    %196 = vector.load %arg6[%c7_167, %c0_168, %c0_169] : memref<9x16x5xbf16, #tpu.memory_space<vmem>>, vector<1x16x5xbf16>
    %197 = vector.shape_cast %196 : vector<1x16x5xbf16> to vector<16x5xbf16>
    %cst_170 = arith.constant dense<0.000000e+00> : vector<35x5xf32>
    %198 = tpu.matmul %195, %197, %cst_170 {dimension_numbers = #tpu.dot_dimension_numbers<[1], [0], [0], [1], [0, 0, 1, 1], [], []>} : vector<35x16xbf16>, vector<16x5xbf16>, vector<35x5xf32> -> vector<35x5xf32>
    %199 = arith.addf %193, %198 : vector<35x5xf32>
    %200 = vector.extract_strided_slice %152 {offsets = [34, 0], sizes = [35, 16], strides = [1, 1]} : vector<69x16xf32> to vector<35x16xf32>
    %201 = arith.truncf %200 : vector<35x16xf32> to vector<35x16xbf16>
    %c8_171 = arith.constant 8 : index
    %c0_172 = arith.constant 0 : index
    %c0_173 = arith.constant 0 : index
    %202 = vector.load %arg6[%c8_171, %c0_172, %c0_173] : memref<9x16x5xbf16, #tpu.memory_space<vmem>>, vector<1x16x5xbf16>
    %203 = vector.shape_cast %202 : vector<1x16x5xbf16> to vector<16x5xbf16>
    %cst_174 = arith.constant dense<0.000000e+00> : vector<35x5xf32>
    %204 = tpu.matmul %201, %203, %cst_174 {dimension_numbers = #tpu.dot_dimension_numbers<[1], [0], [0], [1], [0, 0, 1, 1], [], []>} : vector<35x16xbf16>, vector<16x5xbf16>, vector<35x5xf32> -> vector<35x5xf32>
    %205 = arith.addf %199, %204 : vector<35x5xf32>
    %c0_175 = arith.constant 0 : index
    %c0_176 = arith.constant 0 : index
    %206 = vector.load %arg7[%c0_175, %c0_176] : memref<1x5xf32, #tpu.memory_space<vmem>>, vector<1x5xf32>
    %207 = vector.broadcast %206 : vector<1x5xf32> to vector<35x5xf32>
    %208 = arith.addf %205, %207 : vector<35x5xf32>
    %cst_177 = arith.constant 0.000000e+00 : f32
    %209 = vector.broadcast %cst_177 : f32 to vector<35x5xf32>
    %210 = arith.subf %209, %208 : vector<35x5xf32>
    %211 = math.exp %210 : vector<35x5xf32>
    %cst_178 = arith.constant 1.000000e+00 : f32
    %212 = vector.broadcast %cst_178 : f32 to vector<35x5xf32>
    %213 = arith.addf %212, %211 : vector<35x5xf32>
    %214 = tpu.reciprocal %213 {approx = true} : vector<35x5xf32> -> vector<35x5xf32>
    %215 = tpu.iota {dimensions = array<i32: 1>} : vector<35x5xi32>
    %c0_i32 = arith.constant 0 : i32
    %216 = vector.broadcast %c0_i32 : i32 to vector<35x5xi32>
    %217 = arith.cmpi eq, %215, %216 : vector<35x5xi32>
    %218 = arith.select %217, %214, %208 : vector<35x5xi1>, vector<35x5xf32>
    %c0_179 = arith.constant 0 : index
    %c0_180 = arith.constant 0 : index
    %c0_181 = arith.constant 0 : index
    %219 = vector.load %arg8[%c0_179, %c0_180, %c0_181] : memref<1x35x5xf32, #tpu.memory_space<vmem>>, vector<1x35x5xf32>
    %220 = vector.shape_cast %219 : vector<1x35x5xf32> to vector<35x5xf32>
    %221 = vector.shape_cast %218 : vector<35x5xf32> to vector<1x35x5xf32>
    tpu.vector_store %arg8[%c0_179, %c0_180, %c0_181], %221 {strides = array<i32>} : memref<1x35x5xf32, #tpu.memory_space<vmem>>, vector<1x35x5xf32>,
    return
  }
  func.func @transform_0(%arg0: i32) -> (i32, i32, i32) {
    %c0_i32 = arith.constant 0 : i32
    %c0_i32_0 = arith.constant 0 : i32
    %c0_i32_1 = arith.constant 0 : i32
    return %arg0, %c0_i32, %c0_i32_0 : i32, i32, i32
  }
  func.func @transform_1(%arg0: i32) -> (i32, i32, i32) {
    %c0_i32 = arith.constant 0 : i32
    %c0_i32_0 = arith.constant 0 : i32
    %c0_i32_1 = arith.constant 0 : i32
    %c0_i32_2 = arith.constant 0 : i32
    return %c0_i32, %c0_i32_0, %c0_i32_1 : i32, i32, i32
  }
  func.func @transform_2(%arg0: i32) -> (i32, i32) {
    %c0_i32 = arith.constant 0 : i32
    %c0_i32_0 = arith.constant 0 : i32
    %c0_i32_1 = arith.constant 0 : i32
    return %c0_i32, %c0_i32_0 : i32, i32
  }
  func.func @transform_3(%arg0: i32) -> (i32, i32, i32) {
    %c0_i32 = arith.constant 0 : i32
    %c0_i32_0 = arith.constant 0 : i32
    %c0_i32_1 = arith.constant 0 : i32
    %c0_i32_2 = arith.constant 0 : i32
    return %c0_i32, %c0_i32_0, %c0_i32_1 : i32, i32, i32
  }
  func.func @transform_4(%arg0: i32) -> (i32, i32) {
    %c0_i32 = arith.constant 0 : i32
    %c0_i32_0 = arith.constant 0 : i32
    %c0_i32_1 = arith.constant 0 : i32
    return %c0_i32, %c0_i32_0 : i32, i32
  }
  func.func @transform_5(%arg0: i32) -> (i32, i32, i32) {
    %c0_i32 = arith.constant 0 : i32
    %c0_i32_0 = arith.constant 0 : i32
    %c0_i32_1 = arith.constant 0 : i32
    %c0_i32_2 = arith.constant 0 : i32
    return %c0_i32, %c0_i32_0, %c0_i32_1 : i32, i32, i32
  }
  func.func @transform_6(%arg0: i32) -> (i32, i32) {
    %c0_i32 = arith.constant 0 : i32
    %c0_i32_0 = arith.constant 0 : i32
    %c0_i32_1 = arith.constant 0 : i32
    return %c0_i32, %c0_i32_0 : i32, i32
  }
  func.func @transform_7(%arg0: i32) -> (i32, i32, i32) {
    %c0_i32 = arith.constant 0 : i32
    %c0_i32_0 = arith.constant 0 : i32
    %c0_i32_1 = arith.constant 0 : i32
    return %arg0, %c0_i32, %c0_i32_0 : i32, i32, i32
  }
}

</mosaic_0001>

<bundles_post_ra>
// kernel: squeeze.0
= control target key start
LH: loop header
LB: loop body
LE: loop exit
PB: predicated region body
PF: predicated region fallthrough
CT: control target
= control target key end

     0   :  { %s122_s0 = inlined_call_operand.vmem [shape: f32[2,9,1], index: 0, kind: input, shape index: {}]   ;;  %s123_s1 = inlined_call_operand.hbm [shape: f32[2,1,3,3], index: 1, kind: output, shape index: {}]  }
   0x1   :  { %v5_v0 = vld [vmem:[%s122_s0] sm:$0x3] }
   0x2   :  { %6 = vst [vmem:[#allocation3] sm:$0x3] %v5_v0 }
   0x3   :  { %2 = vsyncpa [#allocation1], 0  ;;  %s11_s0 = smov 3  ;;  %s103_s8 = smov 125   ;;  %vm8_vm0 = vcmask 23552  }
   0x4   :  { %s19_s9 = smov 3  ;;  %s104_s10 = smov 122  }
   0x5   :  { %s105_s11 = smov [#allocation0]   ;;  %s67_s1 = sshll.u32 %s123_s1, 4  ;;  %s68_s1 = int_to_ptr.hbm [resolvable:$true] %s67_s1 }
   0x6   :  { %s65_s12 = sshll.u32 %s105_s11, 4  ;;  %s66_s12 = int_to_ptr.vmem [resolvable:$true] %s65_s12 }
   0x9   :  { %v12_v1 = vld [vmem:[#allocation3 + $0x1] ss:$-1 sm:%s11_s0]  }
   0xa   :  { %13 = vrot.lane.b32.xlu0 %v12_v1, %s103_s8  ;;  %v20_v2 = vld [vmem:[#allocation3 + $0x1] ss:$-1 sm:%s19_s9]  }
   0xb   :  { %v7_v3 = vld [vmem:[#allocation3] sm:$0x3]  }
   0xc   :  { %9 = vst.msk [vmem:[#allocation2] ss:$24 sm:$0x3] %vm8_vm0, %v7_v3  }
  0x12   :  { %21 = vrot.lane.b32.xlu0 %v20_v2, %s104_s10 }
  0x13   :  { %v28_v4 = vld [vmem:[#allocation2] sm:$0x1]  ;;  %v45_v5 = vld [vmem:[#allocation2 + $0x18] sm:$0x1] }
  0x14   :  { %31 = vst [vmem:[#allocation0] sm:$0x1] %v28_v4 }
  0x15   :  { %49 = vst [vmem:[#allocation0 + $0x3] sm:$0x1] %v45_v5 }
  0x7c   :  { %v14_v6 = vpop.permute.xlu0 %13  }
  0x7d   :  { %17 = vst.msk [vmem:[#allocation2 + $0x20] ss:$-24 sm:$0x3] %vm8_vm0, %v14_v6  }
  0x84   :  { %v33_v7 = vld [vmem:[#allocation2 + $0x8] sm:$0x1]  ;;  %v51_v8 = vld [vmem:[#allocation2 + $0x20] sm:$0x1]  ;;  %v22_v9 = vpop.permute.xlu0 %21  }
  0x85   :  { %37 = vst [vmem:[#allocation0 + $0x1] sm:$0x1] %v33_v7 }
  0x86   :  { %55 = vst [vmem:[#allocation0 + $0x4] sm:$0x1] %v51_v8 }
  0x87   :  { %25 = vst.msk [vmem:[#allocation2 + $0x28] ss:$-24 sm:$0x3] %vm8_vm0, %v22_v9  }
  0x8e   :  { %v39_v10 = vld [vmem:[#allocation2 + $0x10] sm:$0x1]  ;;  %v57_v11 = vld [vmem:[#allocation2 + $0x28] sm:$0x1] }
  0x8f   :  { %43 = vst [vmem:[#allocation0 + $0x2] sm:$0x1] %v39_v10 }
  0x90   :  { %61 = vst [vmem:[#allocation0 + $0x5] sm:$0x1] %v57_v11 }
  0x91   :  { %70 = dma.vmem_to_hbm [thread:$0]  %s66_s12, 96, %s68_s1, [#allocation1]  }
  0x92   :  { %101 = dma.done.wait [#allocation1], 96  }
  0x93   :  { %102 = vsyncadd [#allocation1], 4294967200 }
  0x94   :  { %73 = vsyncpa [#allocation1], 1 }

// kernel: pnet_forward.1
= control target key start
LH: loop header
LB: loop body
LE: loop exit
PB: predicated region body
PF: predicated region fallthrough
CT: control target
= control target key end

     0   :  { %s4451_s24 = smov 0   ;;  %s5818_s0 = inlined_call_operand.vmem [shape: f32[2,256,3], index: 0, kind: input, shape index: {}]   ;;  %s5819_s1 = inlined_call_operand.vmem [shape: bf16[9,3,10], index: 1, kind: input, shape index: {}]   ;;  %s5820_s2 = inlined_call_operand.vmem [shape: f32[1,10], index: 2, kind: input, shape index: {}]   ;;  %s5821_s3 = inlined_call_operand.vmem [shape: bf16[9,10,16], index: 3, kind: input, shape index: {}]   ;;  %s5822_s4 = inlined_call_operand.vmem [shape: f32[1,16], index: 4, kind: input, shape index: {}]   ;;  %s5823_s5 = inlined_call_operand.vmem [shape: bf16[9,16,5], index: 5, kind: input, shape index: {}]   ;;  %s5824_s6 = inlined_call_operand.vmem [shape: f32[1,5], index: 6, kind: input, shape index: {}]   ;;  %s5825_s7 = inlined_call_operand.vmem [shape: f32[2,35,5], index: 7, kind: output, shape index: {}]  }
   0x1 LB: > { %s4029_s25 = sadd.s32 4294967295, %s4408_s24   ;;  %p4033_p0 = scmp.ge.s32.totalorder %s4408_s24, 1  ;;  %s4408_s24 = sphi %s4451_s24, %s17_s24  }
   0x2   : > { %p237_p1 = scmp.lt.s32.totalorder %s4408_s24, 3 }
   0x4   : > { %p238_p2 = pnand %p4033_p0, %p237_p1 }
   0x5   : > { %p269_p3 = scmp.lt.s32.totalorder (!%p238_p2), %s4029_s25, 1 }
   0x6   : > { %241 = sbr.rel (%p238_p2) target bundleno = 1338 (0x53a), region = 48 }
   0xb   : > { %v322_v0 = vld [vmem:[%s5819_s1] sm:$0x3]  ;;  %vm366_vm0 = vcmask 1040384   ;;  %vm367_vm1 = vcmask 1041408   ;;  %v4410_v1 = vmov 65535   ;;  %s5827_s25 = smov (!%p269_p3, %s4029_s25), 1 }
   0xc   : > { %v368_v2 = vsel %vm366_vm0, 4294967295, %v4410_v1  ;;  %v4096_v3 = vld [vmem:[%s5819_s1 + $0x8] sm:$0x3]  ;;  %v4051_v4 = vld [vmem:[%s5819_s1 + $0x2] sm:$0x3]  ;;  %s4349_s13 = sshll.u32 %s5827_s25, 8 }
   0xd   : > { %v4468_v5 = vsel %vm367_vm1, %v368_v2, 0  ;;  %v4066_v6 = vld [vmem:[%s5819_s1 + $0x4] sm:$0x3]  ;;  %v4081_v7 = vld [vmem:[%s5819_s1 + $0x6] sm:$0x3]  ;;  %s4487_s16 = scalar_lea.vmem %s5818_s0, %s4349_s13  ;;  %vm323_vm2 = vcmask 23552  }
   0xe   : > { %v371_v8 = vand.u32 %v4468_v5, %v322_v0  ;;  %v1325_v9 = vand.u32 %v4096_v3, %v4468_v5  ;;  %v569_v10 = vand.u32 %v4051_v4, %v4468_v5  ;;  %v821_v11 = vand.u32 %v4066_v6, %v4468_v5  ;;  %v280_v13 = vld [vmem:[%s4487_s16] sm:$0xff]  ;;  %v281_v14 = vld [vmem:[%s4487_s16 + $0x8] sm:$0xff]  ;;  %v4492_v15 = vld [vmem:[%s4487_s16 + $0xd0] sm:$0xff]  ;;  %s4369_s22 = smul.u32 40, %s5827_s25 }
   0xf   : > { %v1073_v12 = vand.u32 %v4081_v7, %v4468_v5  ;;  %v308_v16 = vpack.c.bf16 %v281_v14, %v280_v13  ;;  %v307_v17 = vld [vmem:[%s4487_s16 + $0xd8] sm:$0x3f]  ;;  %v282_v18 = vld [vmem:[%s4487_s16 + $0x10] sm:$0xff]  ;;  %v734_v22 = vld [vmem:[%s4487_s16 + $0x2] sm:$0xff]  ;;  %vm452_vm3 = vcmask 80896   ;;  %vm480_vm4 = vcmask 78848  }
  0x10   : > { %380 = vmatpush.bf16.msra.mxu0 %v371_v8  ;;  %4368 = vmatpush.bf16.msra.mxu1 %v371_v8  ;;  %v283_v19 = vld [vmem:[%s4487_s16 + $0x18] sm:$0xff]  ;;  %v321_v20 = vpack.c.bf16 %v307_v17, %v4492_v15  ;;  %v735_v23 = vld [vmem:[%s4487_s16 + $0xa] sm:$0xff]  ;;  %v482_v25 = vld [vmem:[%s4487_s16 + $0x1] sm:$0xff]  ;;  %vm2849_vm5 = vcmask 1044480   ;;  %vm2945_vm6 = vcmask 1046528   ;;  %vm2752_vm8 = vcmask 77824   ;;  %s5798_s27 = scalar_lea.vmem %s5825_s7, %s4369_s22 }
  0x11   : > { %830 = vmatpush.bf16.msra.mxu2 %v821_v11  ;;  %1082 = vmatpush.bf16.msra.mxu3 %v1073_v12  ;;  %v309_v21 = vpack.c.bf16 %v283_v19, %v282_v18  ;;  %v762_v24 = vpack.c.bf16 %v735_v23, %v734_v22  ;;  %v483_v26 = vld [vmem:[%s4487_s16 + $0x9] sm:$0xff]  ;;  %v284_v27 = vld [vmem:[%s4487_s16 + $0x20] sm:$0xff]  ;;  %v736_v29 = vld [vmem:[%s4487_s16 + $0x12] sm:$0xff]  ;;  %vm2789_vm7 = vsmask.f32 7424  ;;  %vm3489_vm9 = vcmask 130048  }
  0x12   : > { %v285_v28 = vld [vmem:[%s4487_s16 + $0x28] sm:$0xff]  ;;  %v737_v30 = vld [vmem:[%s4487_s16 + $0x1a] sm:$0xff]  ;;  %v510_v31 = vpack.c.bf16 %v483_v26, %v482_v25  ;;  %v484_v34 = vld [vmem:[%s4487_s16 + $0x11] sm:$0xff]  ;;  %vm3967_vm11 = vcmask 39936   ;;  %vm3972_vm12 = vcmask 34816  }
  0x13   : > { %4037 = vmatmul.msk.bf16.vlgmr.msra.gmra.mxu0 %vm323_vm2, %v308_v16  ;;  %4050 = vmatmul.msk.bf16.vlgmr.msra.gmra.mxu1 %vm323_vm2, %v321_v20  ;;  %v4510_v32 = vpack.c.bf16 %v285_v28, %v284_v27  ;;  %v4512_v33 = vpack.c.bf16 %v737_v30, %v736_v29  ;;  %v485_v35 = vld [vmem:[%s4487_s16 + $0x19] sm:$0xff]  ;;  %v286_v36 = vld [vmem:[%s4487_s16 + $0x30] sm:$0xff]  ;;  %v738_v38 = vld [vmem:[%s4487_s16 + $0x22] sm:$0xff] }
  0x14   : > { %1334 = vmatpush.bf16.msrb.mxu0 %v1325_v9  ;;  %578 = vmatpush.bf16.msrb.mxu1 %v569_v10  ;;  %v287_v37 = vld [vmem:[%s4487_s16 + $0x38] sm:$0xff]  ;;  %v739_v39 = vld [vmem:[%s4487_s16 + $0x2a] sm:$0xff]  ;;  %v4526_v40 = vpack.c.bf16 %v485_v35, %v484_v34  ;;  %v486_v43 = vld [vmem:[%s4487_s16 + $0x21] sm:$0xff] }
  0x15   : > { %4082 = vmatmul.msk.bf16.vlgmr.msra.gmra.mxu3 %vm323_vm2, %v309_v21  ;;  %4067 = vmatmul.msk.bf16.vlgmr.msra.gmra.mxu2 %vm323_vm2, %v762_v24  ;;  %v4528_v41 = vpack.c.bf16 %v287_v37, %v286_v36  ;;  %v4530_v42 = vpack.c.bf16 %v739_v39, %v738_v38  ;;  %v487_v44 = vld [vmem:[%s4487_s16 + $0x29] sm:$0xff]  ;;  %v288_v45 = vld [vmem:[%s4487_s16 + $0x40] sm:$0xff]  ;;  %v740_v47 = vld [vmem:[%s4487_s16 + $0x32] sm:$0xff] }
  0x16   : > { %v289_v46 = vld [vmem:[%s4487_s16 + $0x48] sm:$0xff]  ;;  %v741_v48 = vld [vmem:[%s4487_s16 + $0x3a] sm:$0xff]  ;;  %v4546_v49 = vpack.c.bf16 %v487_v44, %v486_v43  ;;  %v488_v52 = vld [vmem:[%s4487_s16 + $0x31] sm:$0xff] }
  0x17   : > { %v4548_v50 = vpack.c.bf16 %v289_v46, %v288_v45  ;;  %v4550_v51 = vpack.c.bf16 %v741_v48, %v740_v47  ;;  %v489_v53 = vld [vmem:[%s4487_s16 + $0x39] sm:$0xff]  ;;  %v290_v54 = vld [vmem:[%s4487_s16 + $0x50] sm:$0xff]  ;;  %v742_v56 = vld [vmem:[%s4487_s16 + $0x42] sm:$0xff] }
  0x18   : > { %v291_v55 = vld [vmem:[%s4487_s16 + $0x58] sm:$0xff]  ;;  %v743_v57 = vld [vmem:[%s4487_s16 + $0x4a] sm:$0xff]  ;;  %v4566_v58 = vpack.c.bf16 %v489_v53, %v488_v52  ;;  %v490_v61 = vld [vmem:[%s4487_s16 + $0x41] sm:$0xff] }
  0x19   : > { %v4568_v59 = vpack.c.bf16 %v291_v55, %v290_v54  ;;  %v4570_v60 = vpack.c.bf16 %v743_v57, %v742_v56  ;;  %v491_v62 = vld [vmem:[%s4487_s16 + $0x49] sm:$0xff]  ;;  %v292_v63 = vld [vmem:[%s4487_s16 + $0x60] sm:$0xff]  ;;  %v744_v1 = vld [vmem:[%s4487_s16 + $0x52] sm:$0xff] }
  0x1a   : > { %v293_v0 = vld [vmem:[%s4487_s16 + $0x68] sm:$0xff]  ;;  %v745_v2 = vld [vmem:[%s4487_s16 + $0x5a] sm:$0xff]  ;;  %v4586_v3 = vpack.c.bf16 %v491_v62, %v490_v61  ;;  %v492_v7 = vld [vmem:[%s4487_s16 + $0x51] sm:$0xff] }
  0x1b   : > { %v314_v4 = vpack.c.bf16 %v293_v0, %v292_v63  ;;  %v4588_v6 = vpack.c.bf16 %v745_v2, %v744_v1  ;;  %v493_v8 = vld [vmem:[%s4487_s16 + $0x59] sm:$0xff]  ;;  %v294_v9 = vld [vmem:[%s4487_s16 + $0x70] sm:$0xff]  ;;  %v746_v11 = vld [vmem:[%s4487_s16 + $0x62] sm:$0xff] }
  0x1c   : > { %v295_v10 = vld [vmem:[%s4487_s16 + $0x78] sm:$0xff]  ;;  %v747_v12 = vld [vmem:[%s4487_s16 + $0x6a] sm:$0xff]  ;;  %v4603_v13 = vpack.c.bf16 %v493_v8, %v492_v7  ;;  %v494_v17 = vld [vmem:[%s4487_s16 + $0x61] sm:$0xff] }
  0x1d   : > { %v315_v14 = vpack.c.bf16 %v295_v10, %v294_v9  ;;  %v768_v16 = vpack.c.bf16 %v747_v12, %v746_v11  ;;  %v495_v18 = vld [vmem:[%s4487_s16 + $0x69] sm:$0xff]  ;;  %v296_v19 = vld [vmem:[%s4487_s16 + $0x80] sm:$0xff]  ;;  %v496_v26 = vld [vmem:[%s4487_s16 + $0x71] sm:$0xff] }
  0x1e   : > { %v297_v20 = vld [vmem:[%s4487_s16 + $0x88] sm:$0xff]  ;;  %v749_v22 = vld [vmem:[%s4487_s16 + $0x7a] sm:$0xff]  ;;  %v4616_v23 = vpack.c.bf16 %v495_v18, %v494_v17  ;;  %v298_v28 = vld [vmem:[%s4487_s16 + $0x90] sm:$0xff] }
  0x1f   : > { %v316_v24 = vpack.c.bf16 %v297_v20, %v296_v19  ;;  %v497_v27 = vld [vmem:[%s4487_s16 + $0x79] sm:$0xff]  ;;  %v750_v30 = vld [vmem:[%s4487_s16 + $0x82] sm:$0xff]  ;;  %v4111_v8 = vld [vmem:[%s5819_s1 + $0xa] sm:$0x3] }
  0x20   : > { %v299_v29 = vld [vmem:[%s4487_s16 + $0x98] sm:$0xff]  ;;  %v4629_v35 = vpack.c.bf16 %v497_v27, %v496_v26  ;;  %v498_v46 = vld [vmem:[%s4487_s16 + $0x81] sm:$0xff]  ;;  %v499_v47 = vld [vmem:[%s4487_s16 + $0x89] sm:$0xff]  ;;  %v1577_v12 = vand.u32 %v4111_v8, %v4468_v5 }
  0x21   : > { %v317_v37 = vpack.c.bf16 %v299_v29, %v298_v28  ;;  %v300_v48 = vld [vmem:[%s4487_s16 + $0xa0] sm:$0xff]  ;;  %v301_v52 = vld [vmem:[%s4487_s16 + $0xa8] sm:$0xff]  ;;  %v752_v53 = vld [vmem:[%s4487_s16 + $0x92] sm:$0xff]  ;;  %v4650_v57 = vpack.c.bf16 %v499_v47, %v498_v46 }
  0x22   : > { %v753_v54 = vld [vmem:[%s4487_s16 + $0x9a] sm:$0xff]  ;;  %v318_v1 = vpack.c.bf16 %v301_v52, %v300_v48  ;;  %1586 = vmatpush.bf16.msra.mxu1 %v1577_v12  ;;  %v4126_v18 = vld [vmem:[%s5819_s1 + $0xc] sm:$0x3]  ;;  %v500_v19 = vld [vmem:[%s4487_s16 + $0x91] sm:$0xff] }
  0x23   : > { %4038 = vmatmul.msk.bf16.gmra.mxu0 %vm323_vm2, %v309_v21  ;;  %4052 = vmatmul.msk.bf16.vlgmr.msrb.gmra.mxu1 %vm323_vm2, %v510_v31  ;;  %v748_v21 = vld [vmem:[%s4487_s16 + $0x72] sm:$0xff]  ;;  %v751_v31 = vld [vmem:[%s4487_s16 + $0x8a] sm:$0xff]  ;;  %v771_v2 = vpack.c.bf16 %v753_v54, %v752_v53  ;;  %v304_v8 = vld [vmem:[%s4487_s16 + $0xc0] sm:$0xff] }
  0x24   : > { %v769_v25 = vpack.c.bf16 %v749_v22, %v748_v21  ;;  %v770_v38 = vpack.c.bf16 %v751_v31, %v750_v30  ;;  %v501_v20 = vld [vmem:[%s4487_s16 + $0x99] sm:$0xff]  ;;  %v1829_v21 = vand.u32 %v4126_v18, %v4468_v5  ;;  %v302_v22 = vld [vmem:[%s4487_s16 + $0xb0] sm:$0xff]  ;;  %v4141_v47 = vld [vmem:[%s5819_s1 + $0xe] sm:$0x3] }
  0x25   : > { %4083 = vmatmul.msk.bf16.gmra.mxu3 %vm323_vm2, %v4510_v32  ;;  %4068 = vmatmul.msk.bf16.gmra.mxu2 %vm323_vm2, %v4512_v33  ;;  %v755_v26 = vld [vmem:[%s4487_s16 + $0xaa] sm:$0xff]  ;;  %v4680_v29 = vpack.c.bf16 %v501_v20, %v500_v19  ;;  %v2081_v48 = vand.u32 %v4141_v47, %v4468_v5  ;;  %v757_v12 = vld [vmem:[%s4487_s16 + $0xba] sm:$0xff] }
  0x26   : > { %1838 = vmatpush.bf16.msrb.mxu2 %v1829_v21 }
  0x27   : > { %2090 = vmatpush.bf16.msrb.mxu3 %v2081_v48  ;;  %v758_v48 = vld [vmem:[%s4487_s16 + $0xc2] sm:$0xff] }
  0x33   : > { %4039 = vmatmul.msk.bf16.gmra.mxu0 %vm323_vm2, %v4510_v32  ;;  %4053 = vmatmul.msk.bf16.gmra.mxu1 %vm323_vm2, %v4526_v40 }
  0x35   : > { %4084 = vmatmul.msk.bf16.gmra.mxu3 %vm323_vm2, %v4528_v41  ;;  %4069 = vmatmul.msk.bf16.gmra.mxu2 %vm323_vm2, %v4530_v42 }
  0x43   : > { %4040 = vmatmul.msk.bf16.gmra.mxu0 %vm323_vm2, %v4528_v41  ;;  %4054 = vmatmul.msk.bf16.gmra.mxu1 %vm323_vm2, %v4546_v49 }
  0x45   : > { %4085 = vmatmul.msk.bf16.gmra.mxu3 %vm323_vm2, %v4548_v50  ;;  %4070 = vmatmul.msk.bf16.gmra.mxu2 %vm323_vm2, %v4550_v51 }
  0x53   : > { %4041 = vmatmul.msk.bf16.gmra.mxu0 %vm323_vm2, %v4548_v50  ;;  %4055 = vmatmul.msk.bf16.gmra.mxu1 %vm323_vm2, %v4566_v58 }
  0x55   : > { %4086 = vmatmul.msk.bf16.gmra.mxu3 %vm323_vm2, %v4568_v59  ;;  %4071 = vmatmul.msk.bf16.gmra.mxu2 %vm323_vm2, %v4570_v60 }
  0x63   : > { %4042 = vmatmul.msk.bf16.gmra.mxu0 %vm323_vm2, %v4568_v59  ;;  %4056 = vmatmul.msk.bf16.gmra.mxu1 %vm323_vm2, %v4586_v3 }
  0x65   : > { %4087 = vmatmul.msk.bf16.gmra.mxu3 %vm323_vm2, %v314_v4  ;;  %4072 = vmatmul.msk.bf16.gmra.mxu2 %vm323_vm2, %v4588_v6 }
  0x73   : > { %4043 = vmatmul.msk.bf16.gmra.mxu0 %vm323_vm2, %v314_v4  ;;  %4057 = vmatmul.msk.bf16.gmra.mxu1 %vm323_vm2, %v4603_v13 }
  0x75   : > { %4088 = vmatmul.msk.bf16.gmra.mxu3 %vm323_vm2, %v315_v14  ;;  %4073 = vmatmul.msk.bf16.gmra.mxu2 %vm323_vm2, %v768_v16 }
  0x83   : > { %4044 = vmatmul.msk.bf16.gmra.mxu0 %vm323_vm2, %v315_v14  ;;  %4058 = vmatmul.msk.bf16.gmra.mxu1 %vm323_vm2, %v4616_v23 }
  0x85   : > { %4089 = vmatmul.msk.bf16.gmra.mxu3 %vm323_vm2, %v316_v24  ;;  %4074 = vmatmul.msk.bf16.gmra.mxu2 %vm323_vm2, %v769_v25  ;;  %v754_v25 = vld [vmem:[%s4487_s16 + $0xa2] sm:$0xff] }
  0x90   : > { %v382_v34 = vpop.f32.mrf.mxu0  ;;  %v447_v36 = vpop.f32.mrf.mxu1 }
  0x91   : > { %453 = vst.msk [vmem:[#allocation2] sm:$0xff] %vm452_vm3, %v382_v34 }
  0x92   : > { %479 = vst.msk [vmem:[#allocation2 + $0xd0] sm:$0xff] %vm452_vm3, %v447_v36 }
  0x93   : > { %4045 = vmatmul.msk.bf16.gmra.mxu0 %vm323_vm2, %v316_v24  ;;  %4059 = vmatmul.msk.bf16.gmra.mxu1 %vm323_vm2, %v4629_v35  ;;  %v303_v24 = vld [vmem:[%s4487_s16 + $0xb8] sm:$0xff] }
  0x95   : > { %4090 = vmatmul.msk.bf16.gmra.mxu3 %vm323_vm2, %v317_v37  ;;  %4075 = vmatmul.msk.bf16.gmra.mxu2 %vm323_vm2, %v770_v38  ;;  %v772_v38 = vpack.c.bf16 %v755_v26, %v754_v25 }
  0x98   : > { %v4638_v39 = vpop.f32.mrf.mxu3  ;;  %v384_v43 = vpop.f32.mrf.mxu0  ;;  %v650_v62 = vld [vmem:[#allocation2] sm:$0xff] }
  0x99   : > { %454 = vst.msk [vmem:[#allocation2 + $0x8] sm:$0xff] %vm452_vm3, %v384_v43  ;;  %v449_v44 = vpop.f32.mrf.mxu1  ;;  %v832_v45 = vpop.f32.mrf.mxu2 }
  0x9a   : > { %481 = vst.msk [vmem:[#allocation2 + $0xd8] sm:$0x3f] %vm480_vm4, %v449_v44 }
  0xa0   : > { %v4648_v55 = vpop.f32.mrf.mxu3  ;;  %v387_v56 = vpop.f32.mrf.mxu0  ;;  %v651_v10 = vld [vmem:[#allocation2 + $0x8] sm:$0xff] }
  0xa1   : > { %455 = vst.msk [vmem:[#allocation2 + $0x10] sm:$0xff] %vm452_vm3, %v387_v56  ;;  %v580_v61 = vpop.f32.mrf.mxu1  ;;  %v834_v63 = vpop.f32.mrf.mxu2 }
  0xa2   : > { %v678_v0 = vadd.f32 %v650_v62, %v580_v61 }
  0xa3   : > { %4046 = vmatmul.msk.bf16.gmra.mxu0 %vm323_vm2, %v317_v37  ;;  %4060 = vmatmul.msk.bf16.gmra.mxu1 %vm323_vm2, %v4650_v57  ;;  %v319_v37 = vpack.c.bf16 %v303_v24, %v302_v22 }
  0xa4   : > { %706 = vst.msk [vmem:[#allocation2] sm:$0xff] %vm452_vm3, %v678_v0 }
  0xa5   : > { %4091 = vmatmul.msk.bf16.gmra.mxu3 %vm323_vm2, %v318_v1  ;;  %4076 = vmatmul.msk.bf16.gmra.mxu2 %vm323_vm2, %v771_v2  ;;  %v503_v2 = vld [vmem:[%s4487_s16 + $0xa9] sm:$0xff] }
  0xa8   : > { %v4659_v4 = vpop.f32.mrf.mxu3  ;;  %v389_v7 = vpop.f32.mrf.mxu0  ;;  %v652_v31 = vld [vmem:[#allocation2 + $0x10] sm:$0xff] }
  0xa9   : > { %456 = vst.msk [vmem:[#allocation2 + $0x18] sm:$0xff] %vm452_vm3, %v389_v7  ;;  %v582_v9 = vpop.f32.mrf.mxu1  ;;  %v837_v11 = vpop.f32.mrf.mxu2 }
  0xaa   : > { %v679_v14 = vadd.f32 %v651_v10, %v582_v9  ;;  %v305_v9 = vld [vmem:[%s4487_s16 + $0xc8] sm:$0xff]  ;;  %v756_v10 = vld [vmem:[%s4487_s16 + $0xb2] sm:$0xff] }
  0xab   : > { %v902_v16 = vld [vmem:[#allocation2] sm:$0xff]  ;;  %v320_v21 = vpack.c.bf16 %v305_v9, %v304_v8  ;;  %v773_v22 = vpack.c.bf16 %v757_v12, %v756_v10 }
  0xac   : > { %707 = vst.msk [vmem:[#allocation2 + $0x8] sm:$0xff] %vm452_vm3, %v679_v14  ;;  %v930_v17 = vadd.f32 %v902_v16, %v832_v45 }
  0xae   : > { %958 = vst.msk [vmem:[#allocation2] sm:$0xff] %vm452_vm3, %v930_v17 }
  0xb0   : > { %v4678_v27 = vpop.f32.mrf.mxu3  ;;  %v392_v28 = vpop.f32.mrf.mxu0  ;;  %v653_v54 = vld [vmem:[#allocation2 + $0x18] sm:$0xff] }
  0xb1   : > { %457 = vst.msk [vmem:[#allocation2 + $0x20] sm:$0xff] %vm452_vm3, %v392_v28  ;;  %v585_v30 = vpop.f32.mrf.mxu1  ;;  %v839_v34 = vpop.f32.mrf.mxu2  ;;  %v4156_v28 = vld [vmem:[%s5819_s1 + $0x10] sm:$0x3] }
  0xb2   : > { %v680_v36 = vadd.f32 %v652_v31, %v585_v30  ;;  %v2333_v30 = vand.u32 %v4156_v28, %v4468_v5 }
  0xb3   : > { %v903_v43 = vld [vmem:[#allocation2 + $0x8] sm:$0xff]  ;;  %4047 = vmatmul.msk.bf16.gmra.mxu0 %vm323_vm2, %v318_v1  ;;  %4061 = vmatmul.msk.bf16.gmra.mxu1 %vm323_vm2, %v4680_v29 }
  0xb4   : > { %708 = vst.msk [vmem:[#allocation2 + $0x10] sm:$0xff] %vm452_vm3, %v680_v36  ;;  %v931_v44 = vadd.f32 %v903_v43, %v834_v63  ;;  %v502_v1 = vld [vmem:[%s4487_s16 + $0xa1] sm:$0xff]  ;;  %2342 = vmatpush.bf16.msra.mxu0 %v2333_v30 }
  0xb5   : > { %4092 = vmatmul.msk.bf16.gmra.mxu3 %vm323_vm2, %v319_v37  ;;  %v1154_v45 = vld [vmem:[#allocation2] sm:$0xff]  ;;  %4077 = vmatmul.msk.bf16.gmra.mxu2 %vm323_vm2, %v772_v38  ;;  %v4711_v17 = vpack.c.bf16 %v503_v2, %v502_v1 }
  0xb6   : > { %959 = vst.msk [vmem:[#allocation2 + $0x8] sm:$0xff] %vm452_vm3, %v931_v44  ;;  %v1182_v46 = vadd.f32 %v1154_v45, %v4638_v39  ;;  %v504_v45 = vld [vmem:[%s4487_s16 + $0xb1] sm:$0xff]  ;;  %v1012_v30 = vld [vmem:[%s4487_s16 + $0xe0] sm:$0xff] }
  0xb8   : > { %v4695_v52 = vpop.f32.mrf.mxu3  ;;  %1210 = vst.msk [vmem:[#allocation2] sm:$0xff] %vm452_vm3, %v1182_v46  ;;  %v394_v53 = vpop.f32.mrf.mxu0  ;;  %v654_v18 = vld [vmem:[#allocation2 + $0x20] sm:$0xff] }
  0xb9   : > { %458 = vst.msk [vmem:[#allocation2 + $0x28] sm:$0xff] %vm452_vm3, %v394_v53  ;;  %v587_v39 = vpop.f32.mrf.mxu1  ;;  %v842_v56 = vpop.f32.mrf.mxu2  ;;  %v505_v46 = vld [vmem:[%s4487_s16 + $0xb9] sm:$0xff]  ;;  %v759_v53 = vld [vmem:[%s4487_s16 + $0xca] sm:$0xff] }
  0xba   : > { %v681_v61 = vadd.f32 %v653_v54, %v587_v39  ;;  %v1011_v54 = vld [vmem:[%s4487_s16 + $0xd8] sm:$0xff] }
  0xbb   : > { %v904_v62 = vld [vmem:[#allocation2 + $0x10] sm:$0xff] }
  0xbc   : > { %709 = vst.msk [vmem:[#allocation2 + $0x18] sm:$0xff] %vm452_vm3, %v681_v61  ;;  %v932_v63 = vadd.f32 %v904_v62, %v837_v11  ;;  %v4741_v62 = vpack.c.bf16 %v505_v46, %v504_v45 }
  0xbd   : > { %v1155_v0 = vld [vmem:[#allocation2 + $0x8] sm:$0xff] }
  0xbe   : > { %960 = vst.msk [vmem:[#allocation2 + $0x10] sm:$0xff] %vm452_vm3, %v932_v63  ;;  %v1183_v7 = vadd.f32 %v1155_v0, %v4648_v55  ;;  %v1026_v63 = vpack.c.bf16 %v1011_v54, %v4492_v15 }
  0xc0   : > { %v4708_v14 = vpop.f32.mrf.mxu3  ;;  %1211 = vst.msk [vmem:[#allocation2 + $0x8] sm:$0xff] %vm452_vm3, %v1183_v7  ;;  %v397_v16 = vpop.f32.mrf.mxu0  ;;  %v655_v36 = vld [vmem:[#allocation2 + $0x28] sm:$0xff]  ;;  %v774_v7 = vpack.c.bf16 %v759_v53, %v758_v48 }
  0xc1   : > { %459 = vst.msk [vmem:[#allocation2 + $0x30] sm:$0xff] %vm452_vm3, %v397_v16  ;;  %v590_v11 = vpop.f32.mrf.mxu1  ;;  %v844_v19 = vpop.f32.mrf.mxu2 }
  0xc2   : > { %v682_v20 = vadd.f32 %v654_v18, %v590_v11 }
  0xc3   : > { %v905_v55 = vld [vmem:[#allocation2 + $0x18] sm:$0xff]  ;;  %4048 = vmatmul.msk.bf16.gmra.mxu0 %vm323_vm2, %v319_v37  ;;  %4062 = vmatmul.msk.bf16.gmra.mxu1 %vm323_vm2, %v4711_v17 }
  0xc4   : > { %710 = vst.msk [vmem:[#allocation2 + $0x20] sm:$0xff] %vm452_vm3, %v682_v20  ;;  %v933_v24 = vadd.f32 %v905_v55, %v839_v34  ;;  %v507_v55 = vld [vmem:[%s4487_s16 + $0xc9] sm:$0xff] }
  0xc5   : > { %4093 = vmatmul.msk.bf16.gmra.mxu3 %vm323_vm2, %v320_v21  ;;  %v1156_v25 = vld [vmem:[#allocation2 + $0x10] sm:$0xff]  ;;  %4078 = vmatmul.msk.bf16.gmra.mxu2 %vm323_vm2, %v773_v22  ;;  %v506_v22 = vld [vmem:[%s4487_s16 + $0xc1] sm:$0xff] }
  0xc6   : > { %961 = vst.msk [vmem:[#allocation2 + $0x18] sm:$0xff] %vm452_vm3, %v933_v24  ;;  %v1184_v26 = vadd.f32 %v1156_v25, %v4659_v4  ;;  %v760_v25 = vld [vmem:[%s4487_s16 + $0xd2] sm:$0xff] }
  0xc8   : > { %v4726_v31 = vpop.f32.mrf.mxu3  ;;  %1212 = vst.msk [vmem:[#allocation2 + $0x10] sm:$0xff] %vm452_vm3, %v1184_v26  ;;  %v399_v34 = vpop.f32.mrf.mxu0  ;;  %v656_v0 = vld [vmem:[#allocation2 + $0x30] sm:$0xff]  ;;  %v761_v26 = vld [vmem:[%s4487_s16 + $0xda] sm:$0x3f] }
  0xc9   : > { %460 = vst.msk [vmem:[#allocation2 + $0x38] sm:$0xff] %vm452_vm3, %v399_v34  ;;  %v592_v4 = vpop.f32.mrf.mxu1  ;;  %v847_v37 = vpop.f32.mrf.mxu2  ;;  %v1013_v34 = vld [vmem:[%s4487_s16 + $0xe8] sm:$0x3f]  ;;  %v775_v45 = vpack.c.bf16 %v761_v26, %v760_v25 }
  0xca   : > { %v683_v38 = vadd.f32 %v655_v36, %v592_v4  ;;  %v4769_v36 = vpack.c.bf16 %v507_v55, %v506_v22 }
  0xcb   : > { %v906_v43 = vld [vmem:[#allocation2 + $0x20] sm:$0xff] }
  0xcc   : > { %711 = vst.msk [vmem:[#allocation2 + $0x28] sm:$0xff] %vm452_vm3, %v683_v38  ;;  %v934_v44 = vadd.f32 %v906_v43, %v842_v56  ;;  %v1027_v38 = vpack.c.bf16 %v1013_v34, %v1012_v30 }
  0xcd   : > { %v1157_v5 = vld [vmem:[#allocation2 + $0x18] sm:$0xff] }
  0xce   : > { %962 = vst.msk [vmem:[#allocation2 + $0x20] sm:$0xff] %vm452_vm3, %v934_v44  ;;  %v1185_v47 = vadd.f32 %v1157_v5, %v4678_v27 }
  0xd0   : > { %v4737_v39 = vpop.f32.mrf.mxu3  ;;  %1213 = vst.msk [vmem:[#allocation2 + $0x18] sm:$0xff] %vm452_vm3, %v1185_v47  ;;  %v402_v61 = vpop.f32.mrf.mxu0  ;;  %v657_v11 = vld [vmem:[#allocation2 + $0x38] sm:$0xff] }
  0xd1   : > { %461 = vst.msk [vmem:[#allocation2 + $0x40] sm:$0xff] %vm452_vm3, %v402_v61  ;;  %v595_v56 = vpop.f32.mrf.mxu1  ;;  %v849_v1 = vpop.f32.mrf.mxu2 }
  0xd2   : > { %v684_v2 = vadd.f32 %v656_v0, %v595_v56 }
  0xd3   : > { %v907_v27 = vld [vmem:[#allocation2 + $0x28] sm:$0xff]  ;;  %4049 = vmatmul.msk.bf16.gmra.mxu0 %vm323_vm2, %v320_v21  ;;  %4063 = vmatmul.msk.bf16.gmra.mxu1 %vm323_vm2, %v4741_v62 }
  0xd4   : > { %712 = vst.msk [vmem:[#allocation2 + $0x30] sm:$0xff] %vm452_vm3, %v684_v2  ;;  %v935_v8 = vadd.f32 %v907_v27, %v844_v19 }
  0xd5   : > { %4094 = vmatmul.msk.bf16.gmra.mxu3 %vm323_vm2, %v1026_v63  ;;  %v1158_v9 = vld [vmem:[#allocation2 + $0x20] sm:$0xff]  ;;  %4079 = vmatmul.msk.bf16.gmra.mxu2 %vm323_vm2, %v774_v7  ;;  %v4787_v7 = vld [vmem:[%s4487_s16 + $0xd1] sm:$0xff] }
  0xd6   : > { %963 = vst.msk [vmem:[#allocation2 + $0x28] sm:$0xff] %vm452_vm3, %v935_v8  ;;  %v1186_v15 = vadd.f32 %v1158_v9, %v4695_v52 }
  0xd8   : > { %v4753_v10 = vpop.f32.mrf.mxu3  ;;  %1214 = vst.msk [vmem:[#allocation2 + $0x20] sm:$0xff] %vm452_vm3, %v1186_v15  ;;  %v404_v12 = vpop.f32.mrf.mxu0  ;;  %v658_v43 = vld [vmem:[#allocation2 + $0x40] sm:$0xff] }
  0xd9   : > { %462 = vst.msk [vmem:[#allocation2 + $0x48] sm:$0xff] %vm452_vm3, %v404_v12  ;;  %v597_v16 = vpop.f32.mrf.mxu1  ;;  %v852_v18 = vpop.f32.mrf.mxu2 }
  0xda   : > { %v685_v19 = vadd.f32 %v657_v11, %v597_v16 }
  0xdb   : > { %v908_v20 = vld [vmem:[#allocation2 + $0x30] sm:$0xff] }
  0xdc   : > { %713 = vst.msk [vmem:[#allocation2 + $0x38] sm:$0xff] %vm452_vm3, %v685_v19  ;;  %v936_v52 = vadd.f32 %v908_v20, %v847_v37 }
  0xdd   : > { %v1159_v21 = vld [vmem:[#allocation2 + $0x28] sm:$0xff] }
  0xde   : > { %964 = vst.msk [vmem:[#allocation2 + $0x30] sm:$0xff] %vm452_vm3, %v936_v52  ;;  %v1187_v24 = vadd.f32 %v1159_v21, %v4708_v14 }
  0xe0   : > { %v4764_v28 = vpop.f32.mrf.mxu3  ;;  %1215 = vst.msk [vmem:[#allocation2 + $0x28] sm:$0xff] %vm452_vm3, %v1187_v24  ;;  %v407_v4 = vpop.f32.mrf.mxu0  ;;  %v659_v61 = vld [vmem:[#allocation2 + $0x48] sm:$0xff] }
  0xe1   : > { %463 = vst.msk [vmem:[#allocation2 + $0x50] sm:$0xff] %vm452_vm3, %v407_v4  ;;  %v600_v37 = vpop.f32.mrf.mxu1  ;;  %v854_v44 = vpop.f32.mrf.mxu2 }
  0xe2   : > { %v686_v5 = vadd.f32 %v658_v43, %v600_v37 }
  0xe3   : > { %v909_v14 = vld [vmem:[#allocation2 + $0x38] sm:$0xff]  ;;  %4097 = vmatmul.msk.bf16.vlgmr.msrb.gmra.mxu0 %vm323_vm2, %v4526_v40  ;;  %4064 = vmatmul.msk.bf16.gmra.mxu1 %vm323_vm2, %v4769_v36 }
  0xe4   : > { %714 = vst.msk [vmem:[#allocation2 + $0x40] sm:$0xff] %vm452_vm3, %v686_v5  ;;  %v937_v46 = vadd.f32 %v909_v14, %v849_v1 }
  0xe5   : > { %4095 = vmatmul.msk.bf16.gmra.mxu3 %vm323_vm2, %v1027_v38  ;;  %v1160_v47 = vld [vmem:[#allocation2 + $0x30] sm:$0xff]  ;;  %4080 = vmatmul.msk.bf16.gmra.mxu2 %vm323_vm2, %v775_v45 }
  0xe6   : > { %965 = vst.msk [vmem:[#allocation2 + $0x38] sm:$0xff] %vm452_vm3, %v937_v46  ;;  %v1188_v48 = vadd.f32 %v1160_v47, %v4726_v31  ;;  %v509_v31 = vld [vmem:[%s4487_s16 + $0xd9] sm:$0x3f] }
  0xe7   : > { %v523_v15 = vpack.c.bf16 %v509_v31, %v4787_v7 }
  0xe8   : > { %v4781_v53 = vpop.f32.mrf.mxu3  ;;  %1216 = vst.msk [vmem:[#allocation2 + $0x30] sm:$0xff] %vm452_vm3, %v1188_v48  ;;  %v409_v40 = vpop.f32.mrf.mxu0  ;;  %v660_v16 = vld [vmem:[#allocation2 + $0x50] sm:$0xff] }
  0xe9   : > { %464 = vst.msk [vmem:[#allocation2 + $0x58] sm:$0xff] %vm452_vm3, %v409_v40  ;;  %v602_v54 = vpop.f32.mrf.mxu1  ;;  %v857_v63 = vpop.f32.mrf.mxu2 }
  0xea   : > { %v687_v56 = vadd.f32 %v659_v61, %v602_v54 }
  0xeb   : > { %v910_v0 = vld [vmem:[#allocation2 + $0x40] sm:$0xff] }
  0xec   : > { %715 = vst.msk [vmem:[#allocation2 + $0x48] sm:$0xff] %vm452_vm3, %v687_v56  ;;  %v938_v1 = vadd.f32 %v910_v0, %v852_v18 }
  0xed   : > { %v1161_v2 = vld [vmem:[#allocation2 + $0x38] sm:$0xff] }
  0xee   : > { %966 = vst.msk [vmem:[#allocation2 + $0x40] sm:$0xff] %vm452_vm3, %v938_v1  ;;  %v1189_v27 = vadd.f32 %v1161_v2, %v4737_v39 }
  0xf0   : > { %v4792_v8 = vpop.f32.mrf.mxu3  ;;  %1217 = vst.msk [vmem:[#allocation2 + $0x38] sm:$0xff] %vm452_vm3, %v1189_v27  ;;  %v412_v9 = vpop.f32.mrf.mxu0  ;;  %v661_v24 = vld [vmem:[#allocation2 + $0x58] sm:$0xff] }
  0xf1   : > { %465 = vst.msk [vmem:[#allocation2 + $0x60] sm:$0xff] %vm452_vm3, %v412_v9  ;;  %v605_v12 = vpop.f32.mrf.mxu1  ;;  %v859_v11 = vpop.f32.mrf.mxu2 }
  0xf2   : > { %v688_v18 = vadd.f32 %v660_v16, %v605_v12 }
  0xf3   : > { %v911_v19 = vld [vmem:[#allocation2 + $0x48] sm:$0xff]  ;;  %4098 = vmatmul.msk.bf16.gmra.mxu0 %vm323_vm2, %v4546_v49  ;;  %4065 = vmatmul.msk.bf16.gmra.mxu1 %vm323_vm2, %v523_v15 }
  0xf4   : > { %716 = vst.msk [vmem:[#allocation2 + $0x50] sm:$0xff] %vm452_vm3, %v688_v18  ;;  %v939_v39 = vadd.f32 %v911_v19, %v854_v44 }
  0xf5   : > { %4142 = vmatmul.msk.bf16.vlgmr.msrb.gmra.mxu3 %vm323_vm2, %v4546_v49  ;;  %v1162_v20 = vld [vmem:[#allocation2 + $0x40] sm:$0xff]  ;;  %4127 = vmatmul.msk.bf16.vlgmr.msrb.gmra.mxu2 %vm323_vm2, %v4510_v32 }
  0xf6   : > { %967 = vst.msk [vmem:[#allocation2 + $0x48] sm:$0xff] %vm452_vm3, %v939_v39  ;;  %v1190_v52 = vadd.f32 %v1162_v20, %v4753_v10 }
  0xf8   : > { %v1114_v21 = vpop.f32.mrf.mxu3  ;;  %1218 = vst.msk [vmem:[#allocation2 + $0x40] sm:$0xff] %vm452_vm3, %v1190_v52  ;;  %v414_v22 = vpop.f32.mrf.mxu0  ;;  %v662_v37 = vld [vmem:[#allocation2 + $0x60] sm:$0xff] }
  0xf9   : > { %466 = vst.msk [vmem:[#allocation2 + $0x68] sm:$0xff] %vm452_vm3, %v414_v22  ;;  %v607_v55 = vpop.f32.mrf.mxu1  ;;  %v862_v25 = vpop.f32.mrf.mxu2 }
  0xfa   : > { %v689_v26 = vadd.f32 %v661_v24, %v607_v55 }
  0xfb   : > { %v912_v30 = vld [vmem:[#allocation2 + $0x50] sm:$0xff] }
  0xfc   : > { %717 = vst.msk [vmem:[#allocation2 + $0x58] sm:$0xff] %vm452_vm3, %v689_v26  ;;  %v940_v49 = vadd.f32 %v912_v30, %v857_v63 }
  0xfd   : > { %v1163_v34 = vld [vmem:[#allocation2 + $0x48] sm:$0xff] }
  0xfe   : > { %968 = vst.msk [vmem:[#allocation2 + $0x50] sm:$0xff] %vm452_vm3, %v940_v49  ;;  %v1191_v10 = vadd.f32 %v1163_v34, %v4764_v28 }
 0x100   : > { %v4812_v32 = vpop.f32.mrf.mxu3  ;;  %1219 = vst.msk [vmem:[#allocation2 + $0x48] sm:$0xff] %vm452_vm3, %v1191_v10  ;;  %v417_v4 = vpop.f32.mrf.mxu0  ;;  %v663_v40 = vld [vmem:[#allocation2 + $0x68] sm:$0xff] }
 0x101   : > { %467 = vst.msk [vmem:[#allocation2 + $0x70] sm:$0xff] %vm452_vm3, %v417_v4  ;;  %v610_v38 = vpop.f32.mrf.mxu1  ;;  %v864_v43 = vpop.f32.mrf.mxu2 }
 0x102   : > { %v690_v44 = vadd.f32 %v662_v37, %v610_v38 }
 0x103   : > { %v913_v5 = vld [vmem:[#allocation2 + $0x58] sm:$0xff]  ;;  %4099 = vmatmul.msk.bf16.gmra.mxu0 %vm323_vm2, %v4566_v58  ;;  %4112 = vmatmul.msk.bf16.vlgmr.msra.gmra.mxu1 %vm323_vm2, %v4512_v33 }
 0x104   : > { %718 = vst.msk [vmem:[#allocation2 + $0x60] sm:$0xff] %vm452_vm3, %v690_v44  ;;  %v941_v45 = vadd.f32 %v913_v5, %v859_v11  ;;  %v1750_v5 = vld [vmem:[%s4487_s16 + $0x60] sm:$0xff] }
 0x105   : > { %4143 = vmatmul.msk.bf16.gmra.mxu3 %vm323_vm2, %v4566_v58  ;;  %v1164_v28 = vld [vmem:[#allocation2 + $0x50] sm:$0xff]  ;;  %4128 = vmatmul.msk.bf16.gmra.mxu2 %vm323_vm2, %v4528_v41 }
 0x106   : > { %969 = vst.msk [vmem:[#allocation2 + $0x58] sm:$0xff] %vm452_vm3, %v941_v45  ;;  %v1192_v14 = vadd.f32 %v1164_v28, %v4781_v53  ;;  %v1751_v45 = vld [vmem:[%s4487_s16 + $0x68] sm:$0xff] }
 0x108   : > { %v1119_v46 = vpop.f32.mrf.mxu3  ;;  %1220 = vst.msk [vmem:[#allocation2 + $0x50] sm:$0xff] %vm452_vm3, %v1192_v14  ;;  %v419_v47 = vpop.f32.mrf.mxu0  ;;  %v664_v1 = vld [vmem:[#allocation2 + $0x70] sm:$0xff]  ;;  %v2002_v14 = vld [vmem:[%s4487_s16 + $0x61] sm:$0xff] }
 0x109   : > { %468 = vst.msk [vmem:[#allocation2 + $0x78] sm:$0xff] %vm452_vm3, %v419_v47  ;;  %v612_v48 = vpop.f32.mrf.mxu1  ;;  %v867_v33 = vpop.f32.mrf.mxu2 }
 0x10a   : > { %v691_v54 = vadd.f32 %v663_v40, %v612_v48 }
 0x10b   : > { %v914_v61 = vld [vmem:[#allocation2 + $0x60] sm:$0xff] }
 0x10c   : > { %719 = vst.msk [vmem:[#allocation2 + $0x68] sm:$0xff] %vm452_vm3, %v691_v54  ;;  %v942_v58 = vadd.f32 %v914_v61, %v862_v25 }
 0x10d   : > { %v1165_v63 = vld [vmem:[#allocation2 + $0x58] sm:$0xff] }
 0x10e   : > { %970 = vst.msk [vmem:[#allocation2 + $0x60] sm:$0xff] %vm452_vm3, %v942_v58  ;;  %v1193_v53 = vadd.f32 %v1165_v63, %v4792_v8  ;;  %v1774_v58 = vpack.c.bf16 %v1751_v45, %v1750_v5  ;;  %v2007_v5 = vld [vmem:[%s4487_s16 + $0x89] sm:$0xff] }
 0x110   : > { %v4832_v41 = vpop.f32.mrf.mxu3  ;;  %1221 = vst.msk [vmem:[#allocation2 + $0x58] sm:$0xff] %vm452_vm3, %v1193_v53  ;;  %v422_v56 = vpop.f32.mrf.mxu0  ;;  %v665_v18 = vld [vmem:[#allocation2 + $0x78] sm:$0xff] }
 0x111   : > { %469 = vst.msk [vmem:[#allocation2 + $0x80] sm:$0xff] %vm452_vm3, %v422_v56  ;;  %v615_v0 = vpop.f32.mrf.mxu1  ;;  %v869_v2 = vpop.f32.mrf.mxu2 }
 0x112   : > { %v692_v31 = vadd.f32 %v664_v1, %v615_v0 }
 0x113   : > { %v915_v27 = vld [vmem:[#allocation2 + $0x68] sm:$0xff]  ;;  %4100 = vmatmul.msk.bf16.gmra.mxu0 %vm323_vm2, %v4586_v3  ;;  %4113 = vmatmul.msk.bf16.gmra.mxu1 %vm323_vm2, %v4530_v42 }
 0x114   : > { %720 = vst.msk [vmem:[#allocation2 + $0x70] sm:$0xff] %vm452_vm3, %v692_v31  ;;  %v943_v9 = vadd.f32 %v915_v27, %v864_v43 }
 0x115   : > { %4144 = vmatmul.msk.bf16.gmra.mxu3 %vm323_vm2, %v4586_v3  ;;  %v1166_v8 = vld [vmem:[#allocation2 + $0x60] sm:$0xff]  ;;  %4129 = vmatmul.msk.bf16.gmra.mxu2 %vm323_vm2, %v4548_v50 }
 0x116   : > { %971 = vst.msk [vmem:[#allocation2 + $0x68] sm:$0xff] %vm452_vm3, %v943_v9  ;;  %v1194_v15 = vadd.f32 %v1166_v8, %v1114_v21 }
 0x118   : > { %v4846_v12 = vpop.f32.mrf.mxu3  ;;  %1222 = vst.msk [vmem:[#allocation2 + $0x60] sm:$0xff] %vm452_vm3, %v1194_v15  ;;  %v424_v16 = vpop.f32.mrf.mxu0  ;;  %v666_v55 = vld [vmem:[#allocation2 + $0x80] sm:$0xff] }
 0x119   : > { %470 = vst.msk [vmem:[#allocation2 + $0x88] sm:$0xff] %vm452_vm3, %v424_v16  ;;  %v617_v11 = vpop.f32.mrf.mxu1  ;;  %v872_v42 = vpop.f32.mrf.mxu2  ;;  %v1753_v16 = vld [vmem:[%s4487_s16 + $0x78] sm:$0xff] }
 0x11a   : > { %v693_v19 = vadd.f32 %v665_v18, %v617_v11  ;;  %v2004_v18 = vld [vmem:[%s4487_s16 + $0x71] sm:$0xff] }
 0x11b   : > { %v916_v39 = vld [vmem:[#allocation2 + $0x70] sm:$0xff] }
 0x11c   : > { %721 = vst.msk [vmem:[#allocation2 + $0x78] sm:$0xff] %vm452_vm3, %v693_v19  ;;  %v944_v3 = vadd.f32 %v916_v39, %v867_v33 }
 0x11d   : > { %v1167_v20 = vld [vmem:[#allocation2 + $0x68] sm:$0xff] }
 0x11e   : > { %972 = vst.msk [vmem:[#allocation2 + $0x70] sm:$0xff] %vm452_vm3, %v944_v3  ;;  %v1195_v50 = vadd.f32 %v1167_v20, %v4812_v32 }
 0x120   : > { %v4853_v52 = vpop.f32.mrf.mxu3  ;;  %1223 = vst.msk [vmem:[#allocation2 + $0x68] sm:$0xff] %vm452_vm3, %v1195_v50  ;;  %v427_v21 = vpop.f32.mrf.mxu0 }
 0x121   : > { %471 = vst.msk [vmem:[#allocation2 + $0x90] sm:$0xff] %vm452_vm3, %v427_v21  ;;  %v620_v22 = vpop.f32.mrf.mxu1  ;;  %v874_v24 = vpop.f32.mrf.mxu2 }
 0x122   : > { %v694_v25 = vadd.f32 %v666_v55, %v620_v22 }
 0x123   : > { %v917_v26 = vld [vmem:[#allocation2 + $0x78] sm:$0xff]  ;;  %4101 = vmatmul.msk.bf16.gmra.mxu0 %vm323_vm2, %v4603_v13  ;;  %4114 = vmatmul.msk.bf16.gmra.mxu1 %vm323_vm2, %v4550_v51 }
 0x124   : > { %722 = vst.msk [vmem:[#allocation2 + $0x80] sm:$0xff] %vm452_vm3, %v694_v25  ;;  %v945_v30 = vadd.f32 %v917_v26, %v869_v2 }
 0x125   : > { %4145 = vmatmul.msk.bf16.gmra.mxu3 %vm323_vm2, %v4603_v13  ;;  %v1168_v49 = vld [vmem:[#allocation2 + $0x70] sm:$0xff]  ;;  %4130 = vmatmul.msk.bf16.gmra.mxu2 %vm323_vm2, %v4568_v59  ;;  %v667_v13 = vld [vmem:[#allocation2 + $0x88] sm:$0xff] }
 0x126   : > { %973 = vst.msk [vmem:[#allocation2 + $0x78] sm:$0xff] %vm452_vm3, %v945_v30  ;;  %v1196_v34 = vadd.f32 %v1168_v49, %v1119_v46  ;;  %v2003_v46 = vld [vmem:[%s4487_s16 + $0x69] sm:$0xff] }
 0x127   : > { %v2026_v48 = vpack.c.bf16 %v2003_v46, %v2002_v14 }
 0x128   : > { %v4867_v10 = vpop.f32.mrf.mxu3  ;;  %1224 = vst.msk [vmem:[#allocation2 + $0x70] sm:$0xff] %vm452_vm3, %v1196_v34  ;;  %v429_v32 = vpop.f32.mrf.mxu0  ;;  %v668_v33 = vld [vmem:[#allocation2 + $0x90] sm:$0xff] }
 0x129   : > { %472 = vst.msk [vmem:[#allocation2 + $0x98] sm:$0xff] %vm452_vm3, %v429_v32  ;;  %v622_v51 = vpop.f32.mrf.mxu1  ;;  %v877_v4 = vpop.f32.mrf.mxu2 }
 0x12a   : > { %v695_v38 = vadd.f32 %v667_v13, %v622_v51  ;;  %v1500_v13 = vld [vmem:[%s4487_s16 + $0x62] sm:$0xff] }
 0x12b   : > { %v918_v37 = vld [vmem:[#allocation2 + $0x80] sm:$0xff] }
 0x12c   : > { %723 = vst.msk [vmem:[#allocation2 + $0x88] sm:$0xff] %vm452_vm3, %v695_v38  ;;  %v946_v43 = vadd.f32 %v918_v37, %v872_v42  ;;  %v2005_v42 = vld [vmem:[%s4487_s16 + $0x79] sm:$0xff] }
 0x12d   : > { %v1169_v44 = vld [vmem:[#allocation2 + $0x78] sm:$0xff]  ;;  %v2027_v39 = vpack.c.bf16 %v2005_v42, %v2004_v18  ;;  %v1754_v37 = vld [vmem:[%s4487_s16 + $0x80] sm:$0xff] }
 0x12e   : > { %974 = vst.msk [vmem:[#allocation2 + $0x80] sm:$0xff] %vm452_vm3, %v946_v43  ;;  %v1197_v59 = vadd.f32 %v1169_v44, %v4832_v41  ;;  %v1755_v43 = vld [vmem:[%s4487_s16 + $0x88] sm:$0xff]  ;;  %v2009_v18 = vld [vmem:[%s4487_s16 + $0x99] sm:$0xff] }
 0x130   : > { %v4876_v28 = vpop.f32.mrf.mxu3  ;;  %1225 = vst.msk [vmem:[#allocation2 + $0x78] sm:$0xff] %vm452_vm3, %v1197_v59  ;;  %v432_v47 = vpop.f32.mrf.mxu0  ;;  %v669_v1 = vld [vmem:[#allocation2 + $0x98] sm:$0xff]  ;;  %v2006_v59 = vld [vmem:[%s4487_s16 + $0x81] sm:$0xff] }
 0x131   : > { %473 = vst.msk [vmem:[#allocation2 + $0xa0] sm:$0xff] %vm452_vm3, %v432_v47  ;;  %v625_v40 = vpop.f32.mrf.mxu1  ;;  %v879_v54 = vpop.f32.mrf.mxu2  ;;  %v2028_v46 = vpack.c.bf16 %v2007_v5, %v2006_v59  ;;  %v1758_v59 = vld [vmem:[%s4487_s16 + $0xa0] sm:$0xff]  ;;  %v1759_v5 = vld [vmem:[%s4487_s16 + $0xa8] sm:$0xff] }
 0x132   : > { %v696_v61 = vadd.f32 %v668_v33, %v625_v40 }
 0x133   : > { %v919_v63 = vld [vmem:[#allocation2 + $0x88] sm:$0xff]  ;;  %4102 = vmatmul.msk.bf16.gmra.mxu0 %vm323_vm2, %v4616_v23  ;;  %4115 = vmatmul.msk.bf16.gmra.mxu1 %vm323_vm2, %v4570_v60 }
 0x134   : > { %724 = vst.msk [vmem:[#allocation2 + $0x90] sm:$0xff] %vm452_vm3, %v696_v61  ;;  %v947_v53 = vadd.f32 %v919_v63, %v874_v24 }
 0x135   : > { %4146 = vmatmul.msk.bf16.gmra.mxu3 %vm323_vm2, %v2026_v48  ;;  %v1170_v41 = vld [vmem:[#allocation2 + $0x80] sm:$0xff]  ;;  %4131 = vmatmul.msk.bf16.gmra.mxu2 %vm323_vm2, %v1774_v58 }
 0x136   : > { %975 = vst.msk [vmem:[#allocation2 + $0x88] sm:$0xff] %vm452_vm3, %v947_v53  ;;  %v1198_v56 = vadd.f32 %v1170_v41, %v4846_v12  ;;  %v1752_v12 = vld [vmem:[%s4487_s16 + $0x70] sm:$0xff] }
 0x137   : > { %v1775_v22 = vpack.c.bf16 %v1753_v16, %v1752_v12  ;;  %v2008_v16 = vld [vmem:[%s4487_s16 + $0x91] sm:$0xff] }
 0x138   : > { %v4891_v0 = vpop.f32.mrf.mxu3  ;;  %1226 = vst.msk [vmem:[#allocation2 + $0x80] sm:$0xff] %vm452_vm3, %v1198_v56  ;;  %v434_v23 = vpop.f32.mrf.mxu0  ;;  %v670_v20 = vld [vmem:[#allocation2 + $0xa0] sm:$0xff] }
 0x139   : > { %474 = vst.msk [vmem:[#allocation2 + $0xa8] sm:$0xff] %vm452_vm3, %v434_v23  ;;  %v627_v60 = vpop.f32.mrf.mxu1  ;;  %v882_v2 = vpop.f32.mrf.mxu2 }
 0x13a   : > { %v697_v31 = vadd.f32 %v669_v1, %v627_v60 }
 0x13b   : > { %v920_v27 = vld [vmem:[#allocation2 + $0x90] sm:$0xff] }
 0x13c   : > { %725 = vst.msk [vmem:[#allocation2 + $0x98] sm:$0xff] %vm452_vm3, %v697_v31  ;;  %v948_v9 = vadd.f32 %v920_v27, %v877_v4  ;;  %v1501_v4 = vld [vmem:[%s4487_s16 + $0x6a] sm:$0xff]  ;;  %v1502_v31 = vld [vmem:[%s4487_s16 + $0x72] sm:$0xff]  ;;  %v1503_v27 = vld [vmem:[%s4487_s16 + $0x7a] sm:$0xff] }
 0x13d   : > { %v1171_v8 = vld [vmem:[#allocation2 + $0x88] sm:$0xff]  ;;  %v1523_v14 = vpack.c.bf16 %v1501_v4, %v1500_v13 }
 0x13e   : > { %976 = vst.msk [vmem:[#allocation2 + $0x90] sm:$0xff] %vm452_vm3, %v948_v9  ;;  %v1199_v15 = vadd.f32 %v1171_v8, %v4853_v52  ;;  %v1756_v8 = vld [vmem:[%s4487_s16 + $0x90] sm:$0xff] }
 0x140   : > { %v4900_v11 = vpop.f32.mrf.mxu3  ;;  %1227 = vst.msk [vmem:[#allocation2 + $0x88] sm:$0xff] %vm452_vm3, %v1199_v15  ;;  %v437_v19 = vpop.f32.mrf.mxu0  ;;  %v671_v30 = vld [vmem:[#allocation2 + $0xa8] sm:$0xff]  ;;  %v1757_v15 = vld [vmem:[%s4487_s16 + $0x98] sm:$0xff] }
 0x141   : > { %475 = vst.msk [vmem:[#allocation2 + $0xb0] sm:$0xff] %vm452_vm3, %v437_v19  ;;  %v630_v3 = vpop.f32.mrf.mxu1  ;;  %v884_v50 = vpop.f32.mrf.mxu2  ;;  %v1406_v19 = vld [vmem:[#allocation2] sm:$0xff] }
 0x142   : > { %v698_v21 = vadd.f32 %v670_v20, %v630_v3  ;;  %v2029_v3 = vpack.c.bf16 %v2009_v18, %v2008_v16  ;;  %v1506_v16 = vld [vmem:[%s4487_s16 + $0x92] sm:$0xff]  ;;  %v1507_v18 = vld [vmem:[%s4487_s16 + $0x9a] sm:$0xff] }
 0x143   : > { %v921_v55 = vld [vmem:[#allocation2 + $0x98] sm:$0xff]  ;;  %4103 = vmatmul.msk.bf16.gmra.mxu0 %vm323_vm2, %v4629_v35  ;;  %4116 = vmatmul.msk.bf16.gmra.mxu1 %vm323_vm2, %v4588_v6 }
 0x144   : > { %726 = vst.msk [vmem:[#allocation2 + $0xa0] sm:$0xff] %vm452_vm3, %v698_v21  ;;  %v949_v52 = vadd.f32 %v921_v55, %v879_v54  ;;  %v1776_v54 = vpack.c.bf16 %v1755_v43, %v1754_v37  ;;  %v1505_v37 = vld [vmem:[%s4487_s16 + $0x8a] sm:$0xff] }
 0x145   : > { %4147 = vmatmul.msk.bf16.gmra.mxu3 %vm323_vm2, %v2027_v39  ;;  %v1172_v24 = vld [vmem:[#allocation2 + $0x90] sm:$0xff]  ;;  %4132 = vmatmul.msk.bf16.gmra.mxu2 %vm323_vm2, %v1775_v22  ;;  %v4956_v39 = vpack.c.bf16 %v1503_v27, %v1502_v31 }
 0x146   : > { %977 = vst.msk [vmem:[#allocation2 + $0x98] sm:$0xff] %vm452_vm3, %v949_v52  ;;  %v1200_v25 = vadd.f32 %v1172_v24, %v4867_v10  ;;  %v1777_v52 = vpack.c.bf16 %v1757_v15, %v1756_v8 }
 0x148   : > { %v4915_v26 = vpop.f32.mrf.mxu3  ;;  %1228 = vst.msk [vmem:[#allocation2 + $0x90] sm:$0xff] %vm452_vm3, %v1200_v25  ;;  %v439_v35 = vpop.f32.mrf.mxu0  ;;  %v672_v48 = vld [vmem:[#allocation2 + $0xb0] sm:$0xff] }
 0x149   : > { %476 = vst.msk [vmem:[#allocation2 + $0xb8] sm:$0xff] %vm452_vm3, %v439_v35  ;;  %v632_v6 = vpop.f32.mrf.mxu1  ;;  %v887_v49 = vpop.f32.mrf.mxu2 }
 0x14a   : > { %v699_v34 = vadd.f32 %v671_v30, %v632_v6  ;;  %v1407_v30 = vld [vmem:[#allocation2 + $0x8] sm:$0xff] }
 0x14b   : > { %v922_v32 = vld [vmem:[#allocation2 + $0xa0] sm:$0xff] }
 0x14c   : > { %727 = vst.msk [vmem:[#allocation2 + $0xa8] sm:$0xff] %vm452_vm3, %v699_v34  ;;  %v950_v10 = vadd.f32 %v922_v32, %v882_v2 }
 0x14d   : > { %v1173_v51 = vld [vmem:[#allocation2 + $0x98] sm:$0xff] }
 0x14e   : > { %978 = vst.msk [vmem:[#allocation2 + $0xa0] sm:$0xff] %vm452_vm3, %v950_v10  ;;  %v1201_v38 = vadd.f32 %v1173_v51, %v4876_v28 }
 0x150   : > { %v4926_v44 = vpop.f32.mrf.mxu3  ;;  %1229 = vst.msk [vmem:[#allocation2 + $0x98] sm:$0xff] %vm452_vm3, %v1201_v38  ;;  %v442_v45 = vpop.f32.mrf.mxu0  ;;  %v673_v56 = vld [vmem:[#allocation2 + $0xb8] sm:$0xff]  ;;  %v1504_v38 = vld [vmem:[%s4487_s16 + $0x82] sm:$0xff] }
 0x151   : > { %477 = vst.msk [vmem:[#allocation2 + $0xc0] sm:$0xff] %vm452_vm3, %v442_v45  ;;  %v635_v47 = vpop.f32.mrf.mxu1  ;;  %v889_v40 = vpop.f32.mrf.mxu2 }
 0x152   : > { %v700_v33 = vadd.f32 %v672_v48, %v635_v47  ;;  %v1408_v48 = vld [vmem:[#allocation2 + $0x10] sm:$0xff] }
 0x153   : > { %v923_v61 = vld [vmem:[#allocation2 + $0xa8] sm:$0xff]  ;;  %4104 = vmatmul.msk.bf16.gmra.mxu0 %vm323_vm2, %v4650_v57  ;;  %4117 = vmatmul.msk.bf16.gmra.mxu1 %vm323_vm2, %v1523_v14 }
 0x154   : > { %728 = vst.msk [vmem:[#allocation2 + $0xb0] sm:$0xff] %vm452_vm3, %v700_v33  ;;  %v951_v28 = vadd.f32 %v923_v61, %v884_v50  ;;  %v2010_v14 = vld [vmem:[%s4487_s16 + $0xa1] sm:$0xff]  ;;  %v676_v61 = vld [vmem:[#allocation2 + $0xd0] sm:$0xff] }
 0x155   : > { %4148 = vmatmul.msk.bf16.gmra.mxu3 %vm323_vm2, %v2028_v46  ;;  %v1174_v58 = vld [vmem:[#allocation2 + $0xa0] sm:$0xff]  ;;  %4133 = vmatmul.msk.bf16.gmra.mxu2 %vm323_vm2, %v1776_v54  ;;  %v2011_v46 = vld [vmem:[%s4487_s16 + $0xa9] sm:$0xff] }
 0x156   : > { %979 = vst.msk [vmem:[#allocation2 + $0xa8] sm:$0xff] %vm452_vm3, %v951_v28  ;;  %v1202_v63 = vadd.f32 %v1174_v58, %v4891_v0  ;;  %v2030_v33 = vpack.c.bf16 %v2011_v46, %v2010_v14  ;;  %v1508_v14 = vld [vmem:[%s4487_s16 + $0xa2] sm:$0xff]  ;;  %v1509_v46 = vld [vmem:[%s4487_s16 + $0xaa] sm:$0xff] }
 0x158   : > { %v4940_v53 = vpop.f32.mrf.mxu3  ;;  %1230 = vst.msk [vmem:[#allocation2 + $0xa0] sm:$0xff] %vm452_vm3, %v1202_v63  ;;  %v444_v57 = vpop.f32.mrf.mxu0  ;;  %v674_v50 = vld [vmem:[#allocation2 + $0xc0] sm:$0xff] }
 0x159   : > { %478 = vst.msk [vmem:[#allocation2 + $0xc8] sm:$0xff] %vm452_vm3, %v444_v57  ;;  %v637_v41 = vpop.f32.mrf.mxu1  ;;  %v892_v23 = vpop.f32.mrf.mxu2  ;;  %v1778_v57 = vpack.c.bf16 %v1759_v5, %v1758_v59 }
 0x15a   : > { %v701_v60 = vadd.f32 %v673_v56, %v637_v41 }
 0x15b   : > { %v924_v1 = vld [vmem:[#allocation2 + $0xb0] sm:$0xff] }
 0x15c   : > { %729 = vst.msk [vmem:[#allocation2 + $0xb8] sm:$0xff] %vm452_vm3, %v701_v60  ;;  %v952_v0 = vadd.f32 %v924_v1, %v887_v49  ;;  %v1409_v1 = vld [vmem:[#allocation2 + $0x18] sm:$0xff] }
 0x15d   : > { %v1175_v2 = vld [vmem:[#allocation2 + $0xa8] sm:$0xff] }
 0x15e   : > { %980 = vst.msk [vmem:[#allocation2 + $0xb0] sm:$0xff] %vm452_vm3, %v952_v0  ;;  %v1203_v9 = vadd.f32 %v1175_v2, %v4900_v11  ;;  %v677_v2 = vld [vmem:[#allocation2 + $0xd8] sm:$0x3f] }
 0x160   : > { %v4951_v12 = vpop.f32.mrf.mxu3  ;;  %1231 = vst.msk [vmem:[#allocation2 + $0xa8] sm:$0xff] %vm452_vm3, %v1203_v9  ;;  %v1336_v42 = vpop.f32.mrf.mxu0  ;;  %v675_v34 = vld [vmem:[#allocation2 + $0xc8] sm:$0xff] }
 0x161   : > { %v640_v20 = vpop.f32.mrf.mxu1  ;;  %v1434_v21 = vadd.f32 %v1406_v19, %v1336_v42  ;;  %v894_v22 = vpop.f32.mrf.mxu2  ;;  %v1760_v19 = vld [vmem:[%s4487_s16 + $0xb0] sm:$0xff] }
 0x162   : > { %v702_v55 = vadd.f32 %v674_v50, %v640_v20  ;;  %v2012_v50 = vld [vmem:[%s4487_s16 + $0xb1] sm:$0xff] }
 0x163   : > { %1462 = vst.msk [vmem:[#allocation2] sm:$0xff] %vm452_vm3, %v1434_v21  ;;  %v925_v11 = vld [vmem:[#allocation2 + $0xb8] sm:$0xff]  ;;  %4105 = vmatmul.msk.bf16.gmra.mxu0 %vm323_vm2, %v4680_v29  ;;  %4118 = vmatmul.msk.bf16.gmra.mxu1 %vm323_vm2, %v4956_v39 }
 0x164   : > { %730 = vst.msk [vmem:[#allocation2 + $0xc0] sm:$0xff] %vm452_vm3, %v702_v55  ;;  %v953_v24 = vadd.f32 %v925_v11, %v889_v40  ;;  %v4984_v40 = vpack.c.bf16 %v1505_v37, %v1504_v38  ;;  %v2013_v21 = vld [vmem:[%s4487_s16 + $0xb9] sm:$0xff] }
 0x165   : > { %4149 = vmatmul.msk.bf16.gmra.mxu3 %vm323_vm2, %v2029_v3  ;;  %v1176_v25 = vld [vmem:[#allocation2 + $0xb0] sm:$0xff]  ;;  %4134 = vmatmul.msk.bf16.gmra.mxu2 %vm323_vm2, %v1777_v52  ;;  %v1761_v3 = vld [vmem:[%s4487_s16 + $0xb8] sm:$0xff]  ;;  %v1410_v55 = vld [vmem:[#allocation2 + $0x20] sm:$0xff]  ;;  %v5012_v52 = vpack.c.bf16 %v1507_v18, %v1506_v16  ;;  %v2031_v11 = vpack.c.bf16 %v2013_v21, %v2012_v50 }
 0x166   : > { %981 = vst.msk [vmem:[#allocation2 + $0xb8] sm:$0xff] %vm452_vm3, %v953_v24  ;;  %v1204_v35 = vadd.f32 %v1176_v25, %v4915_v26  ;;  %v1510_v21 = vld [vmem:[%s4487_s16 + $0xb2] sm:$0xff] }
 0x168   : > { %v4968_v6 = vpop.f32.mrf.mxu3  ;;  %1232 = vst.msk [vmem:[#allocation2 + $0xb0] sm:$0xff] %vm452_vm3, %v1204_v35  ;;  %v1338_v29 = vpop.f32.mrf.mxu0 }
 0x169   : > { %v642_v49 = vpop.f32.mrf.mxu1  ;;  %v1435_v32 = vadd.f32 %v1407_v30, %v1338_v29  ;;  %v897_v10 = vpop.f32.mrf.mxu2 }
 0x16a   : > { %v703_v51 = vadd.f32 %v675_v34, %v642_v49  ;;  %v1658_v35 = vld [vmem:[#allocation2] sm:$0xff]  ;;  %v1779_v49 = vpack.c.bf16 %v1761_v3, %v1760_v19 }
 0x16b   : > { %1463 = vst.msk [vmem:[#allocation2 + $0x8] sm:$0xff] %vm452_vm3, %v1435_v32  ;;  %v926_v26 = vld [vmem:[#allocation2 + $0xc0] sm:$0xff] }
 0x16c   : > { %731 = vst.msk [vmem:[#allocation2 + $0xc8] sm:$0xff] %vm452_vm3, %v703_v51  ;;  %v954_v13 = vadd.f32 %v926_v26, %v892_v23  ;;  %v1411_v26 = vld [vmem:[#allocation2 + $0x28] sm:$0xff]  ;;  %v1263_v3 = vld [vmem:[%s4487_s16 + $0xd9] sm:$0xff] }
 0x16d   : > { %v1177_v4 = vld [vmem:[#allocation2 + $0xb8] sm:$0xff] }
 0x16e   : > { %982 = vst.msk [vmem:[#allocation2 + $0xc0] sm:$0xff] %vm452_vm3, %v954_v13  ;;  %v1205_v43 = vadd.f32 %v1177_v4, %v4926_v44 }
 0x170   : > { %v4979_v45 = vpop.f32.mrf.mxu3  ;;  %1233 = vst.msk [vmem:[#allocation2 + $0xb8] sm:$0xff] %vm452_vm3, %v1205_v43  ;;  %v1341_v47 = vpop.f32.mrf.mxu0 }
 0x171   : > { %v645_v54 = vpop.f32.mrf.mxu1  ;;  %v1436_v28 = vadd.f32 %v1408_v48, %v1341_v47  ;;  %v899_v58 = vpop.f32.mrf.mxu2  ;;  %v1762_v48 = vld [vmem:[%s4487_s16 + $0xc0] sm:$0xff] }
 0x172   : > { %v704_v63 = vadd.f32 %v676_v61, %v645_v54  ;;  %v1659_v38 = vld [vmem:[#allocation2 + $0x8] sm:$0xff] }
 0x173   : > { %1464 = vst.msk [vmem:[#allocation2 + $0x10] sm:$0xff] %vm452_vm3, %v1436_v28  ;;  %v927_v44 = vld [vmem:[#allocation2 + $0xc8] sm:$0xff]  ;;  %4106 = vmatmul.msk.bf16.gmra.mxu0 %vm323_vm2, %v4711_v17  ;;  %4119 = vmatmul.msk.bf16.gmra.mxu1 %vm323_vm2, %v4984_v40 }
 0x174   : > { %732 = vst.msk [vmem:[#allocation2 + $0xd0] sm:$0xff] %vm452_vm3, %v704_v63  ;;  %v955_v41 = vadd.f32 %v927_v44, %v894_v22  ;;  %v2014_v61 = vld [vmem:[%s4487_s16 + $0xc1] sm:$0xff]  ;;  %v2015_v28 = vld [vmem:[%s4487_s16 + $0xc9] sm:$0xff] }
 0x175   : > { %4150 = vmatmul.msk.bf16.gmra.mxu3 %vm323_vm2, %v2030_v33  ;;  %v1178_v56 = vld [vmem:[#allocation2 + $0xc0] sm:$0xff]  ;;  %4135 = vmatmul.msk.bf16.gmra.mxu2 %vm323_vm2, %v1778_v57  ;;  %v1763_v33 = vld [vmem:[%s4487_s16 + $0xc8] sm:$0xff]  ;;  %v1412_v63 = vld [vmem:[#allocation2 + $0x30] sm:$0xff]  ;;  %v5040_v57 = vpack.c.bf16 %v1509_v46, %v1508_v14  ;;  %v2032_v44 = vpack.c.bf16 %v2015_v28, %v2014_v61 }
 0x176   : > { %983 = vst.msk [vmem:[#allocation2 + $0xc8] sm:$0xff] %vm452_vm3, %v955_v41  ;;  %v1206_v23 = vadd.f32 %v1178_v56, %v4940_v53  ;;  %v1264_v61 = vld [vmem:[%s4487_s16 + $0xe1] sm:$0xff]  ;;  %v1265_v28 = vld [vmem:[%s4487_s16 + $0xe9] sm:$0x3f] }
 0x178   : > { %v4996_v60 = vpop.f32.mrf.mxu3  ;;  %1234 = vst.msk [vmem:[#allocation2 + $0xc0] sm:$0xff] %vm452_vm3, %v1206_v23  ;;  %v1343_v17 = vpop.f32.mrf.mxu0 }
 0x179   : > { %v647_v0 = vpop.f32.mrf.mxu1  ;;  %v1437_v31 = vadd.f32 %v1409_v1, %v1343_v17  ;;  %v1840_v27 = vpop.f32.mrf.mxu2 }
 0x17a   : > { %v705_v9 = vadd.f32 %v677_v2, %v647_v0  ;;  %v1660_v23 = vld [vmem:[#allocation2 + $0x10] sm:$0xff]  ;;  %v1780_v0 = vpack.c.bf16 %v1763_v33, %v1762_v48 }
 0x17b   : > { %1465 = vst.msk [vmem:[#allocation2 + $0x18] sm:$0xff] %vm452_vm3, %v1437_v31  ;;  %v928_v53 = vld [vmem:[#allocation2 + $0xd0] sm:$0xff] }
 0x17c   : > { %733 = vst.msk [vmem:[#allocation2 + $0xd8] sm:$0x3f] %vm480_vm4, %v705_v9  ;;  %v956_v8 = vadd.f32 %v928_v53, %v897_v10  ;;  %v1413_v53 = vld [vmem:[#allocation2 + $0x38] sm:$0xff] }
 0x17d   : > { %v1179_v15 = vld [vmem:[#allocation2 + $0xc8] sm:$0xff] }
 0x17e   : > { %984 = vst.msk [vmem:[#allocation2 + $0xd0] sm:$0xff] %vm452_vm3, %v956_v8  ;;  %v1207_v42 = vadd.f32 %v1179_v15, %v4951_v12 }
 0x180   : > { %v5007_v20 = vpop.f32.mrf.mxu3  ;;  %1235 = vst.msk [vmem:[#allocation2 + $0xc8] sm:$0xff] %vm452_vm3, %v1207_v42  ;;  %v1346_v22 = vpop.f32.mrf.mxu0 }
 0x181   : > { %v1438_v24 = vadd.f32 %v1410_v55, %v1346_v22  ;;  %v1588_v25 = vpop.f32.mrf.mxu1  ;;  %v1842_v29 = vpop.f32.mrf.mxu2  ;;  %v1511_v22 = vld [vmem:[%s4487_s16 + $0xba] sm:$0xff] }
 0x182   : > { %v1686_v30 = vadd.f32 %v1658_v35, %v1588_v25  ;;  %v1661_v16 = vld [vmem:[#allocation2 + $0x18] sm:$0xff] }
 0x183   : > { %1466 = vst.msk [vmem:[#allocation2 + $0x20] sm:$0xff] %vm452_vm3, %v1438_v24  ;;  %v929_v12 = vld [vmem:[#allocation2 + $0xd8] sm:$0x3f]  ;;  %4107 = vmatmul.msk.bf16.gmra.mxu0 %vm323_vm2, %v4741_v62  ;;  %4120 = vmatmul.msk.bf16.gmra.mxu1 %vm323_vm2, %v5012_v52  ;;  %v1764_v24 = vld [vmem:[%s4487_s16 + $0xd0] sm:$0xff] }
 0x184   : > { %1714 = vst.msk [vmem:[#allocation2] sm:$0xff] %vm452_vm3, %v1686_v30  ;;  %v957_v34 = vadd.f32 %v929_v12, %v899_v58  ;;  %v1765_v25 = vld [vmem:[%s4487_s16 + $0xd8] sm:$0xff]  ;;  %v5069_v12 = vpack.c.bf16 %v1511_v22, %v1510_v21 }
 0x185   : > { %4151 = vmatmul.msk.bf16.gmra.mxu3 %vm323_vm2, %v2031_v11  ;;  %v1180_v32 = vld [vmem:[#allocation2 + $0xd0] sm:$0xff]  ;;  %4136 = vmatmul.msk.bf16.gmra.mxu2 %vm323_vm2, %v1779_v49  ;;  %v1278_v11 = vpack.c.bf16 %v1263_v3, %v4787_v7  ;;  %v1414_v49 = vld [vmem:[#allocation2 + $0x40] sm:$0xff]  ;;  %v1417_v21 = vld [vmem:[#allocation2 + $0x58] sm:$0xff] }
 0x186   : > { %985 = vst.msk [vmem:[#allocation2 + $0xd8] sm:$0x3f] %vm480_vm4, %v957_v34  ;;  %v1208_v10 = vadd.f32 %v1180_v32, %v4968_v6 }
 0x188   : > { %v5024_v51 = vpop.f32.mrf.mxu3  ;;  %1236 = vst.msk [vmem:[#allocation2 + $0xd0] sm:$0xff] %vm452_vm3, %v1208_v10  ;;  %v1348_v62 = vpop.f32.mrf.mxu0 }
 0x189   : > { %v1439_v13 = vadd.f32 %v1411_v26, %v1348_v62  ;;  %v1590_v4 = vpop.f32.mrf.mxu1  ;;  %v1845_v37 = vpop.f32.mrf.mxu2 }
 0x18a   : > { %v1687_v43 = vadd.f32 %v1659_v38, %v1590_v4  ;;  %v1662_v62 = vld [vmem:[#allocation2 + $0x20] sm:$0xff] }
 0x18b   : > { %1467 = vst.msk [vmem:[#allocation2 + $0x28] sm:$0xff] %vm452_vm3, %v1439_v13  ;;  %v1910_v6 = vld [vmem:[#allocation2] sm:$0xff] }
 0x18c   : > { %1715 = vst.msk [vmem:[#allocation2 + $0x8] sm:$0xff] %vm452_vm3, %v1687_v43  ;;  %v1938_v59 = vadd.f32 %v1910_v6, %v1840_v27 }
 0x18d   : > { %v1181_v5 = vld [vmem:[#allocation2 + $0xd8] sm:$0x3f] }
 0x18e   : > { %1966 = vst.msk [vmem:[#allocation2] sm:$0xff] %vm452_vm3, %v1938_v59  ;;  %v1209_v47 = vadd.f32 %v1181_v5, %v4979_v45  ;;  %v1415_v59 = vld [vmem:[#allocation2 + $0x48] sm:$0xff] }
 0x190   : > { %v5035_v54 = vpop.f32.mrf.mxu3  ;;  %1237 = vst.msk [vmem:[#allocation2 + $0xd8] sm:$0x3f] %vm480_vm4, %v1209_v47  ;;  %v1351_v58 = vpop.f32.mrf.mxu0 }
 0x191   : > { %v1440_v41 = vadd.f32 %v1412_v63, %v1351_v58  ;;  %v1593_v56 = vpop.f32.mrf.mxu1  ;;  %v1847_v17 = vpop.f32.mrf.mxu2  ;;  %v1512_v63 = vld [vmem:[%s4487_s16 + $0xc2] sm:$0xff] }
 0x192   : > { %v1688_v1 = vadd.f32 %v1660_v23, %v1593_v56  ;;  %v1663_v46 = vld [vmem:[#allocation2 + $0x28] sm:$0xff]  ;;  %v1279_v56 = vpack.c.bf16 %v1265_v28, %v1264_v61  ;;  %v1766_v23 = vld [vmem:[%s4487_s16 + $0xe0] sm:$0xff] }
 0x193   : > { %1468 = vst.msk [vmem:[#allocation2 + $0x30] sm:$0xff] %vm452_vm3, %v1440_v41  ;;  %v1911_v45 = vld [vmem:[#allocation2 + $0x8] sm:$0xff]  ;;  %4108 = vmatmul.msk.bf16.gmra.mxu0 %vm323_vm2, %v4769_v36  ;;  %4121 = vmatmul.msk.bf16.gmra.mxu1 %vm323_vm2, %v5040_v57 }
 0x194   : > { %1716 = vst.msk [vmem:[#allocation2 + $0x10] sm:$0xff] %vm452_vm3, %v1688_v1  ;;  %v1939_v2 = vadd.f32 %v1911_v45, %v1842_v29  ;;  %v2016_v29 = vld [vmem:[%s4487_s16 + $0xd1] sm:$0xff] }
 0x195   : > { %4152 = vmatmul.msk.bf16.gmra.mxu3 %vm323_vm2, %v2032_v44  ;;  %v2162_v31 = vld [vmem:[#allocation2] sm:$0xff]  ;;  %4137 = vmatmul.msk.bf16.gmra.mxu2 %vm323_vm2, %v1780_v0  ;;  %v2033_v34 = vpack.c.bf16 %v1263_v3, %v2016_v29  ;;  %v1513_v44 = vld [vmem:[%s4487_s16 + $0xca] sm:$0xff] }
 0x196   : > { %1967 = vst.msk [vmem:[#allocation2 + $0x8] sm:$0xff] %vm452_vm3, %v1939_v2  ;;  %v2190_v27 = vadd.f32 %v2162_v31, %v4996_v60  ;;  %v2019_v0 = vld [vmem:[%s4487_s16 + $0xe9] sm:$0xff]  ;;  %v5097_v31 = vpack.c.bf16 %v1513_v44, %v1512_v63 }
 0x197   : > { %v1416_v2 = vld [vmem:[#allocation2 + $0x50] sm:$0xff] }
 0x198   : > { %v5052_v9 = vpop.f32.mrf.mxu3  ;;  %2218 = vst.msk [vmem:[#allocation2] sm:$0xff] %vm452_vm3, %v2190_v27  ;;  %v1353_v36 = vpop.f32.mrf.mxu0  ;;  %v2034_v27 = vpack.c.bf16 %v2019_v0, %v1264_v61 }
 0x199   : > { %v1441_v8 = vadd.f32 %v1413_v53, %v1353_v36  ;;  %v1595_v15 = vpop.f32.mrf.mxu1  ;;  %v1850_v18 = vpop.f32.mrf.mxu2 }
 0x19a   : > { %v1689_v42 = vadd.f32 %v1661_v16, %v1595_v15 }
 0x19b   : > { %1469 = vst.msk [vmem:[#allocation2 + $0x38] sm:$0xff] %vm452_vm3, %v1441_v8  ;;  %v1912_v60 = vld [vmem:[#allocation2 + $0x10] sm:$0xff] }
 0x19c   : > { %1717 = vst.msk [vmem:[#allocation2 + $0x18] sm:$0xff] %vm452_vm3, %v1689_v42  ;;  %v1940_v19 = vadd.f32 %v1912_v60, %v1845_v37  ;;  %v1664_v8 = vld [vmem:[#allocation2 + $0x30] sm:$0xff] }
 0x19d   : > { %v2163_v50 = vld [vmem:[#allocation2 + $0x8] sm:$0xff] }
 0x19e   : > { %1968 = vst.msk [vmem:[#allocation2 + $0x10] sm:$0xff] %vm452_vm3, %v1940_v19  ;;  %v2191_v55 = vadd.f32 %v2163_v50, %v5007_v20  ;;  %v1781_v20 = vpack.c.bf16 %v1765_v25, %v1764_v24 }
 0x1a0   : > { %v5065_v35 = vpop.f32.mrf.mxu3  ;;  %2219 = vst.msk [vmem:[#allocation2 + $0x8] sm:$0xff] %vm452_vm3, %v2191_v55  ;;  %v1356_v30 = vpop.f32.mrf.mxu0 }
 0x1a1   : > { %v1442_v32 = vadd.f32 %v1414_v49, %v1356_v30  ;;  %v1598_v10 = vpop.f32.mrf.mxu1  ;;  %v1852_v26 = vpop.f32.mrf.mxu2  ;;  %v2246_v30 = vld [vmem:[%s4487_s16 + $0x22] sm:$0xff]  ;;  %v2247_v49 = vld [vmem:[%s4487_s16 + $0x2a] sm:$0xff] }
 0x1a2   : > { %v1690_v13 = vadd.f32 %v1662_v62, %v1598_v10  ;;  %v1515_v10 = vld [vmem:[%s4487_s16 + $0xda] sm:$0xff] }
 0x1a3   : > { %1470 = vst.msk [vmem:[#allocation2 + $0x40] sm:$0xff] %vm452_vm3, %v1442_v32  ;;  %v1913_v7 = vld [vmem:[#allocation2 + $0x18] sm:$0xff]  ;;  %4109 = vmatmul.msk.bf16.gmra.mxu0 %vm323_vm2, %v1278_v11  ;;  %4122 = vmatmul.msk.bf16.gmra.mxu1 %vm323_vm2, %v5069_v12 }
 0x1a4   : > { %1718 = vst.msk [vmem:[#allocation2 + $0x20] sm:$0xff] %vm452_vm3, %v1690_v13  ;;  %v1941_v4 = vadd.f32 %v1913_v7, %v1847_v17  ;;  %v1767_v17 = vld [vmem:[%s4487_s16 + $0xe8] sm:$0xff]  ;;  %v1665_v11 = vld [vmem:[#allocation2 + $0x38] sm:$0xff]  ;;  %v2274_v13 = vpack.c.bf16 %v2247_v49, %v2246_v30 }
 0x1a5   : > { %4153 = vmatmul.msk.bf16.gmra.mxu3 %vm323_vm2, %v2033_v34  ;;  %v2164_v38 = vld [vmem:[#allocation2 + $0x10] sm:$0xff]  ;;  %4138 = vmatmul.msk.bf16.gmra.mxu2 %vm323_vm2, %v1781_v20  ;;  %v1769_v20 = vld [vmem:[%s4487_s16 + $0xf8] sm:$0x3f] }
 0x1a6   : > { %1969 = vst.msk [vmem:[#allocation2 + $0x18] sm:$0xff] %vm452_vm3, %v1941_v4  ;;  %v2192_v37 = vadd.f32 %v2164_v38, %v5024_v51  ;;  %v1514_v32 = vld [vmem:[%s4487_s16 + $0xd2] sm:$0xff] }
 0x1a7   : > { %v2020_v4 = vld [vmem:[%s4487_s16 + $0xf1] sm:$0xff]  ;;  %v2021_v38 = vld [vmem:[%s4487_s16 + $0xf9] sm:$0x3f] }
 0x1a8   : > { %v5080_v43 = vpop.f32.mrf.mxu3  ;;  %2220 = vst.msk [vmem:[#allocation2 + $0x10] sm:$0xff] %vm452_vm3, %v2192_v37  ;;  %v1358_v6 = vpop.f32.mrf.mxu0 }
 0x1a9   : > { %v1443_v5 = vadd.f32 %v1415_v59, %v1358_v6  ;;  %v1600_v14 = vpop.f32.mrf.mxu1  ;;  %v1855_v47 = vpop.f32.mrf.mxu2  ;;  %v1418_v6 = vld [vmem:[#allocation2 + $0x60] sm:$0xff]  ;;  %v5126_v59 = vpack.c.bf16 %v1515_v10, %v1514_v32 }
 0x1aa   : > { %v1691_v48 = vadd.f32 %v1663_v46, %v1600_v14  ;;  %v4350_v32 = vld [vmem:[%s5821_s3] sm:$0x10] }
 0x1ab   : > { %1471 = vst.msk [vmem:[#allocation2 + $0x48] sm:$0xff] %vm452_vm3, %v1443_v5  ;;  %v1914_v51 = vld [vmem:[#allocation2 + $0x20] sm:$0xff]  ;;  %v2035_v5 = vpack.c.bf16 %v2021_v38, %v2020_v4 }
 0x1ac   : > { %1719 = vst.msk [vmem:[#allocation2 + $0x28] sm:$0xff] %vm452_vm3, %v1691_v48  ;;  %v1942_v33 = vadd.f32 %v1914_v51, %v1850_v18  ;;  %v1782_v18 = vpack.c.bf16 %v1767_v17, %v1766_v23  ;;  %v2250_v38 = vld [vmem:[%s4487_s16 + $0x42] sm:$0xff] }
 0x1ad   : > { %v2165_v58 = vld [vmem:[#allocation2 + $0x18] sm:$0xff] }
 0x1ae   : > { %1970 = vst.msk [vmem:[#allocation2 + $0x20] sm:$0xff] %vm452_vm3, %v1942_v33  ;;  %v2193_v41 = vadd.f32 %v2165_v58, %v5035_v54 }
 0x1b0   : > { %v5093_v1 = vpop.f32.mrf.mxu3  ;;  %2221 = vst.msk [vmem:[#allocation2 + $0x18] sm:$0xff] %vm452_vm3, %v2193_v41  ;;  %v1361_v45 = vpop.f32.mrf.mxu0  ;;  %v1419_v41 = vld [vmem:[#allocation2 + $0x68] sm:$0xff] }
 0x1b1   : > { %v1444_v36 = vadd.f32 %v1416_v2, %v1361_v45  ;;  %v1603_v53 = vpop.f32.mrf.mxu1  ;;  %v1857_v15 = vpop.f32.mrf.mxu2 }
 0x1b2   : > { %v1692_v16 = vadd.f32 %v1664_v8, %v1603_v53  ;;  %v1667_v17 = vld [vmem:[#allocation2 + $0x48] sm:$0xff] }
 0x1b3   : > { %1472 = vst.msk [vmem:[#allocation2 + $0x50] sm:$0xff] %vm452_vm3, %v1444_v36  ;;  %v1915_v54 = vld [vmem:[#allocation2 + $0x28] sm:$0xff]  ;;  %4110 = vmatmul.msk.bf16.gmra.mxu0 %vm323_vm2, %v1279_v56  ;;  %4123 = vmatmul.msk.bf16.gmra.mxu1 %vm323_vm2, %v5097_v31  ;;  %v2249_v36 = vld [vmem:[%s4487_s16 + $0x3a] sm:$0xff] }
 0x1b4   : > { %1720 = vst.msk [vmem:[#allocation2 + $0x30] sm:$0xff] %vm452_vm3, %v1692_v16  ;;  %v1943_v42 = vadd.f32 %v1915_v54, %v1852_v26  ;;  %v1768_v26 = vld [vmem:[%s4487_s16 + $0xf0] sm:$0xff]  ;;  %v5145_v8 = vld [vmem:[%s4487_s16 + $0xe2] sm:$0xff] }
 0x1b5   : > { %4154 = vmatmul.msk.bf16.gmra.mxu3 %vm323_vm2, %v2034_v27  ;;  %v2166_v60 = vld [vmem:[#allocation2 + $0x20] sm:$0xff]  ;;  %4139 = vmatmul.msk.bf16.gmra.mxu2 %vm323_vm2, %v1782_v18  ;;  %v2248_v27 = vld [vmem:[%s4487_s16 + $0x32] sm:$0xff] }
 0x1b6   : > { %1971 = vst.msk [vmem:[#allocation2 + $0x28] sm:$0xff] %vm452_vm3, %v1943_v42  ;;  %v2194_v19 = vadd.f32 %v2166_v60, %v5052_v9  ;;  %v2275_v18 = vpack.c.bf16 %v2249_v36, %v2248_v27  ;;  %v1420_v60 = vld [vmem:[#allocation2 + $0x70] sm:$0xff] }
 0x1b8   : > { %v5108_v3 = vpop.f32.mrf.mxu3  ;;  %2222 = vst.msk [vmem:[#allocation2 + $0x20] sm:$0xff] %vm452_vm3, %v2194_v19  ;;  %v1363_v50 = vpop.f32.mrf.mxu0 }
 0x1b9   : > { %v1445_v22 = vadd.f32 %v1417_v21, %v1363_v50  ;;  %v1605_v55 = vpop.f32.mrf.mxu1  ;;  %v1860_v24 = vpop.f32.mrf.mxu2 }
 0x1ba   : > { %v1693_v25 = vadd.f32 %v1665_v11, %v1605_v55 }
 0x1bb   : > { %1473 = vst.msk [vmem:[#allocation2 + $0x58] sm:$0xff] %vm452_vm3, %v1445_v22  ;;  %v1916_v9 = vld [vmem:[#allocation2 + $0x30] sm:$0xff] }
 0x1bc   : > { %1721 = vst.msk [vmem:[#allocation2 + $0x38] sm:$0xff] %vm452_vm3, %v1693_v25  ;;  %v1944_v29 = vadd.f32 %v1916_v9, %v1855_v47  ;;  %v1666_v47 = vld [vmem:[#allocation2 + $0x40] sm:$0xff]  ;;  %v1668_v22 = vld [vmem:[#allocation2 + $0x50] sm:$0xff] }
 0x1bd   : > { %v2167_v34 = vld [vmem:[#allocation2 + $0x28] sm:$0xff] }
 0x1be   : > { %1972 = vst.msk [vmem:[#allocation2 + $0x30] sm:$0xff] %vm452_vm3, %v1944_v29  ;;  %v2195_v62 = vadd.f32 %v2167_v34, %v5065_v35  ;;  %v1783_v35 = vpack.c.bf16 %v1769_v20, %v1768_v26  ;;  %v1421_v29 = vld [vmem:[#allocation2 + $0x78] sm:$0xff]  ;;  %v4184_v34 = vld [vmem:[%s5821_s3] sm:$0xf] }
 0x1c0   : > { %v5121_v7 = vpop.f32.mrf.mxu3  ;;  %2223 = vst.msk [vmem:[#allocation2 + $0x28] sm:$0xff] %vm452_vm3, %v2195_v62  ;;  %v1366_v37 = vpop.f32.mrf.mxu0 }
 0x1c1   : > { %v1446_v14 = vadd.f32 %v1418_v6, %v1366_v37  ;;  %v1608_v46 = vpop.f32.mrf.mxu1  ;;  %v1862_v48 = vpop.f32.mrf.mxu2 }
 0x1c2   : > { %v1694_v51 = vadd.f32 %v1666_v47, %v1608_v46  ;;  %v4352_v46 = vld [vmem:[%s5821_s3 + $0x10] sm:$0x10] }
 0x1c3   : > { %1474 = vst.msk [vmem:[#allocation2 + $0x60] sm:$0xff] %vm452_vm3, %v1446_v14  ;;  %v1917_v33 = vld [vmem:[#allocation2 + $0x38] sm:$0xff]  ;;  %4157 = vmatmul.msk.bf16.vlgmr.msra.gmra.mxu0 %vm323_vm2, %v2274_v13  ;;  %4124 = vmatmul.msk.bf16.gmra.mxu1 %vm323_vm2, %v5126_v59  ;;  %v4185_v13 = vor.u32 %v4350_v32, %v4184_v34  ;;  %v4195_v14 = vld [vmem:[%s5821_s3 + $0x10] sm:$0xf] }
 0x1c4   : > { %1722 = vst.msk [vmem:[#allocation2 + $0x40] sm:$0xff] %vm452_vm3, %v1694_v51  ;;  %v1945_v61 = vadd.f32 %v1917_v33, %v1857_v15  ;;  %v1517_v15 = vld [vmem:[%s4487_s16 + $0xea] sm:$0x3f] }
 0x1c5   : > { %4155 = vmatmul.msk.bf16.gmra.mxu3 %vm323_vm2, %v2035_v5  ;;  %v2168_v28 = vld [vmem:[#allocation2 + $0x30] sm:$0xff]  ;;  %4140 = vmatmul.msk.bf16.gmra.mxu2 %vm323_vm2, %v1783_v35  ;;  %v1531_v19 = vpack.c.bf16 %v1517_v15, %v5145_v8  ;;  %v2902_v37 = vsel %vm2849_vm5, %v4185_v13, 0  ;;  %v4175_v35 = vld [vmem:[%s5821_s3 + $0x8] sm:$0xf]  ;;  %v4351_v33 = vld [vmem:[%s5821_s3 + $0x8] sm:$0x10] }
 0x1c6   : > { %1973 = vst.msk [vmem:[#allocation2 + $0x38] sm:$0xff] %vm452_vm3, %v1945_v61  ;;  %v2196_v58 = vadd.f32 %v2168_v28, %v5080_v43  ;;  %v2251_v5 = vld [vmem:[%s4487_s16 + $0x4a] sm:$0xff]  ;;  %2911 = vmatpush.bf16.msra.mxu2 %v2902_v37 }
 0x1c7   : > { %v2276_v61 = vpack.c.bf16 %v2251_v5, %v2250_v38  ;;  %v1425_v38 = vld [vmem:[#allocation2 + $0x98] sm:$0xff] }
 0x1c8   : > { %v5137_v63 = vpop.f32.mrf.mxu3  ;;  %2224 = vst.msk [vmem:[#allocation2 + $0x30] sm:$0xff] %vm452_vm3, %v2196_v58  ;;  %v1368_v44 = vpop.f32.mrf.mxu0  ;;  %v4176_v58 = vor.u32 %v4351_v33, %v4175_v35  ;;  %v2255_v35 = vld [vmem:[%s4487_s16 + $0x6a] sm:$0xff] }
 0x1c9   : > { %v1447_v56 = vadd.f32 %v1419_v41, %v1368_v44  ;;  %v1610_v23 = vpop.f32.mrf.mxu1  ;;  %v1865_v0 = vpop.f32.mrf.mxu2 }
 0x1ca   : > { %v1695_v45 = vadd.f32 %v1667_v17, %v1610_v23  ;;  %v1670_v17 = vld [vmem:[#allocation2 + $0x60] sm:$0xff] }
 0x1cb   : > { %1475 = vst.msk [vmem:[#allocation2 + $0x68] sm:$0xff] %vm452_vm3, %v1447_v56  ;;  %v1918_v2 = vld [vmem:[#allocation2 + $0x40] sm:$0xff] }
 0x1cc   : > { %1723 = vst.msk [vmem:[#allocation2 + $0x48] sm:$0xff] %vm452_vm3, %v1695_v45  ;;  %v1946_v43 = vadd.f32 %v1918_v2, %v1860_v24  ;;  %v1422_v56 = vld [vmem:[#allocation2 + $0x80] sm:$0xff]  ;;  %v2851_v45 = vsel %vm2849_vm5, %v4176_v58, 0 }
 0x1cd   : > { %v2169_v53 = vld [vmem:[#allocation2 + $0x38] sm:$0xff]  ;;  %2860 = vmatpush.bf16.msrb.mxu1 %v2851_v45 }
 0x1ce   : > { %1974 = vst.msk [vmem:[#allocation2 + $0x40] sm:$0xff] %vm452_vm3, %v1946_v43  ;;  %v2197_v16 = vadd.f32 %v2169_v53, %v5093_v1 }
 0x1d0   : > { %v5150_v54 = vpop.f32.mrf.mxu3  ;;  %2225 = vst.msk [vmem:[#allocation2 + $0x38] sm:$0xff] %vm452_vm3, %v2197_v16  ;;  %v1371_v42 = vpop.f32.mrf.mxu0  ;;  %v1423_v16 = vld [vmem:[#allocation2 + $0x88] sm:$0xff] }
 0x1d1   : > { %v1448_v50 = vadd.f32 %v1420_v60, %v1371_v42  ;;  %v1613_v21 = vpop.f32.mrf.mxu1  ;;  %v1867_v55 = vpop.f32.mrf.mxu2 }
 0x1d2   : > { %v1696_v11 = vadd.f32 %v1668_v22, %v1613_v21 }
 0x1d3   : > { %1476 = vst.msk [vmem:[#allocation2 + $0x70] sm:$0xff] %vm452_vm3, %v1448_v50  ;;  %v1919_v24 = vld [vmem:[#allocation2 + $0x48] sm:$0xff]  ;;  %4158 = vmatmul.msk.bf16.gmra.mxu0 %vm323_vm2, %v2275_v18  ;;  %4125 = vmatmul.msk.bf16.gmra.mxu1 %vm323_vm2, %v1531_v19 }
 0x1d4   : > { %1724 = vst.msk [vmem:[#allocation2 + $0x50] sm:$0xff] %vm452_vm3, %v1696_v11  ;;  %v1947_v1 = vadd.f32 %v1919_v24, %v1862_v48  ;;  %v4196_v48 = vor.u32 %v4352_v46, %v4195_v14  ;;  %v1671_v19 = vld [vmem:[#allocation2 + $0x68] sm:$0xff]  ;;  %v2252_v11 = vld [vmem:[%s4487_s16 + $0x52] sm:$0xff]  ;;  %v2253_v24 = vld [vmem:[%s4487_s16 + $0x5a] sm:$0xff] }
 0x1d5   : > { %v2170_v25 = vld [vmem:[#allocation2 + $0x40] sm:$0xff] }
 0x1d6   : > { %1975 = vst.msk [vmem:[#allocation2 + $0x48] sm:$0xff] %vm452_vm3, %v1947_v1  ;;  %v2198_v9 = vadd.f32 %v2170_v25, %v5108_v3  ;;  %v1669_v3 = vld [vmem:[#allocation2 + $0x58] sm:$0xff]  ;;  %v2976_v28 = vsel %vm2849_vm5, %v4196_v48, 0  ;;  %v2277_v25 = vpack.c.bf16 %v2253_v24, %v2252_v11  ;;  %v1428_v11 = vld [vmem:[#allocation2 + $0xb0] sm:$0xff] }
 0x1d7   : > { %2985 = vmatpush.bf16.msra.mxu3 %v2976_v28 }
 0x1d8   : > { %v5160_v30 = vpop.f32.mrf.mxu3  ;;  %2226 = vst.msk [vmem:[#allocation2 + $0x40] sm:$0xff] %vm452_vm3, %v2198_v9  ;;  %v1373_v49 = vpop.f32.mrf.mxu0 }
 0x1d9   : > { %v1449_v10 = vadd.f32 %v1421_v29, %v1373_v49  ;;  %v1615_v62 = vpop.f32.mrf.mxu1  ;;  %v1870_v26 = vpop.f32.mrf.mxu2  ;;  %v1424_v29 = vld [vmem:[#allocation2 + $0x90] sm:$0xff] }
 0x1da   : > { %v1697_v20 = vadd.f32 %v1669_v3, %v1615_v62  ;;  %v1672_v32 = vld [vmem:[#allocation2 + $0x70] sm:$0xff] }
 0x1db   : > { %1477 = vst.msk [vmem:[#allocation2 + $0x78] sm:$0xff] %vm452_vm3, %v1449_v10  ;;  %v1920_v4 = vld [vmem:[#allocation2 + $0x50] sm:$0xff] }
 0x1dc   : > { %1725 = vst.msk [vmem:[#allocation2 + $0x58] sm:$0xff] %vm452_vm3, %v1697_v20  ;;  %v1948_v6 = vadd.f32 %v1920_v4, %v1865_v0 }
 0x1dd   : > { %v2171_v47 = vld [vmem:[#allocation2 + $0x48] sm:$0xff] }
 0x1de   : > { %1976 = vst.msk [vmem:[#allocation2 + $0x50] sm:$0xff] %vm452_vm3, %v1948_v6  ;;  %v2199_v51 = vadd.f32 %v2171_v47, %v5121_v7 }
 0x1e0   : > { %v5189_v44 = vpop.f32.mrf.mxu3  ;;  %2227 = vst.msk [vmem:[#allocation2 + $0x48] sm:$0xff] %vm452_vm3, %v2199_v51  ;;  %v1376_v41 = vpop.f32.mrf.mxu0  ;;  %v2254_v51 = vld [vmem:[%s4487_s16 + $0x62] sm:$0xff] }
 0x1e1   : > { %v1450_v7 = vadd.f32 %v1422_v56, %v1376_v41  ;;  %v1618_v23 = vpop.f32.mrf.mxu1  ;;  %v1872_v0 = vpop.f32.mrf.mxu2  ;;  %v2278_v28 = vpack.c.bf16 %v2255_v35, %v2254_v51  ;;  %v1426_v41 = vld [vmem:[#allocation2 + $0xa0] sm:$0xff] }
 0x1e2   : > { %v1698_v2 = vadd.f32 %v1670_v17, %v1618_v23  ;;  %v1673_v5 = vld [vmem:[#allocation2 + $0x78] sm:$0xff] }
 0x1e3   : > { %1478 = vst.msk [vmem:[#allocation2 + $0x80] sm:$0xff] %vm452_vm3, %v1450_v7  ;;  %v1921_v43 = vld [vmem:[#allocation2 + $0x58] sm:$0xff]  ;;  %4159 = vmatmul.msk.bf16.gmra.mxu0 %vm323_vm2, %v2276_v61 }
 0x1e4   : > { %1726 = vst.msk [vmem:[#allocation2 + $0x60] sm:$0xff] %vm452_vm3, %v1698_v2  ;;  %v1949_v27 = vadd.f32 %v1921_v43, %v1867_v55 }
 0x1e5   : > { %v2172_v36 = vld [vmem:[#allocation2 + $0x50] sm:$0xff] }
 0x1e6   : > { %1977 = vst.msk [vmem:[#allocation2 + $0x58] sm:$0xff] %vm452_vm3, %v1949_v27  ;;  %v2200_v53 = vadd.f32 %v2172_v36, %v5137_v63 }
 0x1e8   : > { %2228 = vst.msk [vmem:[#allocation2 + $0x50] sm:$0xff] %vm452_vm3, %v2200_v53  ;;  %v1378_v15 = vpop.f32.mrf.mxu0  ;;  %v5199_v18 = vpop.f32.mrf.mxu3  ;;  %v1427_v53 = vld [vmem:[#allocation2 + $0xa8] sm:$0xff] }
 0x1e9   : > { %v1451_v42 = vadd.f32 %v1423_v16, %v1378_v15  ;;  %v1620_v60 = vpop.f32.mrf.mxu1  ;;  %v1875_v50 = vpop.f32.mrf.mxu2 }
 0x1ea   : > { %v1699_v21 = vadd.f32 %v1671_v19, %v1620_v60  ;;  %v1674_v23 = vld [vmem:[#allocation2 + $0x80] sm:$0xff] }
 0x1eb   : > { %1479 = vst.msk [vmem:[#allocation2 + $0x88] sm:$0xff] %vm452_vm3, %v1451_v42  ;;  %v1922_v22 = vld [vmem:[#allocation2 + $0x60] sm:$0xff] }
 0x1ec   : > { %1727 = vst.msk [vmem:[#allocation2 + $0x68] sm:$0xff] %vm452_vm3, %v1699_v21  ;;  %v1950_v55 = vadd.f32 %v1922_v22, %v1870_v26 }
 0x1ed   : > { %v2173_v63 = vld [vmem:[#allocation2 + $0x58] sm:$0xff] }
 0x1ee   : > { %1978 = vst.msk [vmem:[#allocation2 + $0x60] sm:$0xff] %vm452_vm3, %v1950_v55  ;;  %v2201_v1 = vadd.f32 %v2173_v63, %v5150_v54 }
 0x1f0   : > { %2229 = vst.msk [vmem:[#allocation2 + $0x58] sm:$0xff] %vm452_vm3, %v2201_v1  ;;  %v1381_v9 = vpop.f32.mrf.mxu0  ;;  %v2129_v3 = vpop.f32.mrf.mxu3 }
 0x1f1   : > { %v1452_v49 = vadd.f32 %v1424_v29, %v1381_v9  ;;  %v1623_v34 = vpop.f32.mrf.mxu1  ;;  %v1877_v10 = vpop.f32.mrf.mxu2 }
 0x1f2   : > { %v1700_v62 = vadd.f32 %v1672_v32, %v1623_v34  ;;  %v1675_v42 = vld [vmem:[#allocation2 + $0x88] sm:$0xff] }
 0x1f3   : > { %1480 = vst.msk [vmem:[#allocation2 + $0x90] sm:$0xff] %vm452_vm3, %v1452_v49  ;;  %v1923_v26 = vld [vmem:[#allocation2 + $0x68] sm:$0xff]  ;;  %4160 = vmatmul.msk.bf16.gmra.mxu0 %vm323_vm2, %v2277_v25 }
 0x1f4   : > { %1728 = vst.msk [vmem:[#allocation2 + $0x70] sm:$0xff] %vm452_vm3, %v1700_v62  ;;  %v1951_v13 = vadd.f32 %v1923_v26, %v1872_v0 }
 0x1f5   : > { %v2174_v54 = vld [vmem:[#allocation2 + $0x60] sm:$0xff] }
 0x1f6   : > { %1979 = vst.msk [vmem:[#allocation2 + $0x68] sm:$0xff] %vm452_vm3, %v1951_v13  ;;  %v2202_v20 = vadd.f32 %v2174_v54, %v5160_v30 }
 0x1f8   : > { %2230 = vst.msk [vmem:[#allocation2 + $0x60] sm:$0xff] %vm452_vm3, %v2202_v20  ;;  %v1383_v4 = vpop.f32.mrf.mxu0  ;;  %v2132_v33 = vpop.f32.mrf.mxu3 }
 0x1f9   : > { %v1453_v37 = vadd.f32 %v1425_v38, %v1383_v4  ;;  %v1625_v6 = vpop.f32.mrf.mxu1  ;;  %v1880_v14 = vpop.f32.mrf.mxu2 }
 0x1fa   : > { %v1701_v46 = vadd.f32 %v1673_v5, %v1625_v6  ;;  %v1676_v25 = vld [vmem:[#allocation2 + $0x90] sm:$0xff] }
 0x1fb   : > { %1481 = vst.msk [vmem:[#allocation2 + $0x98] sm:$0xff] %vm452_vm3, %v1453_v37  ;;  %v1924_v47 = vld [vmem:[#allocation2 + $0x70] sm:$0xff] }
 0x1fc   : > { %1729 = vst.msk [vmem:[#allocation2 + $0x78] sm:$0xff] %vm452_vm3, %v1701_v46  ;;  %v1952_v48 = vadd.f32 %v1924_v47, %v1875_v50  ;;  %v1430_v46 = vld [vmem:[#allocation2 + $0xc0] sm:$0xff] }
 0x1fd   : > { %v2175_v61 = vld [vmem:[#allocation2 + $0x68] sm:$0xff] }
 0x1fe   : > { %1980 = vst.msk [vmem:[#allocation2 + $0x70] sm:$0xff] %vm452_vm3, %v1952_v48  ;;  %v2203_v30 = vadd.f32 %v2175_v61, %v5189_v44 }
 0x200   : > { %2231 = vst.msk [vmem:[#allocation2 + $0x68] sm:$0xff] %vm452_vm3, %v2203_v30  ;;  %v1386_v58 = vpop.f32.mrf.mxu0  ;;  %v2134_v27 = vpop.f32.mrf.mxu3 }
 0x201   : > { %v1454_v56 = vadd.f32 %v1426_v41, %v1386_v58  ;;  %v1628_v7 = vpop.f32.mrf.mxu1  ;;  %v1882_v17 = vpop.f32.mrf.mxu2 }
 0x202   : > { %v1702_v0 = vadd.f32 %v1674_v23, %v1628_v7  ;;  %v1677_v54 = vld [vmem:[#allocation2 + $0x98] sm:$0xff]  ;;  %v1431_v7 = vld [vmem:[#allocation2 + $0xc8] sm:$0xff] }
 0x203   : > { %1482 = vst.msk [vmem:[#allocation2 + $0xa0] sm:$0xff] %vm452_vm3, %v1454_v56  ;;  %v1925_v45 = vld [vmem:[#allocation2 + $0x78] sm:$0xff]  ;;  %4161 = vmatmul.msk.bf16.gmra.mxu0 %vm323_vm2, %v2278_v28 }
 0x204   : > { %1730 = vst.msk [vmem:[#allocation2 + $0x80] sm:$0xff] %vm452_vm3, %v1702_v0  ;;  %v1953_v2 = vadd.f32 %v1925_v45, %v1877_v10 }
 0x205   : > { %v2176_v43 = vld [vmem:[#allocation2 + $0x70] sm:$0xff] }
 0x206   : > { %1981 = vst.msk [vmem:[#allocation2 + $0x78] sm:$0xff] %vm452_vm3, %v1953_v2  ;;  %v2204_v44 = vadd.f32 %v2176_v43, %v5199_v18 }
 0x208   : > { %2232 = vst.msk [vmem:[#allocation2 + $0x70] sm:$0xff] %vm452_vm3, %v2204_v44  ;;  %v1388_v36 = vpop.f32.mrf.mxu0  ;;  %v2137_v24 = vpop.f32.mrf.mxu3 }
 0x209   : > { %v1455_v15 = vadd.f32 %v1427_v53, %v1388_v36  ;;  %v1630_v16 = vpop.f32.mrf.mxu1  ;;  %v1885_v60 = vpop.f32.mrf.mxu2 }
 0x20a   : > { %v1703_v19 = vadd.f32 %v1675_v42, %v1630_v16  ;;  %v1678_v51 = vld [vmem:[#allocation2 + $0xa0] sm:$0xff] }
 0x20b   : > { %1483 = vst.msk [vmem:[#allocation2 + $0xa8] sm:$0xff] %vm452_vm3, %v1455_v15  ;;  %v1926_v50 = vld [vmem:[#allocation2 + $0x80] sm:$0xff]  ;;  %v1432_v15 = vld [vmem:[#allocation2 + $0xd0] sm:$0xff] }
 0x20c   : > { %1731 = vst.msk [vmem:[#allocation2 + $0x88] sm:$0xff] %vm452_vm3, %v1703_v19  ;;  %v1954_v21 = vadd.f32 %v1926_v50, %v1880_v14 }
 0x20d   : > { %v2177_v22 = vld [vmem:[#allocation2 + $0x78] sm:$0xff] }
 0x20e   : > { %1982 = vst.msk [vmem:[#allocation2 + $0x80] sm:$0xff] %vm452_vm3, %v1954_v21  ;;  %v2205_v18 = vadd.f32 %v2177_v22, %v2129_v3  ;;  %v1429_v3 = vld [vmem:[#allocation2 + $0xb8] sm:$0xff] }
 0x210   : > { %2233 = vst.msk [vmem:[#allocation2 + $0x78] sm:$0xff] %vm452_vm3, %v2205_v18  ;;  %v1391_v55 = vpop.f32.mrf.mxu0  ;;  %v2139_v4 = vpop.f32.mrf.mxu3 }
 0x211   : > { %v1456_v63 = vadd.f32 %v1428_v11, %v1391_v55  ;;  %v1633_v1 = vpop.f32.mrf.mxu1  ;;  %v1887_v9 = vpop.f32.mrf.mxu2  ;;  %v1433_v11 = vld [vmem:[#allocation2 + $0xd8] sm:$0x3f] }
 0x212   : > { %v1704_v29 = vadd.f32 %v1676_v25, %v1633_v1  ;;  %v1679_v0 = vld [vmem:[#allocation2 + $0xa8] sm:$0xff] }
 0x213   : > { %1484 = vst.msk [vmem:[#allocation2 + $0xb0] sm:$0xff] %vm452_vm3, %v1456_v63  ;;  %v1927_v49 = vld [vmem:[#allocation2 + $0x88] sm:$0xff]  ;;  %4162 = vmatmul.msk.bf16.gmra.mxu0 %vm323_vm2, %v4956_v39 }
 0x214   : > { %1732 = vst.msk [vmem:[#allocation2 + $0x90] sm:$0xff] %vm452_vm3, %v1704_v29  ;;  %v1955_v34 = vadd.f32 %v1927_v49, %v1882_v17 }
 0x215   : > { %v2178_v32 = vld [vmem:[#allocation2 + $0x80] sm:$0xff] }
 0x216   : > { %1983 = vst.msk [vmem:[#allocation2 + $0x88] sm:$0xff] %vm452_vm3, %v1955_v34  ;;  %v2206_v10 = vadd.f32 %v2178_v32, %v2132_v33 }
 0x218   : > { %2234 = vst.msk [vmem:[#allocation2 + $0x80] sm:$0xff] %vm452_vm3, %v2206_v10  ;;  %v1393_v62 = vpop.f32.mrf.mxu0  ;;  %v2142_v30 = vpop.f32.mrf.mxu3 }
 0x219   : > { %v1457_v26 = vadd.f32 %v1429_v3, %v1393_v62  ;;  %v1635_v13 = vpop.f32.mrf.mxu1  ;;  %v1890_v39 = vpop.f32.mrf.mxu2  ;;  %v2414_v62 = vld [vmem:[#allocation2] sm:$0xff] }
 0x21a   : > { %v1705_v20 = vadd.f32 %v1677_v54, %v1635_v13 }
 0x21b   : > { %1485 = vst.msk [vmem:[#allocation2 + $0xb8] sm:$0xff] %vm452_vm3, %v1457_v26  ;;  %v1928_v38 = vld [vmem:[#allocation2 + $0x90] sm:$0xff] }
 0x21c   : > { %1733 = vst.msk [vmem:[#allocation2 + $0x98] sm:$0xff] %vm452_vm3, %v1705_v20  ;;  %v1956_v37 = vadd.f32 %v1928_v38, %v1885_v60  ;;  %v1680_v60 = vld [vmem:[#allocation2 + $0xb0] sm:$0xff] }
 0x21d   : > { %v2179_v6 = vld [vmem:[#allocation2 + $0x88] sm:$0xff] }
 0x21e   : > { %1984 = vst.msk [vmem:[#allocation2 + $0x90] sm:$0xff] %vm452_vm3, %v1956_v37  ;;  %v2207_v5 = vadd.f32 %v2179_v6, %v2134_v27 }
 0x220   : > { %2235 = vst.msk [vmem:[#allocation2 + $0x88] sm:$0xff] %vm452_vm3, %v2207_v5  ;;  %v1396_v14 = vpop.f32.mrf.mxu0  ;;  %v2144_v27 = vpop.f32.mrf.mxu3  ;;  %v5269_v5 = vld [vmem:[%s5820_s2] ss:$0 sm:$0xff] }
 0x221   : > { %v1458_v47 = vadd.f32 %v1430_v46, %v1396_v14  ;;  %v1638_v48 = vpop.f32.mrf.mxu1  ;;  %v1892_v58 = vpop.f32.mrf.mxu2  ;;  %v2415_v46 = vld [vmem:[#allocation2 + $0x8] sm:$0xff] }
 0x222   : > { %v1706_v35 = vadd.f32 %v1678_v51, %v1638_v48  ;;  %v1681_v25 = vld [vmem:[#allocation2 + $0xb8] sm:$0xff] }
 0x223   : > { %1486 = vst.msk [vmem:[#allocation2 + $0xc0] sm:$0xff] %vm452_vm3, %v1458_v47  ;;  %v1929_v33 = vld [vmem:[#allocation2 + $0x98] sm:$0xff]  ;;  %4163 = vmatmul.msk.bf16.gmra.mxu0 %vm323_vm2, %v4984_v40 }
 0x224   : > { %1734 = vst.msk [vmem:[#allocation2 + $0xa0] sm:$0xff] %vm452_vm3, %v1706_v35  ;;  %v1957_v61 = vadd.f32 %v1929_v33, %v1887_v9 }
 0x225   : > { %v2180_v28 = vld [vmem:[#allocation2 + $0x90] sm:$0xff] }
 0x226   : > { %1985 = vst.msk [vmem:[#allocation2 + $0x98] sm:$0xff] %vm452_vm3, %v1957_v61  ;;  %v2208_v41 = vadd.f32 %v2180_v28, %v2137_v24 }
 0x228   : > { %2236 = vst.msk [vmem:[#allocation2 + $0x90] sm:$0xff] %vm452_vm3, %v2208_v41  ;;  %v1398_v56 = vpop.f32.mrf.mxu0  ;;  %v2147_v24 = vpop.f32.mrf.mxu3 }
 0x229   : > { %v1459_v23 = vadd.f32 %v1431_v7, %v1398_v56  ;;  %v1640_v17 = vpop.f32.mrf.mxu1  ;;  %v1895_v36 = vpop.f32.mrf.mxu2 }
 0x22a   : > { %v1707_v45 = vadd.f32 %v1679_v0, %v1640_v17  ;;  %v1682_v26 = vld [vmem:[#allocation2 + $0xc0] sm:$0xff]  ;;  %v2416_v17 = vld [vmem:[#allocation2 + $0x10] sm:$0xff] }
 0x22b   : > { %1487 = vst.msk [vmem:[#allocation2 + $0xc8] sm:$0xff] %vm452_vm3, %v1459_v23  ;;  %v1930_v40 = vld [vmem:[#allocation2 + $0xa0] sm:$0xff] }
 0x22c   : > { %1735 = vst.msk [vmem:[#allocation2 + $0xa8] sm:$0xff] %vm452_vm3, %v1707_v45  ;;  %v1958_v2 = vadd.f32 %v1930_v40, %v1890_v39 }
 0x22d   : > { %v2181_v43 = vld [vmem:[#allocation2 + $0x98] sm:$0xff] }
 0x22e   : > { %1986 = vst.msk [vmem:[#allocation2 + $0xa0] sm:$0xff] %vm452_vm3, %v1958_v2  ;;  %v2209_v44 = vadd.f32 %v2181_v43, %v2139_v4 }
 0x230   : > { %2237 = vst.msk [vmem:[#allocation2 + $0x98] sm:$0xff] %vm452_vm3, %v2209_v44  ;;  %v1401_v53 = vpop.f32.mrf.mxu0  ;;  %v2149_v38 = vpop.f32.mrf.mxu3 }
 0x231   : > { %v1460_v16 = vadd.f32 %v1432_v15, %v1401_v53  ;;  %v1643_v42 = vpop.f32.mrf.mxu1  ;;  %v1897_v9 = vpop.f32.mrf.mxu2 }
 0x232   : > { %v1708_v19 = vadd.f32 %v1680_v60, %v1643_v42 }
 0x233   : > { %1488 = vst.msk [vmem:[#allocation2 + $0xd0] sm:$0xff] %vm452_vm3, %v1460_v16  ;;  %v1931_v50 = vld [vmem:[#allocation2 + $0xa8] sm:$0xff]  ;;  %4164 = vmatmul.msk.bf16.gmra.mxu0 %vm323_vm2, %v5012_v52 }
 0x234   : > { %1736 = vst.msk [vmem:[#allocation2 + $0xb0] sm:$0xff] %vm452_vm3, %v1708_v19  ;;  %v1959_v21 = vadd.f32 %v1931_v50, %v1892_v58  ;;  %v2417_v50 = vld [vmem:[#allocation2 + $0x18] sm:$0xff] }
 0x235   : > { %v2182_v22 = vld [vmem:[#allocation2 + $0xa0] sm:$0xff] }
 0x236   : > { %1987 = vst.msk [vmem:[#allocation2 + $0xa8] sm:$0xff] %vm452_vm3, %v1959_v21  ;;  %v2210_v18 = vadd.f32 %v2182_v22, %v2142_v30 }
 0x238   : > { %2238 = vst.msk [vmem:[#allocation2 + $0xa0] sm:$0xff] %vm452_vm3, %v2210_v18  ;;  %v1403_v55 = vpop.f32.mrf.mxu0  ;;  %v2152_v56 = vpop.f32.mrf.mxu3 }
 0x239   : > { %v1461_v63 = vadd.f32 %v1433_v11, %v1403_v55  ;;  %v1645_v1 = vpop.f32.mrf.mxu1  ;;  %v1900_v4 = vpop.f32.mrf.mxu2 }
 0x23a   : > { %v1709_v29 = vadd.f32 %v1681_v25, %v1645_v1  ;;  %v1684_v45 = vld [vmem:[#allocation2 + $0xd0] sm:$0xff] }
 0x23b   : > { %1489 = vst.msk [vmem:[#allocation2 + $0xd8] sm:$0x3f] %vm480_vm4, %v1461_v63  ;;  %v1932_v52 = vld [vmem:[#allocation2 + $0xb0] sm:$0xff] }
 0x23c   : > { %1737 = vst.msk [vmem:[#allocation2 + $0xb8] sm:$0xff] %vm452_vm3, %v1709_v29  ;;  %v1960_v49 = vadd.f32 %v1932_v52, %v1895_v36  ;;  %v2418_v52 = vld [vmem:[#allocation2 + $0x20] sm:$0xff] }
 0x23d   : > { %v2183_v34 = vld [vmem:[#allocation2 + $0xa8] sm:$0xff] }
 0x23e   : > { %1988 = vst.msk [vmem:[#allocation2 + $0xb0] sm:$0xff] %vm452_vm3, %v1960_v49  ;;  %v2211_v32 = vadd.f32 %v2183_v34, %v2144_v27 }
 0x240   : > { %2239 = vst.msk [vmem:[#allocation2 + $0xa8] sm:$0xff] %vm452_vm3, %v2211_v32  ;;  %v2344_v10 = vpop.f32.mrf.mxu0  ;;  %v2154_v60 = vpop.f32.mrf.mxu3 }
 0x241   : > { %v1648_v3 = vpop.f32.mrf.mxu1  ;;  %v2442_v13 = vadd.f32 %v2414_v62, %v2344_v10  ;;  %v1902_v41 = vpop.f32.mrf.mxu2 }
 0x242   : > { %v1710_v54 = vadd.f32 %v1682_v26, %v1648_v3  ;;  %v1685_v22 = vld [vmem:[#allocation2 + $0xd8] sm:$0x3f] }
 0x243   : > { %2470 = vst.msk [vmem:[#allocation2] sm:$0xff] %vm452_vm3, %v2442_v13  ;;  %v1933_v20 = vld [vmem:[#allocation2 + $0xb8] sm:$0xff]  ;;  %4165 = vmatmul.msk.bf16.gmra.mxu0 %vm323_vm2, %v5040_v57  ;;  %v1683_v57 = vld [vmem:[#allocation2 + $0xc8] sm:$0xff] }
 0x244   : > { %1738 = vst.msk [vmem:[#allocation2 + $0xc0] sm:$0xff] %vm452_vm3, %v1710_v54  ;;  %v1961_v39 = vadd.f32 %v1933_v20, %v1897_v9 }
 0x245   : > { %v2184_v37 = vld [vmem:[#allocation2 + $0xb0] sm:$0xff] }
 0x246   : > { %1989 = vst.msk [vmem:[#allocation2 + $0xb8] sm:$0xff] %vm452_vm3, %v1961_v39  ;;  %v2212_v6 = vadd.f32 %v2184_v37, %v2147_v24 }
 0x248   : > { %2240 = vst.msk [vmem:[#allocation2 + $0xb0] sm:$0xff] %vm452_vm3, %v2212_v6  ;;  %v2346_v14 = vpop.f32.mrf.mxu0  ;;  %v2157_v32 = vpop.f32.mrf.mxu3 }
 0x249   : > { %v1650_v47 = vpop.f32.mrf.mxu1  ;;  %v2443_v48 = vadd.f32 %v2415_v46, %v2346_v14  ;;  %v1905_v42 = vpop.f32.mrf.mxu2 }
 0x24a   : > { %v2498_v51 = vld [vmem:[#allocation2] sm:$0xff]  ;;  %v1711_v35 = vadd.f32 %v1683_v57, %v1650_v47 }
 0x24b   : > { %v2530_v33 = vadd.f32 %v5269_v5, %v2498_v51  ;;  %2471 = vst.msk [vmem:[#allocation2 + $0x8] sm:$0xff] %vm452_vm3, %v2443_v48  ;;  %v1934_v61 = vld [vmem:[#allocation2 + $0xc0] sm:$0xff] }
 0x24c   : > { %1739 = vst.msk [vmem:[#allocation2 + $0xc8] sm:$0xff] %vm452_vm3, %v1711_v35  ;;  %v1962_v30 = vadd.f32 %v1934_v61, %v1900_v4 }
 0x24d   : > { %v2558_v28 = vmax.f32 %v2530_v33, 0.0  ;;  %v2185_v58 = vld [vmem:[#allocation2 + $0xb8] sm:$0xff] }
 0x24e   : > { %1990 = vst.msk [vmem:[#allocation2 + $0xc0] sm:$0xff] %vm452_vm3, %v1962_v30  ;;  %v2213_v7 = vadd.f32 %v2185_v58, %v2149_v38  ;;  %v2419_v38 = vld [vmem:[#allocation2 + $0x28] sm:$0xff] }
 0x24f   : > { %2586 = vst.msk [vmem:[#allocation2] sm:$0xff] %vm452_vm3, %v2558_v28  ;;  %v2420_v28 = vld [vmem:[#allocation2 + $0x30] sm:$0xff] }
 0x250   : > { %2241 = vst.msk [vmem:[#allocation2 + $0xb8] sm:$0xff] %vm452_vm3, %v2213_v7  ;;  %v2349_v23 = vpop.f32.mrf.mxu0  ;;  %v2159_v14 = vpop.f32.mrf.mxu3 }
 0x251   : > { %v1653_v0 = vpop.f32.mrf.mxu1  ;;  %v2444_v40 = vadd.f32 %v2416_v17, %v2349_v23  ;;  %v1907_v34 = vpop.f32.mrf.mxu2 }
 0x252   : > { %v2499_v2 = vld [vmem:[#allocation2 + $0x8] sm:$0xff]  ;;  %v1712_v43 = vadd.f32 %v1684_v45, %v1653_v0 }
 0x253   : > { %v2531_v44 = vadd.f32 %v5269_v5, %v2499_v2  ;;  %2472 = vst.msk [vmem:[#allocation2 + $0x10] sm:$0xff] %vm452_vm3, %v2444_v40  ;;  %v1935_v27 = vld [vmem:[#allocation2 + $0xc8] sm:$0xff]  ;;  %4166 = vmatmul.msk.bf16.gmra.mxu0 %vm323_vm2, %v5069_v12 }
 0x254   : > { %1740 = vst.msk [vmem:[#allocation2 + $0xd0] sm:$0xff] %vm452_vm3, %v1712_v43  ;;  %v1963_v36 = vadd.f32 %v1935_v27, %v1902_v41  ;;  %v2421_v27 = vld [vmem:[#allocation2 + $0x38] sm:$0xff] }
 0x255   : > { %v2559_v53 = vmax.f32 %v2531_v44, 0.0  ;;  %v2186_v15 = vld [vmem:[#allocation2 + $0xc0] sm:$0xff] }
 0x256   : > { %1991 = vst.msk [vmem:[#allocation2 + $0xc8] sm:$0xff] %vm452_vm3, %v1963_v36  ;;  %v2214_v16 = vadd.f32 %v2186_v15, %v2152_v56  ;;  %v2614_v57 = vld [vmem:[#allocation2] sm:$0xff] }
 0x257   : > { %2587 = vst.msk [vmem:[#allocation2 + $0x8] sm:$0xff] %vm452_vm3, %v2559_v53 }
 0x258   : > { %2242 = vst.msk [vmem:[#allocation2 + $0xc0] sm:$0xff] %vm452_vm3, %v2214_v16  ;;  %v2351_v19 = vpop.f32.mrf.mxu0  ;;  %v2271_v16 = vld [vmem:[%s4487_s16 + $0xea] sm:$0xff] }
 0x259   : > { %v1655_v21 = vpop.f32.mrf.mxu1  ;;  %v2445_v18 = vadd.f32 %v2417_v50, %v2351_v19 }
 0x25a   : > { %v2500_v12 = vld [vmem:[#allocation2 + $0x10] sm:$0xff]  ;;  %v1713_v55 = vadd.f32 %v1685_v22, %v1655_v21  ;;  %v2286_v21 = vpack.c.bf16 %v2271_v16, %v5145_v8  ;;  %v2427_v16 = vld [vmem:[#allocation2 + $0x68] sm:$0xff] }
 0x25b   : > { %v2532_v11 = vadd.f32 %v5269_v5, %v2500_v12  ;;  %2473 = vst.msk [vmem:[#allocation2 + $0x18] sm:$0xff] %vm452_vm3, %v2445_v18  ;;  %v1936_v24 = vld [vmem:[#allocation2 + $0xd0] sm:$0xff]  ;;  %v2422_v18 = vld [vmem:[#allocation2 + $0x40] sm:$0xff] }
 0x25c   : > { %1741 = vst.msk [vmem:[#allocation2 + $0xd8] sm:$0x3f] %vm480_vm4, %v1713_v55  ;;  %v1964_v63 = vadd.f32 %v1936_v24, %v1905_v42 }
 0x25d   : > { %v2560_v1 = vmax.f32 %v2532_v11, 0.0  ;;  %v2187_v25 = vld [vmem:[#allocation2 + $0xc8] sm:$0xff] }
 0x25e   : > { %1992 = vst.msk [vmem:[#allocation2 + $0xd0] sm:$0xff] %vm452_vm3, %v1964_v63  ;;  %v2215_v9 = vadd.f32 %v2187_v25, %v2154_v60  ;;  %v2615_v0 = vld [vmem:[#allocation2 + $0x8] sm:$0xff] }
 0x25f   : > { %2588 = vst.msk [vmem:[#allocation2 + $0x10] sm:$0xff] %vm452_vm3, %v2560_v1 }
 0x260   : > { %2243 = vst.msk [vmem:[#allocation2 + $0xc8] sm:$0xff] %vm452_vm3, %v2215_v9  ;;  %v2354_v29 = vpop.f32.mrf.mxu0 }
 0x261   : > { %v2446_v49 = vadd.f32 %v2418_v52, %v2354_v29  ;;  %v2423_v29 = vld [vmem:[#allocation2 + $0x48] sm:$0xff] }
 0x262   : > { %v2501_v10 = vld [vmem:[#allocation2 + $0x18] sm:$0xff] }
 0x263   : > { %v2533_v62 = vadd.f32 %v5269_v5, %v2501_v10  ;;  %2474 = vst.msk [vmem:[#allocation2 + $0x20] sm:$0xff] %vm452_vm3, %v2446_v49  ;;  %v1937_v3 = vld [vmem:[#allocation2 + $0xd8] sm:$0x3f]  ;;  %4167 = vmatmul.msk.bf16.gmra.mxu0 %vm323_vm2, %v5097_v31  ;;  %v2640_v31 = vld [vmem:[#allocation2 + $0x1] sm:$0xff] }
 0x264   : > { %v1965_v26 = vadd.f32 %v1937_v3, %v1907_v34  ;;  %v2666_v33 = vmax.f32 %v2614_v57, %v2640_v31  ;;  %v2272_v10 = vld [vmem:[%s4487_s16 + $0xf2] sm:$0xff] }
 0x265   : > { %v2561_v13 = vmax.f32 %v2533_v62, 0.0  ;;  %v2188_v54 = vld [vmem:[#allocation2 + $0xd0] sm:$0xff]  ;;  %v2273_v62 = vld [vmem:[%s4487_s16 + $0xfa] sm:$0x3f] }
 0x266   : > { %1993 = vst.msk [vmem:[#allocation2 + $0xd8] sm:$0x3f] %vm480_vm4, %v1965_v26  ;;  %v2216_v20 = vadd.f32 %v2188_v54, %v2157_v32  ;;  %v2616_v48 = vld [vmem:[#allocation2 + $0x10] sm:$0xff]  ;;  %v2287_v54 = vpack.c.bf16 %v2273_v62, %v2272_v10 }
 0x267   : > { %2589 = vst.msk [vmem:[#allocation2 + $0x18] sm:$0xff] %vm452_vm3, %v2561_v13  ;;  %v2641_v23 = vld [vmem:[#allocation2 + $0x9] sm:$0xff] }
 0x268   : > { %2244 = vst.msk [vmem:[#allocation2 + $0xd0] sm:$0xff] %vm452_vm3, %v2216_v20  ;;  %v2356_v4 = vpop.f32.mrf.mxu0  ;;  %v2667_v2 = vmax.f32 %v2615_v0, %v2641_v23 }
 0x269   : > { %v2447_v39 = vadd.f32 %v2419_v38, %v2356_v4  ;;  %v2424_v38 = vld [vmem:[#allocation2 + $0x50] sm:$0xff] }
 0x26a   : > { %v2502_v37 = vld [vmem:[#allocation2 + $0x20] sm:$0xff] }
 0x26b   : > { %v2534_v6 = vadd.f32 %v5269_v5, %v2502_v37  ;;  %2475 = vst.msk [vmem:[#allocation2 + $0x28] sm:$0xff] %vm452_vm3, %v2447_v39 }
 0x26d   : > { %v2562_v46 = vmax.f32 %v2534_v6, 0.0  ;;  %v2189_v47 = vld [vmem:[#allocation2 + $0xd8] sm:$0x3f] }
 0x26e   : > { %v2642_v51 = vld [vmem:[#allocation2 + $0x11] sm:$0xff]  ;;  %v2217_v35 = vadd.f32 %v2189_v47, %v2159_v14 }
 0x26f   : > { %v2668_v61 = vmax.f32 %v2616_v48, %v2642_v51  ;;  %2590 = vst.msk [vmem:[#allocation2 + $0x20] sm:$0xff] %vm452_vm3, %v2562_v46  ;;  %v2617_v45 = vld [vmem:[#allocation2 + $0x18] sm:$0xff] }
 0x270   : > { %2245 = vst.msk [vmem:[#allocation2 + $0xd8] sm:$0x3f] %vm480_vm4, %v2217_v35  ;;  %v2359_v30 = vpop.f32.mrf.mxu0 }
 0x271   : > { %v2701_v58 = vmax.f32 %v2666_v33, %v2668_v61  ;;  %v2448_v41 = vadd.f32 %v2420_v28, %v2359_v30 }
 0x272   : > { %v2503_v56 = vld [vmem:[#allocation2 + $0x28] sm:$0xff] }
 0x273   : > { %2727 = vst.msk [vmem:[#allocation3] sm:$0xff] %vm452_vm3, %v2701_v58  ;;  %v2535_v7 = vadd.f32 %v5269_v5, %v2503_v56  ;;  %4168 = vmatmul.msk.bf16.gmra.mxu0 %vm323_vm2, %v5126_v59 }
 0x274   : > { %2476 = vst.msk [vmem:[#allocation2 + $0x30] sm:$0xff] %vm452_vm3, %v2448_v41 }
 0x275   : > { %v2563_v17 = vmax.f32 %v2535_v7, 0.0 }
 0x276   : > { %v2643_v40 = vld [vmem:[#allocation2 + $0x19] sm:$0xff] }
 0x277   : > { %v2669_v43 = vmax.f32 %v2617_v45, %v2643_v40  ;;  %2591 = vst.msk [vmem:[#allocation2 + $0x28] sm:$0xff] %vm452_vm3, %v2563_v17  ;;  %v2618_v42 = vld [vmem:[#allocation2 + $0x20] sm:$0xff] }
 0x278   : > { %v2361_v44 = vpop.f32.mrf.mxu0  ;;  %v2426_v45 = vld [vmem:[#allocation2 + $0x60] sm:$0xff] }
 0x279   : > { %v2702_v36 = vmax.f32 %v2667_v2, %v2669_v43  ;;  %v2449_v53 = vadd.f32 %v2421_v27, %v2361_v44 }
 0x27b   : > { %2728 = vst.msk [vmem:[#allocation3 + $0x8] sm:$0xff] %vm452_vm3, %v2702_v36  ;;  %v2504_v15 = vld [vmem:[#allocation2 + $0x30] sm:$0xff] }
 0x27c   : > { %v2536_v59 = vadd.f32 %v5269_v5, %v2504_v15  ;;  %2477 = vst.msk [vmem:[#allocation2 + $0x38] sm:$0xff] %vm452_vm3, %v2449_v53 }
 0x27e   : > { %v2644_v60 = vld [vmem:[#allocation2 + $0x21] sm:$0xff]  ;;  %v2564_v19 = vmax.f32 %v2536_v59, 0.0 }
 0x27f   : > { %v2670_v50 = vmax.f32 %v2618_v42, %v2644_v60  ;;  %v2619_v1 = vld [vmem:[#allocation2 + $0x28] sm:$0xff] }
 0x280   : > { %2592 = vst.msk [vmem:[#allocation2 + $0x30] sm:$0xff] %vm452_vm3, %v2564_v19  ;;  %v2364_v22 = vpop.f32.mrf.mxu0 }
 0x281   : > { %v2703_v12 = vmax.f32 %v2668_v61, %v2670_v50  ;;  %v2450_v55 = vadd.f32 %v2422_v18, %v2364_v22  ;;  %v2425_v61 = vld [vmem:[#allocation2 + $0x58] sm:$0xff] }
 0x282   : > { %v2754_v31 = vld [vmem:[#allocation3] ss:$2 sm:$0xff] }
 0x283   : > { %2729 = vst.msk [vmem:[#allocation3 + $0x10] sm:$0xff] %vm452_vm3, %v2703_v12  ;;  %v2505_v11 = vld [vmem:[#allocation2 + $0x38] sm:$0xff]  ;;  %4169 = vmatmul.msk.bf16.gmra.mxu0 %vm323_vm2, %v2286_v21 }
 0x284   : > { %v2537_v24 = vadd.f32 %v5269_v5, %v2505_v11  ;;  %2478 = vst.msk [vmem:[#allocation2 + $0x40] sm:$0xff] %vm452_vm3, %v2450_v55 }
 0x286   : > { %v2565_v63 = vmax.f32 %v2537_v24, 0.0  ;;  %v2428_v24 = vld [vmem:[#allocation2 + $0x70] sm:$0xff] }
 0x287   : > { %v2645_v8 = vld [vmem:[#allocation2 + $0x29] sm:$0xff] }
 0x288   : > { %v2671_v25 = vmax.f32 %v2619_v1, %v2645_v8  ;;  %2593 = vst.msk [vmem:[#allocation2 + $0x38] sm:$0xff] %vm452_vm3, %v2565_v63  ;;  %v2366_v9 = vpop.f32.mrf.mxu0  ;;  %v2620_v26 = vld [vmem:[#allocation2 + $0x30] sm:$0xff] }
 0x289   : > { %v2451_v52 = vadd.f32 %v2423_v29, %v2366_v9 }
 0x28a   : > { %v2704_v49 = vmax.f32 %v2669_v43, %v2671_v25 }
 0x28b   : > { %v2506_v34 = vld [vmem:[#allocation2 + $0x40] sm:$0xff]  ;;  %2479 = vst.msk [vmem:[#allocation2 + $0x48] sm:$0xff] %vm452_vm3, %v2451_v52 }
 0x28c   : > { %2730 = vst.msk [vmem:[#allocation3 + $0x18] sm:$0xff] %vm452_vm3, %v2704_v49  ;;  %v2538_v32 = vadd.f32 %v5269_v5, %v2506_v34 }
 0x28e   : > { %v2566_v3 = vmax.f32 %v2538_v32, 0.0 }
 0x28f   : > { %v2646_v13 = vld [vmem:[#allocation2 + $0x31] sm:$0xff] }
 0x290   : > { %v2672_v20 = vmax.f32 %v2620_v26, %v2646_v13  ;;  %2594 = vst.msk [vmem:[#allocation2 + $0x40] sm:$0xff] %vm452_vm3, %v2566_v3  ;;  %v2369_v4 = vpop.f32.mrf.mxu0  ;;  %v2621_v48 = vld [vmem:[#allocation2 + $0x38] sm:$0xff] }
 0x291   : > { %v2452_v39 = vadd.f32 %v2424_v38, %v2369_v4 }
 0x292   : > { %v2705_v37 = vmax.f32 %v2670_v50, %v2672_v20  ;;  %v2507_v6 = vld [vmem:[#allocation2 + $0x48] sm:$0xff] }
 0x293   : > { %v2539_v14 = vadd.f32 %v5269_v5, %v2507_v6  ;;  %2480 = vst.msk [vmem:[#allocation2 + $0x50] sm:$0xff] %vm452_vm3, %v2452_v39  ;;  %4170 = vmatmul.msk.bf16.gmra.mxu0 %vm323_vm2, %v2287_v54  ;;  %v2756_v46 = vld [vmem:[#allocation3 + $0x10] ss:$2 sm:$0xff] }
 0x294   : > { %2731 = vst.msk [vmem:[#allocation3 + $0x20] sm:$0xff] %vm452_vm3, %v2705_v37  ;;  %v5330_v47 = vpack.c.bf16 %v2756_v46, %v2754_v31  ;;  %v2429_v37 = vld [vmem:[#allocation2 + $0x78] sm:$0xff] }
 0x295   : > { %v2567_v57 = vmax.f32 %v2539_v14, 0.0 }
 0x296   : > { %4186 = vmatmul.msk.bf16.vlgmr.msra.gmra.mxu2 %vm452_vm3, %v5330_v47  ;;  %v2793_v55 = vshll.u32 %v5330_v47, 16  ;;  %v2946_v34 = vrot.slane %v5330_v47, 1  ;;  %v2791_v10 = vshrl.u32 %v5330_v47, 16 }
 0x297   : > { %v2647_v51 = vld [vmem:[#allocation2 + $0x39] sm:$0xff]  ;;  %2595 = vst.msk [vmem:[#allocation2 + $0x48] sm:$0xff] %vm452_vm3, %v2567_v57 }
 0x298   : > { %v2673_v35 = vmax.f32 %v2621_v48, %v2647_v51  ;;  %v2371_v33 = vpop.f32.mrf.mxu0  ;;  %v2622_v7 = vld [vmem:[#allocation2 + $0x40] sm:$0xff]  ;;  %v2795_v52 = vrot.slane %v2793_v55, 1 }
 0x299   : > { %v2453_v30 = vadd.f32 %v2425_v61, %v2371_v33  ;;  %v2430_v61 = vld [vmem:[#allocation2 + $0x80] sm:$0xff] }
 0x29a   : > { %v2706_v28 = vmax.f32 %v2671_v25, %v2673_v35  ;;  %v2508_v58 = vld [vmem:[#allocation2 + $0x50] sm:$0xff] }
 0x29b   : > { %v2540_v41 = vadd.f32 %v5269_v5, %v2508_v58  ;;  %2481 = vst.msk [vmem:[#allocation2 + $0x58] sm:$0xff] %vm452_vm3, %v2453_v30 }
 0x29c   : > { %2732 = vst.msk [vmem:[#allocation3 + $0x28] sm:$0xff] %vm452_vm3, %v2706_v28 }
 0x29d   : > { %v2568_v56 = vmax.f32 %v2540_v41, 0.0 }
 0x29e   : > { %v2648_v23 = vld [vmem:[#allocation2 + $0x41] sm:$0xff] }
 0x29f   : > { %v2674_v17 = vmax.f32 %v2622_v7, %v2648_v23  ;;  %2596 = vst.msk [vmem:[#allocation2 + $0x50] sm:$0xff] %vm452_vm3, %v2568_v56  ;;  %v2623_v36 = vld [vmem:[#allocation2 + $0x48] sm:$0xff] }
 0x2a0   : > { %v2374_v0 = vpop.f32.mrf.mxu0 }
 0x2a1   : > { %v2707_v40 = vmax.f32 %v2672_v20, %v2674_v17  ;;  %v2454_v2 = vadd.f32 %v2426_v45, %v2374_v0  ;;  %v2796_v20 = vor.u32 %v2795_v52, %v2791_v10  ;;  %v2431_v45 = vld [vmem:[#allocation2 + $0x88] sm:$0xff] }
 0x2a2   : > { %v2509_v43 = vld [vmem:[#allocation2 + $0x58] sm:$0xff] }
 0x2a3   : > { %2733 = vst.msk [vmem:[#allocation3 + $0x30] sm:$0xff] %vm452_vm3, %v2707_v40  ;;  %v2541_v44 = vadd.f32 %v5269_v5, %v2509_v43  ;;  %v2758_v8 = vld [vmem:[#allocation3 + $0x20] ss:$2 sm:$0xff] }
 0x2a4   : > { %2482 = vst.msk [vmem:[#allocation2 + $0x60] sm:$0xff] %vm452_vm3, %v2454_v2 }
 0x2a5   : > { %v2569_v27 = vmax.f32 %v2541_v44, 0.0 }
 0x2a6   : > { %v2649_v53 = vld [vmem:[#allocation2 + $0x49] sm:$0xff] }
 0x2a7   : > { %v2675_v15 = vmax.f32 %v2623_v36, %v2649_v53  ;;  %2597 = vst.msk [vmem:[#allocation2 + $0x58] sm:$0xff] %vm452_vm3, %v2569_v27  ;;  %v2624_v21 = vld [vmem:[#allocation2 + $0x50] sm:$0xff]  ;;  %v4217_v27 = vld [vmem:[%s5821_s3 + $0x20] sm:$0xf]  ;;  %v4354_v36 = vld [vmem:[%s5821_s3 + $0x20] sm:$0x10] }
 0x2a8   : > { %v2376_v59 = vpop.f32.mrf.mxu0 }
 0x2a9   : > { %v2708_v42 = vmax.f32 %v2673_v35, %v2675_v15  ;;  %v2455_v60 = vadd.f32 %v2427_v16, %v2376_v59 }
 0x2ab   : > { %2734 = vst.msk [vmem:[#allocation3 + $0x38] sm:$0xff] %vm452_vm3, %v2708_v42  ;;  %v2510_v19 = vld [vmem:[#allocation2 + $0x60] sm:$0xff] }
 0x2ac   : > { %v2542_v50 = vadd.f32 %v5269_v5, %v2510_v19  ;;  %2483 = vst.msk [vmem:[#allocation2 + $0x68] sm:$0xff] %vm452_vm3, %v2455_v60  ;;  %v2432_v60 = vld [vmem:[#allocation2 + $0x90] sm:$0xff] }
 0x2ae   : > { %v2650_v22 = vld [vmem:[#allocation2 + $0x51] sm:$0xff]  ;;  %v2570_v18 = vmax.f32 %v2542_v50, 0.0 }
 0x2af   : > { %v2676_v12 = vmax.f32 %v2624_v21, %v2650_v22  ;;  %v2625_v26 = vld [vmem:[#allocation2 + $0x58] sm:$0xff]  ;;  %v4228_v21 = vld [vmem:[%s5821_s3 + $0x28] sm:$0xf]  ;;  %v4355_v22 = vld [vmem:[%s5821_s3 + $0x28] sm:$0x10] }
 0x2b0   : > { %2598 = vst.msk [vmem:[#allocation2 + $0x60] sm:$0xff] %vm452_vm3, %v2570_v18  ;;  %v2379_v11 = vpop.f32.mrf.mxu0  ;;  %v4206_v18 = vld [vmem:[%s5821_s3 + $0x18] sm:$0xf] }
 0x2b1   : > { %v2709_v63 = vmax.f32 %v2674_v17, %v2676_v12  ;;  %v2456_v1 = vadd.f32 %v2428_v24, %v2379_v11  ;;  %v4229_v11 = vor.u32 %v4355_v22, %v4228_v21  ;;  %v4353_v24 = vld [vmem:[%s5821_s3 + $0x18] sm:$0x10] }
 0x2b2   : > { %v2760_v25 = vld [vmem:[#allocation3 + $0x30] ss:$2 sm:$0xff] }
 0x2b3   : > { %2735 = vst.msk [vmem:[#allocation3 + $0x40] sm:$0xff] %vm452_vm3, %v2709_v63  ;;  %v2511_v9 = vld [vmem:[#allocation2 + $0x68] sm:$0xff]  ;;  %v5349_v29 = vpack.c.bf16 %v2760_v25, %v2758_v8  ;;  %v3181_v52 = vsel %vm2849_vm5, %v4229_v11, 0 }
 0x2b4   : > { %v2543_v49 = vadd.f32 %v5269_v5, %v2511_v9  ;;  %2484 = vst.msk [vmem:[#allocation2 + $0x70] sm:$0xff] %vm452_vm3, %v2456_v1  ;;  %v4207_v1 = vor.u32 %v4353_v24, %v4206_v18  ;;  %3190 = vmatpush.bf16.msrb.mxu3 %v3181_v52 }
 0x2b5   : > { %4187 = vmatmul.msk.bf16.gmra.mxu2 %vm452_vm3, %v5349_v29  ;;  %v2947_v32 = vrot.slane %v5349_v29, 1  ;;  %v2798_v62 = vshll.u32 %v5349_v29, 16 }
 0x2b6   : > { %v2571_v3 = vmax.f32 %v2543_v49, 0.0 }
 0x2b7   : > { %v2651_v13 = vld [vmem:[#allocation2 + $0x59] sm:$0xff]  ;;  %v2948_v54 = vsel %vm2945_vm6, %v2946_v34, %v2947_v32  ;;  %v5362_v4 = vrot.slane %v2798_v62, 1  ;;  %v3037_v34 = vsel %vm2849_vm5, %v4207_v1, 0 }
 0x2b8   : > { %v2677_v38 = vmax.f32 %v2625_v26, %v2651_v13  ;;  %2599 = vst.msk [vmem:[#allocation2 + $0x68] sm:$0xff] %vm452_vm3, %v2571_v3  ;;  %v2381_v39 = vpop.f32.mrf.mxu0  ;;  %4197 = vmatmul.msk.bf16.vlgmr.msra.gmra.mxu3 %vm452_vm3, %v2948_v54  ;;  %v2626_v48 = vld [vmem:[#allocation2 + $0x60] sm:$0xff]  ;;  %3046 = vmatpush.bf16.msra.mxu1 %v3037_v34  ;;  %v2802_v13 = vshrl.u32 %v5349_v29, 16 }
 0x2b9   : > { %v2457_v6 = vadd.f32 %v2429_v37, %v2381_v39  ;;  %v2801_v14 = vsel %vm2789_vm7, %v2796_v20, %v5362_v4  ;;  %v2433_v39 = vld [vmem:[#allocation2 + $0x98] sm:$0xff] }
 0x2ba   : > { %v2710_v31 = vmax.f32 %v2675_v15, %v2677_v38  ;;  %4177 = vmatmul.msk.bf16.vlgmr.msrb.gmra.mxu1 %vm452_vm3, %v2801_v14  ;;  %v4218_v15 = vor.u32 %v4354_v36, %v4217_v27 }
 0x2bb   : > { %v2512_v46 = vld [vmem:[#allocation2 + $0x70] sm:$0xff]  ;;  %2485 = vst.msk [vmem:[#allocation2 + $0x78] sm:$0xff] %vm452_vm3, %v2457_v6  ;;  %v2804_v6 = vor.u32 %v2802_v13, %v5362_v4 }
 0x2bc   : > { %2736 = vst.msk [vmem:[#allocation3 + $0x48] sm:$0xff] %vm452_vm3, %v2710_v31  ;;  %v2544_v47 = vadd.f32 %v5269_v5, %v2512_v46  ;;  %v3113_v19 = vsel %vm2849_vm5, %v4218_v15, 0 }
 0x2bd   : > { %3122 = vmatpush.bf16.msrb.mxu2 %v3113_v19 }
 0x2be   : > { %v2572_v57 = vmax.f32 %v2544_v47, 0.0 }
 0x2bf   : > { %v2652_v51 = vld [vmem:[#allocation2 + $0x61] sm:$0xff] }
 0x2c0   : > { %v2678_v35 = vmax.f32 %v2626_v48, %v2652_v51  ;;  %2600 = vst.msk [vmem:[#allocation2 + $0x70] sm:$0xff] %vm452_vm3, %v2572_v57  ;;  %v2384_v33 = vpop.f32.mrf.mxu0  ;;  %v2627_v7 = vld [vmem:[#allocation2 + $0x68] sm:$0xff] }
 0x2c1   : > { %v2458_v30 = vadd.f32 %v2430_v61, %v2384_v33  ;;  %v2434_v61 = vld [vmem:[#allocation2 + $0xa0] sm:$0xff] }
 0x2c2   : > { %v2711_v28 = vmax.f32 %v2676_v12, %v2678_v35  ;;  %v2513_v58 = vld [vmem:[#allocation2 + $0x78] sm:$0xff] }
 0x2c3   : > { %v2545_v41 = vadd.f32 %v5269_v5, %v2513_v58  ;;  %2486 = vst.msk [vmem:[#allocation2 + $0x80] sm:$0xff] %vm452_vm3, %v2458_v30  ;;  %v2762_v25 = vld [vmem:[#allocation3 + $0x40] ss:$2 sm:$0xff] }
 0x2c4   : > { %2737 = vst.msk [vmem:[#allocation3 + $0x50] sm:$0xff] %vm452_vm3, %v2711_v28 }
 0x2c5   : > { %v2573_v56 = vmax.f32 %v2545_v41, 0.0 }
 0x2c7   : > { %v2653_v23 = vld [vmem:[#allocation2 + $0x69] sm:$0xff]  ;;  %2601 = vst.msk [vmem:[#allocation2 + $0x78] sm:$0xff] %vm452_vm3, %v2573_v56 }
 0x2c8   : > { %v2679_v17 = vmax.f32 %v2627_v7, %v2653_v23  ;;  %v2386_v0 = vpop.f32.mrf.mxu0  ;;  %v2628_v59 = vld [vmem:[#allocation2 + $0x70] sm:$0xff] }
 0x2c9   : > { %v2459_v40 = vadd.f32 %v2431_v45, %v2386_v0  ;;  %v2435_v45 = vld [vmem:[#allocation2 + $0xa8] sm:$0xff] }
 0x2ca   : > { %v2712_v2 = vmax.f32 %v2677_v38, %v2679_v17  ;;  %v2514_v43 = vld [vmem:[#allocation2 + $0x80] sm:$0xff] }
 0x2cb   : > { %v2546_v44 = vadd.f32 %v5269_v5, %v2514_v43  ;;  %2487 = vst.msk [vmem:[#allocation2 + $0x88] sm:$0xff] %vm452_vm3, %v2459_v40 }
 0x2cc   : > { %2738 = vst.msk [vmem:[#allocation3 + $0x58] sm:$0xff] %vm452_vm3, %v2712_v2 }
 0x2cd   : > { %v2574_v53 = vmax.f32 %v2546_v44, 0.0 }
 0x2ce   : > { %v2654_v16 = vld [vmem:[#allocation2 + $0x71] sm:$0xff] }
 0x2cf   : > { %v2680_v42 = vmax.f32 %v2628_v59, %v2654_v16  ;;  %2602 = vst.msk [vmem:[#allocation2 + $0x80] sm:$0xff] %vm452_vm3, %v2574_v53  ;;  %v2629_v62 = vld [vmem:[#allocation2 + $0x78] sm:$0xff]  ;;  %v2436_v16 = vld [vmem:[#allocation2 + $0xb0] sm:$0xff] }
 0x2d0   : > { %v2389_v50 = vpop.f32.mrf.mxu0 }
 0x2d1   : > { %v2713_v12 = vmax.f32 %v2678_v35, %v2680_v42  ;;  %v2460_v55 = vadd.f32 %v2432_v60, %v2389_v50 }
 0x2d2   : > { %v2515_v63 = vld [vmem:[#allocation2 + $0x88] sm:$0xff] }
 0x2d3   : > { %2739 = vst.msk [vmem:[#allocation3 + $0x60] sm:$0xff] %vm452_vm3, %v2713_v12  ;;  %v2547_v8 = vadd.f32 %v5269_v5, %v2515_v63  ;;  %v2764_v9 = vld [vmem:[#allocation3 + $0x50] ss:$2 sm:$0xff] }
 0x2d4   : > { %2488 = vst.msk [vmem:[#allocation2 + $0x90] sm:$0xff] %vm452_vm3, %v2460_v55  ;;  %v5404_v49 = vpack.c.bf16 %v2764_v9, %v2762_v25  ;;  %v2437_v9 = vld [vmem:[#allocation2 + $0xb8] sm:$0xff] }
 0x2d5   : > { %v2575_v10 = vmax.f32 %v2547_v8, 0.0 }
 0x2d6   : > { %v2655_v3 = vld [vmem:[#allocation2 + $0x79] sm:$0xff]  ;;  %4188 = vmatmul.msk.bf16.gmra.mxu2 %vm452_vm3, %v5404_v49  ;;  %v2949_v26 = vrot.slane %v5404_v49, 1  ;;  %v2806_v54 = vshll.u32 %v5404_v49, 16  ;;  %v2810_v11 = vshrl.u32 %v5404_v49, 16 }
 0x2d7   : > { %v2681_v20 = vmax.f32 %v2629_v62, %v2655_v3  ;;  %2603 = vst.msk [vmem:[#allocation2 + $0x88] sm:$0xff] %vm452_vm3, %v2575_v10  ;;  %v2630_v4 = vld [vmem:[#allocation2 + $0x80] sm:$0xff] }
 0x2d8   : > { %v2391_v38 = vpop.f32.mrf.mxu0  ;;  %v5418_v37 = vsel %vm2945_vm6, %v2947_v32, %v2949_v26  ;;  %v5421_v14 = vrot.slane %v2806_v54, 1 }
 0x2d9   : > { %v2714_v31 = vmax.f32 %v2679_v17, %v2681_v20  ;;  %v2461_v46 = vadd.f32 %v2433_v39, %v2391_v38  ;;  %4198 = vmatmul.msk.bf16.gmra.mxu3 %vm452_vm3, %v5418_v37 }
 0x2da   : > { %v5427_v47 = vsel %vm2789_vm7, %v2804_v6, %v5421_v14  ;;  %v2812_v34 = vor.u32 %v2810_v11, %v5421_v14 }
 0x2db   : > { %2740 = vst.msk [vmem:[#allocation3 + $0x68] sm:$0xff] %vm452_vm3, %v2714_v31  ;;  %v2516_v57 = vld [vmem:[#allocation2 + $0x90] sm:$0xff]  ;;  %4178 = vmatmul.msk.bf16.gmra.mxu1 %vm452_vm3, %v5427_v47  ;;  %v2438_v31 = vld [vmem:[#allocation2 + $0xc0] sm:$0xff] }
 0x2dc   : > { %v2548_v32 = vadd.f32 %v5269_v5, %v2516_v57  ;;  %2489 = vst.msk [vmem:[#allocation2 + $0x98] sm:$0xff] %vm452_vm3, %v2461_v46 }
 0x2de   : > { %v2656_v48 = vld [vmem:[#allocation2 + $0x81] sm:$0xff]  ;;  %v2576_v51 = vmax.f32 %v2548_v32, 0.0 }
 0x2df   : > { %v2682_v35 = vmax.f32 %v2630_v4, %v2656_v48  ;;  %v2631_v7 = vld [vmem:[#allocation2 + $0x88] sm:$0xff] }
 0x2e0   : > { %2604 = vst.msk [vmem:[#allocation2 + $0x90] sm:$0xff] %vm452_vm3, %v2576_v51  ;;  %v2394_v33 = vpop.f32.mrf.mxu0 }
 0x2e1   : > { %v2715_v30 = vmax.f32 %v2680_v42, %v2682_v35  ;;  %v2462_v28 = vadd.f32 %v2434_v61, %v2394_v33 }
 0x2e2   : > { %v2766_v21 = vld [vmem:[#allocation3 + $0x60] ss:$2 sm:$0xff] }
 0x2e3   : > { %2741 = vst.msk [vmem:[#allocation3 + $0x70] sm:$0xff] %vm452_vm3, %v2715_v30  ;;  %v2517_v58 = vld [vmem:[#allocation2 + $0x98] sm:$0xff] }
 0x2e4   : > { %v2549_v41 = vadd.f32 %v5269_v5, %v2517_v58  ;;  %2490 = vst.msk [vmem:[#allocation2 + $0xa0] sm:$0xff] %vm452_vm3, %v2462_v28 }
 0x2e6   : > { %v2577_v56 = vmax.f32 %v2549_v41, 0.0 }
 0x2e7   : > { %v2657_v23 = vld [vmem:[#allocation2 + $0x89] sm:$0xff] }
 0x2e8   : > { %v2683_v17 = vmax.f32 %v2631_v7, %v2657_v23  ;;  %2605 = vst.msk [vmem:[#allocation2 + $0x98] sm:$0xff] %vm452_vm3, %v2577_v56  ;;  %v2396_v0 = vpop.f32.mrf.mxu0  ;;  %v2632_v36 = vld [vmem:[#allocation2 + $0x90] sm:$0xff]  ;;  %v2439_v7 = vld [vmem:[#allocation2 + $0xc8] sm:$0xff] }
 0x2e9   : > { %v2463_v40 = vadd.f32 %v2435_v45, %v2396_v0 }
 0x2ea   : > { %v2716_v2 = vmax.f32 %v2681_v20, %v2683_v17 }
 0x2eb   : > { %v2518_v43 = vld [vmem:[#allocation2 + $0xa0] sm:$0xff]  ;;  %2491 = vst.msk [vmem:[#allocation2 + $0xa8] sm:$0xff] %vm452_vm3, %v2463_v40 }
 0x2ec   : > { %2742 = vst.msk [vmem:[#allocation3 + $0x78] sm:$0xff] %vm452_vm3, %v2716_v2  ;;  %v2550_v44 = vadd.f32 %v5269_v5, %v2518_v43 }
 0x2ee   : > { %v2578_v27 = vmax.f32 %v2550_v44, 0.0 }
 0x2ef   : > { %v2658_v53 = vld [vmem:[#allocation2 + $0x91] sm:$0xff] }
 0x2f0   : > { %v2684_v15 = vmax.f32 %v2632_v36, %v2658_v53  ;;  %2606 = vst.msk [vmem:[#allocation2 + $0xa0] sm:$0xff] %vm452_vm3, %v2578_v27  ;;  %v2399_v59 = vpop.f32.mrf.mxu0  ;;  %v2633_v63 = vld [vmem:[#allocation2 + $0x98] sm:$0xff] }
 0x2f1   : > { %v2464_v42 = vadd.f32 %v2436_v16, %v2399_v59  ;;  %v4250_v27 = vld [vmem:[%s5821_s3 + $0x38] sm:$0xf]  ;;  %v4357_v36 = vld [vmem:[%s5821_s3 + $0x38] sm:$0x10]  ;;  %v4261_v59 = vld [vmem:[%s5821_s3 + $0x40] sm:$0xf] }
 0x2f2   : > { %v2519_v60 = vld [vmem:[#allocation2 + $0xa8] sm:$0xff]  ;;  %v2717_v19 = vmax.f32 %v2682_v35, %v2684_v15  ;;  %v4358_v16 = vld [vmem:[%s5821_s3 + $0x40] sm:$0x10] }
 0x2f3   : > { %v2551_v50 = vadd.f32 %v5269_v5, %v2519_v60  ;;  %2492 = vst.msk [vmem:[#allocation2 + $0xb0] sm:$0xff] %vm452_vm3, %v2464_v42  ;;  %v2768_v22 = vld [vmem:[#allocation3 + $0x70] ss:$2 sm:$0xff] }
 0x2f4   : > { %v5445_v18 = vpack.c.bf16 %v2768_v22, %v2766_v21  ;;  %2743 = vst.msk [vmem:[#allocation3 + $0x80] sm:$0xff] %vm452_vm3, %v2717_v19  ;;  %v4262_v19 = vor.u32 %v4358_v16, %v4261_v59 }
 0x2f5   : > { %v2579_v12 = vmax.f32 %v2551_v50, 0.0  ;;  %v4239_v50 = vld [vmem:[%s5821_s3 + $0x30] sm:$0xf] }
 0x2f6   : > { %4189 = vmatmul.msk.bf16.gmra.mxu2 %vm452_vm3, %v5445_v18  ;;  %v5451_v55 = vrot.slane %v5445_v18, 1  ;;  %v2814_v24 = vshll.u32 %v5445_v18, 16  ;;  %v2818_v28 = vshrl.u32 %v5445_v18, 16 }
 0x2f7   : > { %v2659_v1 = vld [vmem:[#allocation2 + $0x99] sm:$0xff]  ;;  %2607 = vst.msk [vmem:[#allocation2 + $0xa8] sm:$0xff] %vm452_vm3, %v2579_v12  ;;  %v4356_v12 = vld [vmem:[%s5821_s3 + $0x30] sm:$0x10] }
 0x2f8   : > { %v2685_v8 = vmax.f32 %v2633_v63, %v2659_v1  ;;  %v2401_v25 = vpop.f32.mrf.mxu0  ;;  %v5460_v52 = vsel %vm2945_vm6, %v2949_v26, %v5451_v55  ;;  %v2816_v10 = vrot.slane %v2814_v24, 1  ;;  %v2634_v38 = vld [vmem:[#allocation2 + $0xa0] sm:$0xff]  ;;  %v2440_v24 = vld [vmem:[#allocation2 + $0xd0] sm:$0xff]  ;;  %v3386_v63 = vsel %vm2849_vm5, %v4262_v19, 0 }
 0x2f9   : > { %v2465_v62 = vadd.f32 %v2437_v9, %v2401_v25  ;;  %4199 = vmatmul.msk.bf16.gmra.mxu3 %vm452_vm3, %v5460_v52  ;;  %v4240_v1 = vor.u32 %v4356_v12, %v4239_v50 }
 0x2fa   : > { %v2520_v3 = vld [vmem:[#allocation2 + $0xb0] sm:$0xff]  ;;  %v5466_v13 = vsel %vm2789_vm7, %v2812_v34, %v2816_v10  ;;  %v2718_v54 = vmax.f32 %v2683_v17, %v2685_v8  ;;  %v5491_v17 = vor.u32 %v2818_v28, %v2816_v10  ;;  %3395 = vmatpush.bf16.msra.mxu3 %v3386_v63 }
 0x2fb   : > { %v2552_v20 = vadd.f32 %v5269_v5, %v2520_v3  ;;  %2493 = vst.msk [vmem:[#allocation2 + $0xb8] sm:$0xff] %vm452_vm3, %v2465_v62  ;;  %4179 = vmatmul.msk.bf16.gmra.mxu1 %vm452_vm3, %v5466_v13  ;;  %v3242_v9 = vsel %vm2849_vm5, %v4240_v1, 0 }
 0x2fc   : > { %2744 = vst.msk [vmem:[#allocation3 + $0x88] sm:$0xff] %vm452_vm3, %v2718_v54  ;;  %3251 = vmatpush.bf16.msrb.mxu1 %v3242_v9 }
 0x2fd   : > { %v2580_v26 = vmax.f32 %v2552_v20, 0.0 }
 0x2fe   : > { %v2660_v39 = vld [vmem:[#allocation2 + $0xa1] sm:$0xff] }
 0x2ff   : > { %v2686_v6 = vmax.f32 %v2634_v38, %v2660_v39  ;;  %2608 = vst.msk [vmem:[#allocation2 + $0xb0] sm:$0xff] %vm452_vm3, %v2580_v26  ;;  %v2635_v33 = vld [vmem:[#allocation2 + $0xa8] sm:$0xff]  ;;  %v2441_v39 = vld [vmem:[#allocation2 + $0xd8] sm:$0x3f] }
 0x300   : > { %v2404_v14 = vpop.f32.mrf.mxu0 }
 0x301   : > { %v2466_v46 = vadd.f32 %v2438_v31, %v2404_v14  ;;  %v2719_v57 = vmax.f32 %v2684_v15, %v2686_v6  ;;  %v4251_v15 = vor.u32 %v4357_v36, %v4250_v27 }
 0x302   : > { %v2521_v32 = vld [vmem:[#allocation2 + $0xb8] sm:$0xff] }
 0x303   : > { %v2553_v4 = vadd.f32 %v5269_v5, %v2521_v32  ;;  %2494 = vst.msk [vmem:[#allocation2 + $0xc0] sm:$0xff] %vm452_vm3, %v2466_v46  ;;  %v5476_v48 = vld [vmem:[#allocation3 + $0x80] ss:$2 sm:$0xff]  ;;  %v3318_v22 = vsel %vm2849_vm5, %v4251_v15, 0 }
 0x304   : > { %2745 = vst.msk [vmem:[#allocation3 + $0x90] sm:$0xff] %vm452_vm3, %v2719_v57  ;;  %v5481_v51 = vpack.c.bf16 %v5476_v48, %v5476_v48  ;;  %3327 = vmatpush.bf16.msra.mxu2 %v3318_v22 }
 0x305   : > { %v2581_v35 = vmax.f32 %v2553_v4, 0.0 }
 0x306   : > { %v2661_v61 = vld [vmem:[#allocation2 + $0xa9] sm:$0xff]  ;;  %4190 = vmatmul.msk.bf16.gmra.mxu2 %vm452_vm3, %v5481_v51  ;;  %v2953_v30 = vrot.slane %v5481_v51, 1  ;;  %v2822_v58 = vshll.u32 %v5481_v51, 16  ;;  %v2826_v26 = vshrl.u32 %v5481_v51, 16 }
 0x307   : > { %v2687_v41 = vmax.f32 %v2635_v33, %v2661_v61  ;;  %2609 = vst.msk [vmem:[#allocation2 + $0xb8] sm:$0xff] %vm452_vm3, %v2581_v35  ;;  %v2636_v42 = vld [vmem:[#allocation2 + $0xb0] sm:$0xff]  ;;  %v4360_v35 = vld [vmem:[%s5823_s5 + $0x8] sm:$0xff] }
 0x308   : > { %v2406_v56 = vpop.f32.mrf.mxu0  ;;  %v2954_v23 = vsel %vm2945_vm6, %v5451_v55, %v2953_v30  ;;  %v2824_v0 = vrot.slane %v2822_v58, 1  ;;  %3506 = vmatpush.bf16.msrb.mxu0 %v4360_v35 }
 0x309   : > { %v2720_v45 = vmax.f32 %v2685_v8, %v2687_v41  ;;  %v2467_v40 = vadd.f32 %v2439_v7, %v2406_v56  ;;  %4200 = vmatmul.msk.bf16.gmra.mxu3 %vm452_vm3, %v2954_v23 }
 0x30a   : > { %v2522_v2 = vld [vmem:[#allocation2 + $0xc0] sm:$0xff]  ;;  %v2825_v43 = vsel %vm2789_vm7, %v5491_v17, %v2824_v0  ;;  %v2828_v31 = vor.u32 %v2826_v26, %v2824_v0 }
 0x30b   : > { %v2554_v44 = vadd.f32 %v5269_v5, %v2522_v2  ;;  %2746 = vst.msk [vmem:[#allocation3 + $0x98] sm:$0xff] %vm452_vm3, %v2720_v45  ;;  %4180 = vmatmul.msk.bf16.gmra.mxu1 %vm452_vm3, %v2825_v43 }
 0x30c   : > { %2495 = vst.msk [vmem:[#allocation2 + $0xc8] sm:$0xff] %vm452_vm3, %v2467_v40 }
 0x30d   : > { %v2582_v53 = vmax.f32 %v2554_v44, 0.0 }
 0x30e   : > { %v2662_v60 = vld [vmem:[#allocation2 + $0xb1] sm:$0xff] }
 0x30f   : > { %v2688_v21 = vmax.f32 %v2636_v42, %v2662_v60  ;;  %2610 = vst.msk [vmem:[#allocation2 + $0xc0] sm:$0xff] %vm452_vm3, %v2582_v53  ;;  %v2637_v62 = vld [vmem:[#allocation2 + $0xb8] sm:$0xff] }
 0x310   : > { %v2409_v11 = vpop.f32.mrf.mxu0 }
 0x311   : > { %v2721_v8 = vmax.f32 %v2686_v6, %v2688_v21  ;;  %v2468_v25 = vadd.f32 %v2440_v24, %v2409_v11 }
 0x312   : > { %v2772_v28 = vld [vmem:[#allocation3 + $0x90] ss:$2 sm:$0xff] }
 0x313   : > { %2747 = vst.msk [vmem:[#allocation3 + $0xa0] sm:$0xff] %vm452_vm3, %v2721_v8  ;;  %v2523_v34 = vld [vmem:[#allocation2 + $0xc8] sm:$0xff]  ;;  %v5544_v23 = vpack.c.bf16 %v2772_v28, %v5476_v48 }
 0x314   : > { %v2555_v10 = vadd.f32 %v5269_v5, %v2523_v34  ;;  %2496 = vst.msk [vmem:[#allocation2 + $0xd0] sm:$0xff] %vm452_vm3, %v2468_v25 }
 0x315   : > { %v3084_v40 = vshll.u32 %v5544_v23, 16  ;;  %v3088_v19 = vshrl.u32 %v5544_v23, 16  ;;  %v3162_v50 = vrot.slane %v5544_v23, 1 }
 0x316   : > { %v2663_v3 = vld [vmem:[#allocation2 + $0xb9] sm:$0xff]  ;;  %v2583_v54 = vmax.f32 %v2555_v10, 0.0  ;;  %4219 = vmatmul.msk.bf16.vlgmr.msrb.gmra.mxu2 %vm452_vm3, %v5427_v47 }
 0x317   : > { %v2689_v20 = vmax.f32 %v2637_v62, %v2663_v3  ;;  %v2638_v32 = vld [vmem:[#allocation2 + $0xc0] sm:$0xff]  ;;  %v3086_v15 = vrot.slane %v3084_v40, 1 }
 0x318   : > { %2611 = vst.msk [vmem:[#allocation2 + $0xc8] sm:$0xff] %vm452_vm3, %v2583_v54  ;;  %v2411_v38 = vpop.f32.mrf.mxu0  ;;  %v3163_v54 = vsel %vm2945_vm6, %v5451_v55, %v3162_v50 }
 0x319   : > { %v2722_v6 = vmax.f32 %v2687_v41, %v2689_v20  ;;  %v2469_v14 = vadd.f32 %v2441_v39, %v2411_v38  ;;  %4201 = vmatmul.msk.bf16.gmra.mxu3 %vm452_vm3, %v2953_v30  ;;  %v3087_v60 = vsel %vm2789_vm7, %v5491_v17, %v3086_v15  ;;  %v2913_v12 = vpop.f32.mrf.mxu2  ;;  %v3090_v63 = vor.u32 %v3088_v19, %v3086_v15 }
 0x31b   : > { %2748 = vst.msk [vmem:[#allocation3 + $0xa8] sm:$0xff] %vm452_vm3, %v2722_v6  ;;  %v2524_v46 = vld [vmem:[#allocation2 + $0xd0] sm:$0xff]  ;;  %4181 = vmatmul.msk.bf16.gmra.mxu1 %vm452_vm3, %v2828_v31 }
 0x31c   : > { %v2556_v57 = vadd.f32 %v5269_v5, %v2524_v46  ;;  %2497 = vst.msk [vmem:[#allocation2 + $0xd8] sm:$0x3f] %vm480_vm4, %v2469_v14 }
 0x31e   : > { %v2584_v47 = vmax.f32 %v2556_v57, 0.0 }
 0x31f   : > { %v2664_v4 = vld [vmem:[#allocation2 + $0xc1] sm:$0xff]  ;;  %v2665_v45 = vld [vmem:[#allocation2 + $0xc9] sm:$0x1f] }
 0x320   : > { %v2690_v51 = vmax.f32 %v2638_v32, %v2664_v4  ;;  %2612 = vst.msk [vmem:[#allocation2 + $0xd0] sm:$0xff] %vm452_vm3, %v2584_v47  ;;  %v2692_v41 = vld [vmem:[#allocation2 + $0xc8] sm:$0xff] }
 0x322   : > { %v2723_v33 = vmax.f32 %v2688_v21, %v2690_v51  ;;  %v2774_v16 = vld [vmem:[#allocation3 + $0xa0] ss:$2 sm:$0xff] }
 0x323   : > { %v2525_v61 = vld [vmem:[#allocation2 + $0xd8] sm:$0x3f]  ;;  %v3021_v8 = vpack.c.bf16 %v2774_v16, %v2774_v16 }
 0x324   : > { %2749 = vst.msk [vmem:[#allocation3 + $0xb0] sm:$0xff] %vm452_vm3, %v2723_v33  ;;  %v2557_v30 = vadd.f32 %v5269_v5, %v2525_v61  ;;  %v2639_v5 = vld [vmem:[#allocation2 + $0xc8] sm:$0x1f] }
 0x325   : > { %v2691_v36 = vmax.f32 %v2639_v5, %v2665_v45  ;;  %v3091_v10 = vshll.u32 %v3021_v8, 16  ;;  %v3095_v38 = vshrl.u32 %v3021_v8, 16  ;;  %v3164_v14 = vrot.slane %v3021_v8, 1 }
 0x326   : > { %v2585_v58 = vmax.f32 %v2557_v30, 0.0  ;;  %4220 = vmatmul.msk.bf16.gmra.mxu2 %vm452_vm3, %v5466_v13 }
 0x327   : > { %v2695_v56 = vld [vmem:[#allocation2 + $0xc9] sm:$0xff]  ;;  %v3093_v62 = vrot.slane %v3091_v10, 1  ;;  %v3165_v55 = vsel %vm2945_vm6, %v3162_v50, %v3164_v14 }
 0x328   : > { %v2698_v7 = vmax.f32 %v2692_v41, %v2695_v56  ;;  %2613 = vst.msk [vmem:[#allocation2 + $0xd8] sm:$0x3f] %vm480_vm4, %v2585_v58  ;;  %v2693_v2 = vld [vmem:[#allocation2 + $0xd0] sm:$0xff] }
 0x329   : > { %4230 = vmatmul.msk.bf16.vlgmr.msrb.gmra.mxu3 %vm452_vm3, %v5418_v37  ;;  %v3094_v3 = vsel %vm2789_vm7, %v3090_v63, %v3093_v62  ;;  %v3097_v6 = vor.u32 %v3095_v38, %v3093_v62 }
 0x32a   : > { %v2724_v0 = vmax.f32 %v2689_v20, %v2698_v7  ;;  %v5584_v20 = vpop.f32.mrf.mxu2 }
 0x32b   : > { %4208 = vmatmul.msk.bf16.vlgmr.msra.gmra.mxu1 %vm452_vm3, %v5349_v29 }
 0x32c   : > { %2750 = vst.msk [vmem:[#allocation3 + $0xb8] sm:$0xff] %vm452_vm3, %v2724_v0 }
 0x32f   : > { %v2694_v43 = vld [vmem:[#allocation2 + $0xd8] sm:$0x1f] }
 0x330   : > { %v2696_v44 = vld [vmem:[#allocation2 + $0xd1] sm:$0xff]  ;;  %v2697_v27 = vld [vmem:[#allocation2 + $0xd9] sm:$0x1f] }
 0x331   : > { %v2699_v48 = vmax.f32 %v2693_v2, %v2696_v44  ;;  %v2700_v53 = vmax.f32 %v2694_v43, %v2697_v27 }
 0x333   : > { %v2725_v59 = vmax.f32 %v2690_v51, %v2699_v48  ;;  %v2726_v37 = vmax.f32 %v2691_v36, %v2700_v53  ;;  %v2776_v42 = vld [vmem:[#allocation3 + $0xb0] ss:$2 sm:$0xff] }
 0x334   : > { %v5552_v29 = vpack.c.bf16 %v2776_v42, %v2774_v16 }
 0x335   : > { %2751 = vst.msk [vmem:[#allocation3 + $0xc0] sm:$0xff] %vm452_vm3, %v2725_v59 }
 0x336   : > { %2753 = vst.msk [vmem:[#allocation3 + $0xc8] sm:$0x1f] %vm2752_vm8, %v2726_v37  ;;  %4221 = vmatmul.msk.bf16.gmra.mxu2 %vm452_vm3, %v3087_v60  ;;  %v3289_v21 = vshll.u32 %v5552_v29, 16  ;;  %v3367_v22 = vrot.slane %v5552_v29, 1  ;;  %v3293_v15 = vshrl.u32 %v5552_v29, 16 }
 0x337   : > { %v2862_v11 = vpop.f32.mrf.mxu1 }
 0x338   : > { %v2914_v24 = vadd.f32 %v2913_v12, %v2862_v11  ;;  %v5562_v1 = vrot.slane %v3289_v21, 1  ;;  %v5567_v17 = vsel %vm2945_vm6, %v3162_v50, %v3367_v22  ;;  %v2918_v31 = vpop.f32.mrf.mxu2 }
 0x339   : > { %4231 = vmatmul.msk.bf16.gmra.mxu3 %vm452_vm3, %v5460_v52 }
 0x33a   : > { %v3292_v25 = vsel %vm2789_vm7, %v3090_v63, %v5562_v1  ;;  %v3295_v37 = vor.u32 %v3293_v15, %v5562_v1 }
 0x33b   : > { %4209 = vmatmul.msk.bf16.gmra.mxu1 %vm452_vm3, %v5404_v49  ;;  %v2987_v9 = vpop.f32.mrf.mxu3 }
 0x33c   : > { %v5575_v34 = vadd.f32 %v2987_v9, %v2914_v24 }
 0x33d   : > { %v2778_v40 = vld [vmem:[#allocation3 + $0xc0] ss:$2 sm:$0x7f] }
 0x33f   : > { %v5586_v26 = vpop.f32.mrf.mxu1 }
 0x340   : > { %v5597_v4 = vpop.f32.mrf.mxu2 }
 0x343   : > { %v5588_v39 = vpop.f32.mrf.mxu3 }
 0x346   : > { %4222 = vmatmul.msk.bf16.gmra.mxu2 %vm452_vm3, %v3094_v3 }
 0x349   : > { %4232 = vmatmul.msk.bf16.gmra.mxu3 %vm452_vm3, %v3163_v54 }
 0x34b   : > { %4210 = vmatmul.msk.bf16.gmra.mxu1 %vm452_vm3, %v5445_v18 }
 0x356   : > { %4223 = vmatmul.msk.bf16.gmra.mxu2 %vm452_vm3, %v3097_v6 }
 0x358   : > { %v2867_v46 = vpop.f32.mrf.mxu1 }
 0x359   : > { %v2919_v57 = vadd.f32 %v2918_v31, %v2867_v46  ;;  %4233 = vmatmul.msk.bf16.gmra.mxu3 %vm452_vm3, %v3165_v55  ;;  %v2923_v51 = vpop.f32.mrf.mxu2 }
 0x35b   : > { %4211 = vmatmul.msk.bf16.gmra.mxu1 %vm452_vm3, %v5544_v23 }
 0x35c   : > { %v2992_v47 = vpop.f32.mrf.mxu3 }
 0x35d   : > { %v5595_v32 = vadd.f32 %v2992_v47, %v2919_v57 }
 0x360   : > { %v5603_v35 = vpop.f32.mrf.mxu1 }
 0x361   : > { %v2925_v33 = vpop.f32.mrf.mxu2 }
 0x364   : > { %v5605_v61 = vpop.f32.mrf.mxu3 }
 0x366   : > { %4252 = vmatmul.msk.bf16.vlgmr.msra.gmra.mxu2 %vm452_vm3, %v5466_v13 }
 0x369   : > { %4234 = vmatmul.msk.bf16.gmra.mxu3 %vm452_vm3, %v3164_v14 }
 0x36b   : > { %4212 = vmatmul.msk.bf16.gmra.mxu1 %vm452_vm3, %v3021_v8 }
 0x376   : > { %4253 = vmatmul.msk.bf16.gmra.mxu2 %vm452_vm3, %v3087_v60 }
 0x378   : > { %v2872_v30 = vpop.f32.mrf.mxu1 }
 0x379   : > { %v2924_v28 = vadd.f32 %v2923_v51, %v2872_v30  ;;  %v2928_v58 = vpop.f32.mrf.mxu2  ;;  %4263 = vmatmul.msk.bf16.vlgmr.msra.gmra.mxu3 %vm452_vm3, %v5460_v52  ;;  %v3226_v52 = vpack.c.bf16 %v2778_v40, %v2778_v40 }
 0x37b   : > { %4241 = vmatmul.msk.bf16.vlgmr.msrb.gmra.mxu1 %vm452_vm3, %v5404_v49  ;;  %v3296_v36 = vshll.u32 %v3226_v52, 16  ;;  %v3300_v24 = vshrl.u32 %v3226_v52, 16  ;;  %v3369_v8 = vrot.slane %v3226_v52, 1 }
 0x37c   : > { %v2997_v13 = vpop.f32.mrf.mxu3 }
 0x37d   : > { %v5612_v41 = vadd.f32 %v2997_v13, %v2924_v28  ;;  %v3298_v59 = vrot.slane %v3296_v36, 1  ;;  %v3370_v9 = vsel %vm2945_vm6, %v3367_v22, %v3369_v8 }
 0x37f   : > { %v3299_v42 = vsel %vm2789_vm7, %v3295_v37, %v3298_v59  ;;  %v3302_v1 = vor.u32 %v3300_v24, %v3298_v59  ;;  %v2916_v24 = vadd.f32 %v5584_v20, %v5586_v26 }
 0x380   : > { %v2874_v56 = vpop.f32.mrf.mxu1 }
 0x381   : > { %v2926_v7 = vadd.f32 %v2925_v33, %v2874_v56  ;;  %v5614_v0 = vpop.f32.mrf.mxu2 }
 0x384   : > { %v2999_v5 = vpop.f32.mrf.mxu3 }
 0x385   : > { %v5616_v45 = vadd.f32 %v2999_v5, %v2926_v7 }
 0x386   : > { %4254 = vmatmul.msk.bf16.gmra.mxu2 %vm452_vm3, %v3292_v25 }
 0x388   : > { %v2877_v2 = vpop.f32.mrf.mxu1 }
 0x389   : > { %v2929_v43 = vadd.f32 %v2928_v58, %v2877_v2  ;;  %v2933_v44 = vpop.f32.mrf.mxu2  ;;  %4264 = vmatmul.msk.bf16.gmra.mxu3 %vm452_vm3, %v3163_v54 }
 0x38b   : > { %4242 = vmatmul.msk.bf16.gmra.mxu1 %vm452_vm3, %v5445_v18 }
 0x38c   : > { %v3002_v49 = vpop.f32.mrf.mxu3 }
 0x38d   : > { %v3017_v27 = vadd.f32 %v3002_v49, %v2929_v43  ;;  %v4361_v43 = vld [vmem:[%s5823_s5 + $0x10] sm:$0xff] }
 0x38e   : > { %3590 = vmatpush.bf16.msrb.mxu2 %v4361_v43 }
 0x390   : > { %v5622_v48 = vpop.f32.mrf.mxu1 }
 0x391   : > { %v2935_v53 = vpop.f32.mrf.mxu2 }
 0x394   : > { %v5626_v16 = vpop.f32.mrf.mxu3 }
 0x396   : > { %4255 = vmatmul.msk.bf16.gmra.mxu2 %vm452_vm3, %v3299_v42 }
 0x398   : > { %v2882_v60 = vpop.f32.mrf.mxu1 }
 0x399   : > { %v2934_v19 = vadd.f32 %v2933_v44, %v2882_v60  ;;  %v3124_v18 = vpop.f32.mrf.mxu2  ;;  %4265 = vmatmul.msk.bf16.gmra.mxu3 %vm452_vm3, %v5567_v17 }
 0x39b   : > { %4243 = vmatmul.msk.bf16.gmra.mxu1 %vm452_vm3, %v5544_v23 }
 0x39c   : > { %v3007_v50 = vpop.f32.mrf.mxu3 }
 0x39d   : > { %v3019_v21 = vadd.f32 %v3007_v50, %v2934_v19 }
 0x3a0   : > { %v2884_v12 = vpop.f32.mrf.mxu1 }
 0x3a1   : > { %v5634_v11 = vpop.f32.mrf.mxu2 }
 0x3a4   : > { %v3009_v63 = vpop.f32.mrf.mxu3 }
 0x3a6   : > { %4256 = vmatmul.msk.bf16.gmra.mxu2 %vm452_vm3, %v3302_v1  ;;  %v3012_v1 = vadd.f32 %v5588_v39, %v2916_v24  ;;  %v2921_v39 = vadd.f32 %v5597_v4, %v5603_v35  ;;  %v4364_v24 = vld [vmem:[%s5823_s5 + $0x28] sm:$0xff] }
 0x3a8   : > { %v3048_v25 = vpop.f32.mrf.mxu1 }
 0x3a9   : > { %v3072_v17 = vadd.f32 %v3048_v25, %v5575_v34  ;;  %v3129_v10 = vpop.f32.mrf.mxu2  ;;  %4266 = vmatmul.msk.bf16.gmra.mxu3 %vm452_vm3, %v3370_v9 }
 0x3ab   : > { %4244 = vmatmul.msk.bf16.gmra.mxu1 %vm452_vm3, %v5552_v29  ;;  %v3148_v23 = vadd.f32 %v3124_v18, %v3072_v17 }
 0x3ac   : > { %v3192_v62 = vpop.f32.mrf.mxu3 }
 0x3ad   : > { %v3216_v3 = vadd.f32 %v3192_v62, %v3148_v23 }
 0x3b0   : > { %v3050_v54 = vpop.f32.mrf.mxu1 }
 0x3b1   : > { %v5644_v38 = vpop.f32.mrf.mxu2 }
 0x3b4   : > { %v3194_v6 = vpop.f32.mrf.mxu3 }
 0x3b8   : > { %v3053_v14 = vpop.f32.mrf.mxu1 }
 0x3b9   : > { %v3074_v31 = vadd.f32 %v3053_v14, %v5595_v32  ;;  %v3134_v46 = vpop.f32.mrf.mxu2  ;;  %4267 = vmatmul.msk.bf16.gmra.mxu3 %vm452_vm3, %v3369_v8  ;;  %v3073_v8 = vadd.f32 %v3050_v54, %v3012_v1 }
 0x3bb   : > { %4245 = vmatmul.msk.bf16.gmra.mxu1 %vm452_vm3, %v3226_v52  ;;  %v3150_v22 = vadd.f32 %v3129_v10, %v3074_v31  ;;  %v3149_v10 = vadd.f32 %v5634_v11, %v3073_v8  ;;  %v4363_v11 = vld [vmem:[%s5823_s5 + $0x20] sm:$0xff] }
 0x3bc   : > { %v3197_v34 = vpop.f32.mrf.mxu3  ;;  %3695 = vmatpush.bf16.msra.mxu0 %v4363_v11  ;;  %v2931_v11 = vadd.f32 %v5614_v0, %v5622_v48 }
 0x3bd   : > { %v5649_v55 = vadd.f32 %v3197_v34, %v3150_v22  ;;  %v3217_v62 = vadd.f32 %v3194_v6, %v3149_v10  ;;  %v3014_v6 = vadd.f32 %v5605_v61, %v2921_v39 }
 0x3c0   : > { %v3055_v29 = vpop.f32.mrf.mxu1 }
 0x3c1   : > { %v5651_v57 = vpop.f32.mrf.mxu2 }
 0x3c4   : > { %v5653_v47 = vpop.f32.mrf.mxu3 }
 0x3c8   : > { %v3058_v51 = vpop.f32.mrf.mxu1 }
 0x3c9   : > { %v3076_v33 = vadd.f32 %v3058_v51, %v5612_v41  ;;  %v3139_v30 = vpop.f32.mrf.mxu2  ;;  %v4362_v41 = vld [vmem:[%s5823_s5 + $0x18] sm:$0xff]  ;;  %v3075_v51 = vadd.f32 %v3055_v29, %v3014_v6  ;;  %v3018_v6 = vadd.f32 %v5626_v16, %v2931_v11 }
 0x3ca   : > { %3635 = vmatpush.bf16.msrb.mxu3 %v4362_v41 }
 0x3cb   : > { %v3152_v28 = vadd.f32 %v3134_v46, %v3076_v33  ;;  %v5688_v46 = vld [vmem:[%s5822_s4] ss:$0 sm:$0xff] }
 0x3cc   : > { %v3202_v32 = vpop.f32.mrf.mxu3 }
 0x3cd   : > { %v5656_v58 = vadd.f32 %v3202_v32, %v3152_v28 }
 0x3d0   : > { %v5658_v13 = vpop.f32.mrf.mxu1 }
 0x3d1   : > { %v5660_v56 = vpop.f32.mrf.mxu2 }
 0x3d4   : > { %v5662_v7 = vpop.f32.mrf.mxu3 }
 0x3d8   : > { %v3063_v5 = vpop.f32.mrf.mxu1 }
 0x3d9   : > { %v3078_v40 = vadd.f32 %v3063_v5, %v3017_v27  ;;  %v3144_v2 = vpop.f32.mrf.mxu2  ;;  %v4359_v27 = vld [vmem:[%s5823_s5] sm:$0xff]  ;;  %v3151_v5 = vadd.f32 %v5644_v38, %v3075_v51  ;;  %v4366_v51 = vld [vmem:[%s5823_s5 + $0x38] sm:$0xff] }
 0x3da   : > { %3541 = vmatpush.bf16.msra.mxu1 %v4359_v27  ;;  %3852 = vmatpush.bf16.msra.mxu3 %v4366_v51 }
 0x3db   : > { %v3154_v44 = vadd.f32 %v3139_v30, %v3078_v40  ;;  %v3219_v61 = vadd.f32 %v5653_v47, %v3151_v5 }
 0x3dc   : > { %v3207_v52 = vpop.f32.mrf.mxu3 }
 0x3dd   : > { %v5670_v49 = vadd.f32 %v3207_v52, %v3154_v44 }
 0x3de   : > { %3747 = vmatpush.bf16.msrb.mxu1 %v4364_v24 }
 0x3e0   : > { %v5672_v36 = vpop.f32.mrf.mxu1 }
 0x3e1   : > { %v3146_v53 = vpop.f32.mrf.mxu2 }
 0x3e4   : > { %v5677_v15 = vpop.f32.mrf.mxu3 }
 0x3e8   : > { %v3068_v59 = vpop.f32.mrf.mxu1 }
 0x3e9   : > { %v3080_v37 = vadd.f32 %v3068_v59, %v3019_v21  ;;  %v3329_v42 = vpop.f32.mrf.mxu2 }
 0x3eb   : > { %v3156_v60 = vadd.f32 %v3144_v2, %v3080_v37  ;;  %v3077_v37 = vadd.f32 %v5658_v13, %v5616_v45 }
 0x3ec   : > { %v3212_v19 = vpop.f32.mrf.mxu3 }
 0x3ed   : > { %v5679_v18 = vadd.f32 %v3212_v19, %v3156_v60 }
 0x3f0   : > { %v3070_v50 = vpop.f32.mrf.mxu1 }
 0x3f1   : > { %v3331_v12 = vpop.f32.mrf.mxu2 }
 0x3f4   : > { %v3214_v63 = vpop.f32.mrf.mxu3 }
 0x3f5   : > { %v3153_v63 = vadd.f32 %v5651_v57, %v3077_v37 }
 0x3f8   : > { %v3253_v25 = vpop.f32.mrf.mxu1 }
 0x3f9   : > { %v3277_v9 = vadd.f32 %v3253_v25, %v3216_v3  ;;  %v3334_v17 = vpop.f32.mrf.mxu2 }
 0x3fb   : > { %v3353_v23 = vadd.f32 %v3329_v42, %v3277_v9 }
 0x3fc   : > { %v3397_v21 = vpop.f32.mrf.mxu3 }
 0x3fd   : > { %v3421_v31 = vadd.f32 %v3397_v21, %v3353_v23  ;;  %v3221_v21 = vadd.f32 %v5662_v7, %v3153_v63 }
 0x3ff   : > { %v3434_v22 = vadd.f32 %v5688_v46, %v3421_v31 }
 0x400   : > { %v3255_v14 = vpop.f32.mrf.mxu1 }
 0x401   : > { %v3278_v20 = vadd.f32 %v3255_v14, %v3217_v62  ;;  %v3336_v26 = vpop.f32.mrf.mxu2  ;;  %v3443_v28 = vmax.f32 %v3434_v22, 0.0 }
 0x403   : > { %v3354_v54 = vadd.f32 %v3331_v12, %v3278_v20 }
 0x404   : > { %v3399_v3 = vpop.f32.mrf.mxu3 }
 0x405   : > { %v3422_v34 = vadd.f32 %v3399_v3, %v3354_v54 }
 0x407   : > { %v3435_v33 = vadd.f32 %v5688_v46, %v3422_v34  ;;  %v4365_v34 = vld [vmem:[%s5823_s5 + $0x30] sm:$0xff] }
 0x408   : > { %v3258_v30 = vpop.f32.mrf.mxu1  ;;  %3792 = vmatpush.bf16.msra.mxu2 %v4365_v34 }
 0x409   : > { %v3444_v32 = vmax.f32 %v3435_v33, 0.0  ;;  %v3279_v4 = vadd.f32 %v3258_v30, %v5649_v55  ;;  %v3339_v35 = vpop.f32.mrf.mxu2 }
 0x40b   : > { %v3452_v40 = vpack.c.bf16 %v3444_v32, %v3443_v28  ;;  %v3355_v43 = vadd.f32 %v3334_v17, %v3279_v4  ;;  %v3079_v28 = vadd.f32 %v5672_v36, %v3018_v6 }
 0x40c   : > { %v3402_v2 = vpop.f32.mrf.mxu3 }
 0x40d   : > { %4281 = vmatmul.msk.bf16.vlgmr.msra.gmra.mxu1 %vm3489_vm9, %v3452_v40  ;;  %v3423_v29 = vadd.f32 %v3402_v2, %v3355_v43  ;;  %v3463_v38 = vshll.u32 %v3452_v40, 16  ;;  %v3461_v45 = vshrl.u32 %v3452_v40, 16  ;;  %v3563_v17 = vrot.slane %v3452_v40, 1 }
 0x40f   : > { %v3436_v59 = vadd.f32 %v5688_v46, %v3423_v29  ;;  %v3465_v1 = vrot.slane %v3463_v38, 1 }
 0x410   : > { %v3260_v41 = vpop.f32.mrf.mxu1 }
 0x411   : > { %v3280_v44 = vadd.f32 %v3260_v41, %v3219_v61  ;;  %v3341_v52 = vpop.f32.mrf.mxu2  ;;  %v3445_v19 = vmax.f32 %v3436_v59, 0.0  ;;  %v3466_v62 = vor.u32 %v3465_v1, %v3461_v45  ;;  %v3155_v41 = vadd.f32 %v5660_v56, %v3079_v28 }
 0x413   : > { %v3356_v53 = vadd.f32 %v3336_v26, %v3280_v44 }
 0x414   : > { %v3404_v27 = vpop.f32.mrf.mxu3 }
 0x415   : > { %v3424_v55 = vadd.f32 %v3404_v27, %v3356_v53  ;;  %v3223_v27 = vadd.f32 %v5677_v15, %v3155_v41 }
 0x417   : > { %v3437_v42 = vadd.f32 %v5688_v46, %v3424_v55 }
 0x418   : > { %v3263_v60 = vpop.f32.mrf.mxu1 }
 0x419   : > { %v3446_v50 = vmax.f32 %v3437_v42, 0.0  ;;  %v3281_v47 = vadd.f32 %v3263_v60, %v5656_v58  ;;  %v3344_v12 = vpop.f32.mrf.mxu2 }
 0x41b   : > { %v3453_v8 = vpack.c.bf16 %v3446_v50, %v3445_v19  ;;  %v3357_v25 = vadd.f32 %v3339_v35, %v3281_v47  ;;  %v4367_v50 = vld [vmem:[%s5823_s5 + $0x40] sm:$0xff] }
 0x41c   : > { %v3407_v13 = vpop.f32.mrf.mxu3 }
 0x41d   : > { %v3425_v9 = vadd.f32 %v3407_v13, %v3357_v25  ;;  %4282 = vmatmul.msk.bf16.gmra.mxu1 %vm3489_vm9, %v3453_v8  ;;  %4299 = vmatmul.msk.bf16.vlgmr.msrb.gmra.mxu3 %vm3489_vm9, %v3453_v8  ;;  %v3564_v58 = vrot.slane %v3453_v8, 1  ;;  %v3468_v10 = vshll.u32 %v3453_v8, 16  ;;  %v3472_v0 = vshrl.u32 %v3453_v8, 16 }
 0x41f   : > { %v3438_v23 = vadd.f32 %v5688_v46, %v3425_v9  ;;  %v3565_v57 = vsel %vm2945_vm6, %v3563_v17, %v3564_v58  ;;  %v3470_v14 = vrot.slane %v3468_v10, 1 }
 0x420   : > { %v3265_v31 = vpop.f32.mrf.mxu1  ;;  %4290 = vmatmul.msk.bf16.vlgmr.msrb.gmra.mxu2 %vm3489_vm9, %v3565_v57 }
 0x421   : > { %v3447_v20 = vmax.f32 %v3438_v23, 0.0  ;;  %v3282_v26 = vadd.f32 %v3265_v31, %v3221_v21  ;;  %v3346_v39 = vpop.f32.mrf.mxu2  ;;  %v3471_v54 = vsel %vm2789_vm7, %v3466_v62, %v3470_v14  ;;  %v3474_v4 = vor.u32 %v3472_v0, %v3470_v14 }
 0x422   : > { %4274 = vmatmul.msk.bf16.vlgmr.msrb.gmra.mxu0 %vm3489_vm9, %v3471_v54 }
 0x423   : > { %v5721_v7 = vpack.c.bf16 %v3447_v20, %v3447_v20  ;;  %v3358_v3 = vadd.f32 %v3341_v52, %v3282_v26  ;;  %3904 = vmatpush.bf16.msrb.mxu0 %v4367_v50 }
 0x424   : > { %v3409_v22 = vpop.f32.mrf.mxu3 }
 0x425   : > { %v3426_v33 = vadd.f32 %v3409_v22, %v3358_v3  ;;  %v3566_v30 = vrot.slane %v5721_v7, 1  ;;  %v3476_v48 = vshll.u32 %v5721_v7, 16  ;;  %v3480_v26 = vshrl.u32 %v5721_v7, 16 }
 0x427   : > { %v3439_v16 = vadd.f32 %v5688_v46, %v3426_v33  ;;  %v3567_v32 = vsel %vm2945_vm6, %v3564_v58, %v3566_v30  ;;  %v3478_v35 = vrot.slane %v3476_v48, 1 }
 0x428   : > { %v3268_v5 = vpop.f32.mrf.mxu1 }
 0x429   : > { %v3448_v40 = vmax.f32 %v3439_v16, 0.0  ;;  %v3283_v2 = vadd.f32 %v3268_v5, %v5670_v49  ;;  %v3349_v43 = vpop.f32.mrf.mxu2  ;;  %v3479_v61 = vsel %vm2789_vm7, %v3474_v4, %v3478_v35  ;;  %v3482_v3 = vor.u32 %v3480_v26, %v3478_v35 }
 0x42b   : > { %v5740_v36 = vpack.c.bf16 %v3448_v40, %v3447_v20  ;;  %v3359_v29 = vadd.f32 %v3344_v12, %v3283_v2 }
 0x42c   : > { %v3412_v44 = vpop.f32.mrf.mxu3 }
 0x42d   : > { %v3427_v52 = vadd.f32 %v3412_v44, %v3359_v29  ;;  %4283 = vmatmul.msk.bf16.gmra.mxu1 %vm3489_vm9, %v5721_v7  ;;  %4300 = vmatmul.msk.bf16.gmra.mxu3 %vm3489_vm9, %v5740_v36  ;;  %v3721_v53 = vrot.slane %v5740_v36, 1  ;;  %v3659_v49 = vshll.u32 %v5740_v36, 16  ;;  %v3663_v1 = vshrl.u32 %v5740_v36, 16 }
 0x42f   : > { %v3440_v59 = vadd.f32 %v5688_v46, %v3427_v52  ;;  %v3722_v56 = vsel %vm2945_vm6, %v3564_v58, %v3721_v53  ;;  %v3661_v55 = vrot.slane %v3659_v49, 1 }
 0x430   : > { %v3270_v37 = vpop.f32.mrf.mxu1  ;;  %4291 = vmatmul.msk.bf16.gmra.mxu2 %vm3489_vm9, %v3567_v32 }
 0x431   : > { %v3449_v38 = vmax.f32 %v3440_v59, 0.0  ;;  %v3284_v42 = vadd.f32 %v3270_v37, %v3223_v27  ;;  %v3351_v60 = vpop.f32.mrf.mxu2  ;;  %v3662_v19 = vsel %vm2789_vm7, %v3474_v4, %v3661_v55  ;;  %v3665_v13 = vor.u32 %v3663_v1, %v3661_v55 }
 0x432   : > { %4275 = vmatmul.msk.bf16.gmra.mxu0 %vm3489_vm9, %v3479_v61 }
 0x433   : > { %v3612_v15 = vpack.c.bf16 %v3449_v38, %v3449_v38  ;;  %v3360_v47 = vadd.f32 %v3346_v39, %v3284_v42 }
 0x434   : > { %v3414_v12 = vpop.f32.mrf.mxu3 }
 0x435   : > { %v3428_v24 = vadd.f32 %v3414_v12, %v3360_v47  ;;  %v3723_v63 = vrot.slane %v3612_v15, 1  ;;  %v3666_v8 = vshll.u32 %v3612_v15, 16  ;;  %v3670_v4 = vshrl.u32 %v3612_v15, 16 }
 0x437   : > { %v3441_v25 = vadd.f32 %v5688_v46, %v3428_v24  ;;  %v3724_v45 = vsel %vm2945_vm6, %v3721_v53, %v3723_v63  ;;  %v3668_v9 = vrot.slane %v3666_v8, 1 }
 0x438   : > { %v3273_v17 = vpop.f32.mrf.mxu1 }
 0x439   : > { %v3450_v58 = vmax.f32 %v3441_v25, 0.0  ;;  %v3285_v10 = vadd.f32 %v3273_v17, %v5679_v18  ;;  %v3669_v21 = vsel %vm2789_vm7, %v3665_v13, %v3668_v9  ;;  %v3672_v35 = vor.u32 %v3670_v4, %v3668_v9 }
 0x43b   : > { %v3768_v23 = vpack.c.bf16 %v3450_v58, %v3449_v38  ;;  %v3361_v57 = vadd.f32 %v3349_v43, %v3285_v10 }
 0x43c   : > { %v3417_v62 = vpop.f32.mrf.mxu3 }
 0x43d   : > { %v3816_v14 = vshll.u32 %v3768_v23, 16  ;;  %v3429_v31 = vadd.f32 %v3417_v62, %v3361_v57  ;;  %4301 = vmatmul.msk.bf16.gmra.mxu3 %vm3489_vm9, %v3612_v15  ;;  %4317 = vmatmul.msk.bf16.vlgmr.msrb.gmra.mxu1 %vm3489_vm9, %v3722_v56  ;;  %v3878_v20 = vrot.slane %v3768_v23, 1  ;;  %v3820_v33 = vshrl.u32 %v3768_v23, 16 }
 0x43f   : > { %v3442_v39 = vadd.f32 %v5688_v46, %v3429_v31  ;;  %v3818_v54 = vrot.slane %v3816_v14, 1  ;;  %v3879_v11 = vsel %vm2945_vm6, %v3721_v53, %v3878_v20 }
 0x440   : > { %v3275_v18 = vpop.f32.mrf.mxu1  ;;  %4292 = vmatmul.msk.bf16.gmra.mxu2 %vm3489_vm9, %v3566_v30 }
 0x441   : > { %v3451_v6 = vmax.f32 %v3442_v39, 0.0  ;;  %v3819_v22 = vsel %vm2789_vm7, %v3665_v13, %v3818_v54  ;;  %v3822_v46 = vor.u32 %v3820_v33, %v3818_v54 }
 0x442   : > { %4276 = vmatmul.msk.bf16.gmra.mxu0 %vm3489_vm9, %v3482_v3 }
 0x443   : > { %v3769_v34 = vpack.c.bf16 %v3451_v6, %v3451_v6 }
 0x444   : > { %v3419_v51 = vpop.f32.mrf.mxu3 }
 0x445   : > { %v3823_v0 = vshll.u32 %v3769_v34, 16  ;;  %v3880_v48 = vrot.slane %v3769_v34, 1  ;;  %v3827_v7 = vshrl.u32 %v3769_v34, 16 }
 0x447   : > { %v3825_v28 = vrot.slane %v3823_v0, 1  ;;  %v3881_v16 = vsel %vm2945_vm6, %v3878_v20, %v3880_v48 }
 0x449   : > { %v3826_v32 = vsel %vm2789_vm7, %v3822_v46, %v3825_v28  ;;  %v3829_v30 = vor.u32 %v3827_v7, %v3825_v28 }
 0x44d   : > { %4318 = vmatmul.msk.bf16.gmra.mxu1 %vm3489_vm9, %v3724_v45  ;;  %4335 = vmatmul.msk.bf16.vlgmr.msra.gmra.mxu3 %vm3489_vm9, %v3819_v22 }
 0x450   : > { %4326 = vmatmul.msk.bf16.vlgmr.msra.gmra.mxu2 %vm3489_vm9, %v5740_v36 }
 0x452   : > { %4308 = vmatmul.msk.bf16.vlgmr.msra.gmra.mxu0 %vm3489_vm9, %v3662_v19 }
 0x45d   : > { %4319 = vmatmul.msk.bf16.gmra.mxu1 %vm3489_vm9, %v3723_v63  ;;  %4336 = vmatmul.msk.bf16.gmra.mxu3 %vm3489_vm9, %v3826_v32 }
 0x460   : > { %4327 = vmatmul.msk.bf16.gmra.mxu2 %vm3489_vm9, %v3768_v23 }
 0x462   : > { %4309 = vmatmul.msk.bf16.gmra.mxu0 %vm3489_vm9, %v3669_v21 }
 0x46d   : > { %4337 = vmatmul.msk.bf16.gmra.mxu3 %vm3489_vm9, %v3829_v30 }
 0x470   : > { %4328 = vmatmul.msk.bf16.gmra.mxu2 %vm3489_vm9, %v3769_v34 }
 0x472   : > { %4310 = vmatmul.msk.bf16.gmra.mxu0 %vm3489_vm9, %v3672_v35 }
 0x482   : > { %4344 = vmatmul.msk.bf16.vlgmr.msrb.gmra.mxu0 %vm3489_vm9, %v3879_v11 }
 0x48a   : > { %v3543_v5 = vpop.f32.mrf.mxu1 }
 0x492   : > { %v3545_v40 = vpop.f32.mrf.mxu1  ;;  %4345 = vmatmul.msk.bf16.gmra.mxu0 %vm3489_vm9, %v3881_v16 }
 0x49a   : > { %v3548_v2 = vpop.f32.mrf.mxu1 }
 0x49f   : > { %v3508_v43 = vpop.f32.mrf.mxu0 }
 0x4a0   : > { %v3544_v61 = vadd.f32 %v3543_v5, %v3508_v43  ;;  %v3637_v41 = vpop.f32.mrf.mxu3 }
 0x4a2   : > { %v3550_v36 = vpop.f32.mrf.mxu1  ;;  %4346 = vmatmul.msk.bf16.gmra.mxu0 %vm3489_vm9, %v3880_v48 }
 0x4a3   : > { %v3592_v29 = vpop.f32.mrf.mxu2 }
 0x4a4   : > { %v3606_v44 = vadd.f32 %v3592_v29, %v3544_v61 }
 0x4a6   : > { %v3651_v52 = vadd.f32 %v3637_v41, %v3606_v44  ;;  %v4381_v41 = vld [vmem:[%s5824_s6] ss:$0 sm:$0xff] }
 0x4a7   : > { %v3510_v53 = vpop.f32.mrf.mxu0 }
 0x4a8   : > { %v3546_v49 = vadd.f32 %v3545_v40, %v3510_v53  ;;  %v3639_v27 = vpop.f32.mrf.mxu3 }
 0x4aa   : > { %v3553_v59 = vpop.f32.mrf.mxu1 }
 0x4ab   : > { %v3594_v56 = vpop.f32.mrf.mxu2 }
 0x4ac   : > { %v3607_v55 = vadd.f32 %v3594_v56, %v3546_v49 }
 0x4ae   : > { %v3652_v37 = vadd.f32 %v3639_v27, %v3607_v55 }
 0x4af   : > { %v3513_v38 = vpop.f32.mrf.mxu0 }
 0x4b0   : > { %v3549_v42 = vadd.f32 %v3548_v2, %v3513_v38  ;;  %v3642_v60 = vpop.f32.mrf.mxu3 }
 0x4b2   : > { %v3555_v19 = vpop.f32.mrf.mxu1 }
 0x4b3   : > { %v3597_v50 = vpop.f32.mrf.mxu2 }
 0x4b4   : > { %v3608_v15 = vadd.f32 %v3597_v50, %v3549_v42  ;;  %v3959_v50 = vlaneseq }
 0x4b6   : > { %v3653_v47 = vadd.f32 %v3642_v60, %v3608_v15 }
 0x4b7   : > { %v3515_v12 = vpop.f32.mrf.mxu0 }
 0x4b8   : > { %v3551_v24 = vadd.f32 %v3550_v36, %v3515_v12  ;;  %v3644_v63 = vpop.f32.mrf.mxu3 }
 0x4ba   : > { %v3749_v1 = vpop.f32.mrf.mxu1 }
 0x4bb   : > { %v3599_v8 = vpop.f32.mrf.mxu2 }
 0x4bc   : > { %v3609_v25 = vadd.f32 %v3599_v8, %v3551_v24 }
 0x4be   : > { %v3654_v45 = vadd.f32 %v3644_v63, %v3609_v25  ;;  %v3960_v25 = vand.u32 127, %v3959_v50 }
 0x4bf   : > { %v3518_v13 = vpop.f32.mrf.mxu0 }
 0x4c0   : > { %v3554_v9 = vadd.f32 %v3553_v59, %v3518_v13  ;;  %v3647_v17 = vpop.f32.mrf.mxu3  ;;  %vm3961_vm10 = vcmp.eq.s32.totalorder %v3960_v25, 0 }
 0x4c2   : > { %v3751_v58 = vpop.f32.mrf.mxu1 }
 0x4c3   : > { %v3602_v10 = vpop.f32.mrf.mxu2 }
 0x4c4   : > { %v3610_v21 = vadd.f32 %v3602_v10, %v3554_v9 }
 0x4c6   : > { %v3655_v23 = vadd.f32 %v3647_v17, %v3610_v21 }
 0x4c7   : > { %v3520_v57 = vpop.f32.mrf.mxu0 }
 0x4c8   : > { %v3649_v62 = vpop.f32.mrf.mxu3 }
 0x4ca   : > { %v3754_v14 = vpop.f32.mrf.mxu1 }
 0x4cb   : > { %v3604_v31 = vpop.f32.mrf.mxu2 }
 0x4cf   : > { %v3697_v20 = vpop.f32.mrf.mxu0 }
 0x4d0   : > { %v3854_v26 = vpop.f32.mrf.mxu3  ;;  %v3711_v32 = vadd.f32 %v3697_v20, %v3651_v52 }
 0x4d2   : > { %v3756_v39 = vpop.f32.mrf.mxu1  ;;  %v3763_v30 = vadd.f32 %v3749_v1, %v3711_v32 }
 0x4d3   : > { %v3794_v54 = vpop.f32.mrf.mxu2 }
 0x4d4   : > { %v3808_v5 = vadd.f32 %v3794_v54, %v3763_v30 }
 0x4d6   : > { %v3868_v61 = vadd.f32 %v3854_v26, %v3808_v5 }
 0x4d7   : > { %v3699_v11 = vpop.f32.mrf.mxu0 }
 0x4d8   : > { %v3856_v18 = vpop.f32.mrf.mxu3  ;;  %v3712_v40 = vadd.f32 %v3699_v11, %v3652_v37 }
 0x4da   : > { %v3759_v3 = vpop.f32.mrf.mxu1  ;;  %v3764_v43 = vadd.f32 %v3751_v58, %v3712_v40 }
 0x4db   : > { %v3796_v6 = vpop.f32.mrf.mxu2 }
 0x4dc   : > { %v3809_v44 = vadd.f32 %v3796_v6, %v3764_v43 }
 0x4de   : > { %v3869_v56 = vadd.f32 %v3856_v18, %v3809_v44 }
 0x4df   : > { %v3702_v22 = vpop.f32.mrf.mxu0 }
 0x4e0   : > { %v3859_v34 = vpop.f32.mrf.mxu3  ;;  %v3713_v53 = vadd.f32 %v3702_v22, %v3653_v47 }
 0x4e2   : > { %v3761_v51 = vpop.f32.mrf.mxu1  ;;  %v3765_v52 = vadd.f32 %v3754_v14, %v3713_v53 }
 0x4e3   : > { %v3799_v33 = vpop.f32.mrf.mxu2 }
 0x4e4   : > { %v3810_v37 = vadd.f32 %v3799_v33, %v3765_v52 }
 0x4e6   : > { %v3870_v63 = vadd.f32 %v3859_v34, %v3810_v37 }
 0x4e7   : > { %v3704_v0 = vpop.f32.mrf.mxu0 }
 0x4e8   : > { %v3861_v48 = vpop.f32.mrf.mxu3  ;;  %v3714_v42 = vadd.f32 %v3704_v0, %v3654_v45 }
 0x4ea   : > { %v3766_v12 = vadd.f32 %v3756_v39, %v3714_v42 }
 0x4eb   : > { %v3801_v46 = vpop.f32.mrf.mxu2 }
 0x4ec   : > { %v3811_v13 = vadd.f32 %v3801_v46, %v3766_v12 }
 0x4ee   : > { %v3871_v57 = vadd.f32 %v3861_v48, %v3811_v13 }
 0x4ef   : > { %v3707_v28 = vpop.f32.mrf.mxu0 }
 0x4f0   : > { %v5789_v16 = vpop.f32.mrf.mxu3  ;;  %v3715_v9 = vadd.f32 %v3707_v28, %v3655_v23 }
 0x4f2   : > { %v3767_v10 = vadd.f32 %v3759_v3, %v3715_v9 }
 0x4f3   : > { %v3804_v7 = vpop.f32.mrf.mxu2 }
 0x4f4   : > { %v3812_v26 = vadd.f32 %v3804_v7, %v3767_v10 }
 0x4f6   : > { %v3872_v3 = vadd.f32 %v5789_v16, %v3812_v26 }
 0x4f7   : > { %v3709_v4 = vpop.f32.mrf.mxu0 }
 0x4f8   : > { %v3866_v35 = vpop.f32.mrf.mxu3 }
 0x4fb   : > { %v3806_v2 = vpop.f32.mrf.mxu2 }
 0x4ff   : > { %v3906_v36 = vpop.f32.mrf.mxu0 }
 0x500   : > { %v3920_v29 = vadd.f32 %v3906_v36, %v3868_v61 }
 0x502   : > { %v3929_v49 = vadd.f32 %v4381_v41, %v3920_v29 }
 0x504   : > { %v3934_v27 = vsub.f32 0.0, %v3929_v49 }
 0x506   : > { %v3939_v59 = vmul.f32 1.442695, %v3934_v27 }
 0x507   : > { %v3908_v55 = vpop.f32.mrf.mxu0 }
 0x508   : > { %4382 = vpow2.f32 %v3939_v59  ;;  %v3921_v38 = vadd.f32 %v3908_v55, %v3869_v56 }
 0x50a   : > { %v3930_v60 = vadd.f32 %v4381_v41, %v3921_v38 }
 0x50c   : > { %v3935_v19 = vsub.f32 0.0, %v3930_v60 }
 0x50e   : > { %v4383_v15 = vpop.eup %4382  ;;  %v3941_v24 = vmul.f32 1.442695, %v3935_v19 }
 0x50f   : > { %v3949_v1 = vadd.f32 1.0, %v4383_v15  ;;  %v3911_v47 = vpop.f32.mrf.mxu0 }
 0x510   : > { %4384 = vpow2.f32 %v3941_v24  ;;  %v3922_v8 = vadd.f32 %v3911_v47, %v3870_v63 }
 0x511   : > { %4386 = vrcp.f32 %v3949_v1 }
 0x512   : > { %v3931_v17 = vadd.f32 %v4381_v41, %v3922_v8 }
 0x514   : > { %v3936_v58 = vsub.f32 0.0, %v3931_v17 }
 0x516   : > { %v4385_v45 = vpop.eup %4384  ;;  %v3943_v21 = vmul.f32 1.442695, %v3936_v58 }
 0x517   : > { %v4387_v62 = vpop.eup %4386  ;;  %v3950_v14 = vadd.f32 1.0, %v4385_v45  ;;  %v3913_v31 = vpop.f32.mrf.mxu0 }
 0x518   : > { %v3962_v23 = vsel %vm3961_vm10, %v4387_v62, %v3929_v49  ;;  %4388 = vpow2.f32 %v3943_v21  ;;  %v3923_v20 = vadd.f32 %v3913_v31, %v3871_v57 }
 0x519   : > { %3968 = vst.msk [vmem:[%s5798_s27] sm:$0xff] %vm3967_vm11, %v3962_v23  ;;  %4390 = vrcp.f32 %v3950_v14 }
 0x51a   : > { %v3932_v39 = vadd.f32 %v4381_v41, %v3923_v20 }
 0x51c   : > { %v3937_v54 = vsub.f32 0.0, %v3932_v39 }
 0x51e   : > { %v4389_v11 = vpop.eup %4388  ;;  %v3945_v18 = vmul.f32 1.442695, %v3937_v54 }
 0x51f   : > { %v4391_v6 = vpop.eup %4390  ;;  %v3951_v22 = vadd.f32 1.0, %v4389_v11  ;;  %v3916_v34 = vpop.f32.mrf.mxu0 }
 0x520   : > { %v3963_v51 = vsel %vm3961_vm10, %v4391_v6, %v3930_v60  ;;  %4392 = vpow2.f32 %v3945_v18  ;;  %v3924_v33 = vadd.f32 %v3916_v34, %v3872_v3 }
 0x521   : > { %3969 = vst.msk [vmem:[%s5798_s27 + $0x8] sm:$0xff] %vm3967_vm11, %v3963_v51  ;;  %4394 = vrcp.f32 %v3951_v22 }
 0x522   : > { %v3933_v0 = vadd.f32 %v4381_v41, %v3924_v33 }
 0x524   : > { %v3938_v48 = vsub.f32 0.0, %v3933_v0 }
 0x526   : > { %v4393_v46 = vpop.eup %4392  ;;  %v3947_v28 = vmul.f32 1.442695, %v3938_v48 }
 0x527   : > { %v4395_v32 = vpop.eup %4394  ;;  %v3952_v7 = vadd.f32 1.0, %v4393_v46  ;;  %v3918_v16 = vpop.f32.mrf.mxu0 }
 0x528   : > { %v3964_v30 = vsel %vm3961_vm10, %v4395_v32, %v3931_v17  ;;  %4396 = vpow2.f32 %v3947_v28 }
 0x529   : > { %3970 = vst.msk [vmem:[%s5798_s27 + $0x10] sm:$0xff] %vm3967_vm11, %v3964_v30  ;;  %4398 = vrcp.f32 %v3952_v7 }
 0x52e   : > { %v4397_v4 = vpop.eup %4396 }
 0x52f   : > { %v4399_v35 = vpop.eup %4398  ;;  %v3953_v5 = vadd.f32 1.0, %v4397_v4 }
 0x530   : > { %v3965_v40 = vsel %vm3961_vm10, %v4399_v35, %v3932_v39 }
 0x531   : > { %3971 = vst.msk [vmem:[%s5798_s27 + $0x18] sm:$0xff] %vm3967_vm11, %v3965_v40  ;;  %4400 = vrcp.f32 %v3953_v5 }
 0x537   : > { %v4401_v2 = vpop.eup %4400 }
 0x538   : > { %v3966_v43 = vsel %vm3961_vm10, %v4401_v2, %v3933_v0 }
 0x539   : > { %3973 = vst.msk [vmem:[%s5798_s27 + $0x20] sm:$0x7] %vm3972_vm12, %v3966_v43 }
 0x53a PF: > { %s17_s24 = sadd.s32 1, %s4408_s24  }
 0x53b   : > { %p14_p4 = scmp.ge.s32.totalorder %s17_s24, 4  }
 0x53d   :  { %16 = sbr.rel (!%p14_p4) target bundleno = 1 (0x1), region = 114 }

</bundles_post_ra>
